<compile_context>
chip_gen: v7x
topology: tpu7x:2x2x1
jax: 0.10.0
libtpu: 0.0.40
codegen_flags: <defaults>
</compile_context>

<pallas_src>
import functools

import jax
import jax.numpy as jnp
from jax.experimental import pallas as pl
from jax.experimental.pallas import tpu as pltpu


def _net_kernel(col_ref, w1_ref, b1_ref,
                wd2_ref, bd2_ref, wp2_ref, bp2_ref,
                wd3_ref, bd3_ref, wp3_ref, bp3_ref,
                w4_ref, b4_ref,
                out_ref, pad_ref, *, H, W):
    Nb = col_ref.shape[0]                 # images per grid step
    HW = H * W
    KK = col_ref.shape[2]                 # 25 conv1 taps, zero-padded to 32
    C = w1_ref.shape[1]                   # 32
    OC = w4_ref.shape[2]                  # upscale_factor ** 2
    f32 = jnp.float32

    # Zero the halo scratch ONCE per invocation; the (H, W) interior is fully
    # overwritten before every read, so only the 1-pixel border must stay zero.
    pad_ref[...] = jnp.zeros_like(pad_ref)

    # ---- conv1: 5x5, 1 -> C, pad 2  ==  one (Nb*HW, 32) @ (32, C) MXU matmul
    cols = col_ref[...].reshape(Nb * HW, KK)
    h = jnp.dot(cols, w1_ref[...], preferred_element_type=f32) + b1_ref[...]
    h = jnp.maximum(h, 0.0).reshape(Nb, H, W, C)            # ReLU(conv1)

    def depthwise3x3(v, wd, bd):
        # v: (Nb, H, W, C); wd: (9, C); bd: (1, C) -- zero-padded "same" conv.
        # NOTE: the kx = 1, 2 reads are sublane-unaligned slices that Mosaic
        # materializes as re-laid-out copies; a roll+mask scheme could move
        # them onto the otherwise-idle XLU.
        pad_ref[:, 1:H + 1, 1:W + 1, :] = v
        acc = jnp.zeros((Nb, H, W, C), f32)
        for ky in range(3):
            for kx in range(3):
                acc = acc + pad_ref[:, ky:ky + H, kx:kx + W, :] * wd[ky * 3 + kx]
        return acc + bd

    def pointwise(v, wp, bp):
        # 1x1 conv == channel matmul on the MXU with M = Nb*H*W.
        # (bf16 operands with f32 accumulation are an option on v6e/v7x but
        #  would strain the 1e-3 check vs. the f32 reference.)
        flat = v.reshape(Nb * HW, C)
        o = jnp.dot(flat, wp, preferred_element_type=f32) + bp
        return o.reshape(Nb, H, W, C)

    # ---- block 2 (forward()'s relu(relu(x)) is idempotent: h >= 0 already) --
    h = pointwise(depthwise3x3(h, wd2_ref[...], bd2_ref[...]),
                  wp2_ref[...], bp2_ref[...])
    h = jnp.maximum(h, 0.0)                                  # ReLU before dw3
    # ---- block 3 -------------------------------------------------------------
    h = pointwise(depthwise3x3(h, wd3_ref[...], bd3_ref[...]),
                  wp3_ref[...], bp3_ref[...])

    # ---- conv4: 3x3, C -> OC, pad 1: 9 accumulated MXU matmuls (M = Nb*HW) ---
    pad_ref[:, 1:H + 1, 1:W + 1, :] = h
    w4 = w4_ref[...]                                         # (9, C, OC)
    acc4 = jnp.zeros((Nb * HW, OC), f32)
    for k in range(9):
        ky, kx = k // 3, k % 3
        t = pad_ref[:, ky:ky + H, kx:kx + W, :].reshape(Nb * HW, C)
        acc4 = acc4 + jnp.dot(t, w4[k], preferred_element_type=f32)
    y = (acc4 + b4_ref[...]).reshape(Nb, HW, OC)

    # ---- lane-dense writeback: (OC, HW) per image with HW on lanes -----------
    for n in range(Nb):
        out_ref[n] = y[n].T


@functools.partial(jax.jit, static_argnames=("upscale_factor", "batch_block"))
def net_forward(x_nchw, params, upscale_factor=3, batch_block=None):
    N, Cin, H, W = x_nchw.shape
    assert Cin == 1
    r = upscale_factor
    r2 = r * r
    C = params["w1"].shape[1]
    HW = H * W

    if batch_block is None:
        # Keep >= 2 grid steps when N >= 2 (so a 2-TC chip can split the batch)
        # while packing up to 8 images per step to amortize per-step overhead;
        # capped by a rough per-image VMEM footprint (C lane-padded to 128).
        vmem_cap = max(1, (24 * 1024 * 1024) // (16 * HW * 128 * 4))
        batch_block = max(1, min(8, (N + 1) // 2, vmem_cap))
    Nb = int(batch_block)
    G = pl.cdiv(N, Nb)
    Np = G * Nb

    # conv1 im2col in the wrapper (layout plumbing; the contraction runs on the
    # MXU inside the kernel).  Taps padded 25 -> 32 for a tile-aligned K.
    xpad = jnp.pad(x_nchw.astype(jnp.float32)[:, 0], ((0, 0), (2, 2), (2, 2)))
    cols = jnp.stack([xpad[:, ky:ky + H, kx:kx + W]
                      for ky in range(5) for kx in range(5)],
                     axis=-1).reshape(N, HW, 25)
    cols = jnp.pad(cols, ((0, Np - N), (0, 0), (0, 7)))      # (Np, HW, 32)
    w1p = jnp.pad(params["w1"], ((0, 7), (0, 0)))            # (32, C)

    weights = [w1p, params["b1"],
               params["wd2"], params["bd2"], params["wp2"], params["bp2"],
               params["wd3"], params["bd3"], params["wp3"], params["bp3"],
               params["w4"], params["b4"]]

    def full_spec(arr):
        nd = arr.ndim
        return pl.BlockSpec(arr.shape, lambda g, _nd=nd: (0,) * _nd)

    # TODO(synk): for frames too large for whole-image VMEM residency (notably
    # v7x's 64 MiB), tile over H with a 2-row halo via the xpad/cols index_map.
    y = pl.pallas_call(
        functools.partial(_net_kernel, H=H, W=W),
        out_shape=jax.ShapeDtypeStruct((Np, r2, HW), jnp.float32),
        grid_spec=pltpu.PrefetchScalarGridSpec(
            num_scalar_prefetch=0,
            grid=(G,),
            in_specs=[pl.BlockSpec((Nb, HW, 32), lambda g: (g, 0, 0))]
                     + [full_spec(w) for w in weights],
            out_specs=pl.BlockSpec((Nb, r2, HW), lambda g: (g, 0, 0)),
            scratch_shapes=[pltpu.VMEM((Nb, H + 2, W + 2, C), jnp.float32)],
        ),
        compiler_params=pltpu.CompilerParams(
            dimension_semantics=("parallel",),   # batch blocks are independent
            vmem_limit_bytes=32 * 1024 * 1024),
    )(cols, *weights)

    # pixel shuffle (glue): out[n, 0, h*r+i, w*r+j] = y[n, i*r + j, h*W + w]
    y = y[:N].reshape(N, r, r, H, W)
    return y.transpose(0, 3, 1, 4, 2).reshape(N, 1, H * r, W * r)


# ----------------------- deterministic parameter init -----------------------
def _orthogonal(key, rows, cols, gain=1.0):
    a = jax.random.normal(key, (max(rows, cols), min(rows, cols)), jnp.float32)
    q, r = jnp.linalg.qr(a)
    q = q * jnp.sign(jnp.diagonal(r))
    if rows < cols:
        q = q.T
    return gain * q[:rows, :cols]


def init_params(key, upscale_factor=3, C=32):
    r2 = upscale_factor ** 2
    gain = float(jnp.sqrt(2.0))             # init.calculate_gain('relu')
    keys = jax.random.split(key, 12)

    # torch weight shapes: conv1 (C,1,5,5), dw (C,1,3,3), pw (C,C,1,1), conv4 (r2,C,3,3)
    w1_t = _orthogonal(keys[0], C, 25, gain)
    wd2_t = _orthogonal(keys[1], C, 9, gain)
    wp2_t = _orthogonal(keys[2], C, C)
    wd3_t = _orthogonal(keys[3], C, 9, gain)
    wp3_t = _orthogonal(keys[4], C, C)
    w4_t = _orthogonal(keys[5], r2, C * 9)

    def bias(k, n, fan_in):                 # torch default Conv2d bias init
        b = 1.0 / float(fan_in) ** 0.5
        return jax.random.uniform(k, (1, n), jnp.float32, -b, b)

    return dict(
        w1=w1_t.T,                                        # (25, C)
        b1=bias(keys[6], C, 25),
        wd2=wd2_t.T, bd2=bias(keys[7], C, 9),             # (9, C)
        wp2=wp2_t.T, bp2=bias(keys[8], C, C),             # (C_in, C_out)
        wd3=wd3_t.T, bd3=bias(keys[9], C, 9),
        wp3=wp3_t.T, bp3=bias(keys[10], C, C),
        # (r2, C*9) -> (3,3,C,r2) -> (9, C, r2), tap index k = ky*3+kx
        w4=w4_t.reshape(r2, C, 3, 3).transpose(2, 3, 1, 0).reshape(9, C, r2),
        b4=bias(keys[11], r2, C * 9),
    )


# ----------------------- pure-JAX reference (for checking) ------------------
def _ref_forward(x_nchw, params, upscale_factor=3):
    r = upscale_factor
    x = x_nchw.astype(jnp.float32).transpose(0, 2, 3, 1)      # NHWC
    N, H, W, _ = x.shape

    def conv_same(v, w_kio, b, K, P):
        xp = jnp.pad(v, ((0, 0), (P, P), (P, P), (0, 0)))
        acc = 0.0
        for ky in range(K):
            for kx in range(K):
                acc = acc + jnp.einsum("nhwc,co->nhwo",
                                       xp[:, ky:ky + H, kx:kx + W, :],
                                       w_kio[ky * K + kx])
        return acc + b

    def dw_same(v, w_kc, b):
        xp = jnp.pad(v, ((0, 0), (1, 1), (1, 1), (0, 0)))
        acc = 0.0
        for ky in range(3):
            for kx in range(3):
                acc = acc + xp[:, ky:ky + H, kx:kx + W, :] * w_kc[ky * 3 + kx]
        return acc + b

    h = jax.nn.relu(conv_same(x, params["w1"][:, None, :], params["b1"], 5, 2))
    h = dw_same(jax.nn.relu(h), params["wd2"], params["bd2"])
    h = jnp.einsum("nhwc,cd->nhwd", h, params["wp2"]) + params["bp2"]
    h = dw_same(jax.nn.relu(h), params["wd3"], params["bd3"])
    h = jnp.einsum("nhwc,cd->nhwd", h, params["wp3"]) + params["bp3"]
    y = conv_same(h, params["w4"], params["b4"], 3, 1)
    out = y.reshape(N, H, W, r, r).transpose(0, 1, 3, 2, 4)
    return out.reshape(N, 1, H * r, W * r)


if __name__ == "__main__":
    upscale = 3
    N, H, W = 2, 16, 16

    key = jax.random.PRNGKey(0)
    k_x, k_p = jax.random.split(key)
    x = jax.random.normal(k_x, (N, 1, H, W), jnp.float32)     # NCHW, like torch
    params = init_params(k_p, upscale_factor=upscale)

    out = net_forward(x, params, upscale_factor=upscale)
    out = jax.block_until_ready(out)
    assert out.shape == (N, 1, H * upscale, W * upscale), out.shape

    ref = _ref_forward(x, params, upscale_factor=upscale)
    err = float(jnp.max(jnp.abs(out - ref)))
    if not (err < 1e-3):
        raise AssertionError(f"mismatch vs reference: max abs err = {err}")
    print("KERNEL_OK")
</pallas_src>

<mosaic_0001>
module attributes {stable_mosaic.version = 11 : i64} {
  func.func @_net_kernel(%arg0: i32, %arg1: memref<1x256x32xf32, #tpu.memory_space<vmem>>, %arg2: memref<32x32xf32, #tpu.memory_space<vmem>>, %arg3: memref<1x32xf32, #tpu.memory_space<vmem>>, %arg4: memref<9x32xf32, #tpu.memory_space<vmem>>, %arg5: memref<1x32xf32, #tpu.memory_space<vmem>>, %arg6: memref<32x32xf32, #tpu.memory_space<vmem>>, %arg7: memref<1x32xf32, #tpu.memory_space<vmem>>, %arg8: memref<9x32xf32, #tpu.memory_space<vmem>>, %arg9: memref<1x32xf32, #tpu.memory_space<vmem>>, %arg10: memref<32x32xf32, #tpu.memory_space<vmem>>, %arg11: memref<1x32xf32, #tpu.memory_space<vmem>>, %arg12: memref<9x32x9xf32, #tpu.memory_space<vmem>>, %arg13: memref<1x9xf32, #tpu.memory_space<vmem>>, %arg14: memref<1x9x256xf32, #tpu.memory_space<vmem>>, %arg15: memref<1x18x18x32xf32, #tpu.memory_space<vmem>>) attributes {dimension_semantics = [#tpu.dimension_semantics<parallel>], iteration_bounds = array<i64: 2>, scalar_prefetch = 0 : i64, scratch_operands = 1 : i64, tpu.core_type = #tpu.core_type<tc>, window_params = [{transform_indices = @transform_0, window_bounds = array<i64: 1, 256, 32>}, {pipeline_mode = #tpu.pipeline_mode<synchronous>, transform_indices = @transform_1, window_bounds = array<i64: 32, 32>}, {pipeline_mode = #tpu.pipeline_mode<synchronous>, transform_indices = @transform_2, window_bounds = array<i64: 1, 32>}, {pipeline_mode = #tpu.pipeline_mode<synchronous>, transform_indices = @transform_3, window_bounds = array<i64: 9, 32>}, {pipeline_mode = #tpu.pipeline_mode<synchronous>, transform_indices = @transform_4, window_bounds = array<i64: 1, 32>}, {pipeline_mode = #tpu.pipeline_mode<synchronous>, transform_indices = @transform_5, window_bounds = array<i64: 32, 32>}, {pipeline_mode = #tpu.pipeline_mode<synchronous>, transform_indices = @transform_6, window_bounds = array<i64: 1, 32>}, {pipeline_mode = #tpu.pipeline_mode<synchronous>, transform_indices = @transform_7, window_bounds = array<i64: 9, 32>}, {pipeline_mode = #tpu.pipeline_mode<synchronous>, transform_indices = @transform_8, window_bounds = array<i64: 1, 32>}, {pipeline_mode = #tpu.pipeline_mode<synchronous>, transform_indices = @transform_9, window_bounds = array<i64: 32, 32>}, {pipeline_mode = #tpu.pipeline_mode<synchronous>, transform_indices = @transform_10, window_bounds = array<i64: 1, 32>}, {pipeline_mode = #tpu.pipeline_mode<synchronous>, transform_indices = @transform_11, window_bounds = array<i64: 9, 32, 9>}, {pipeline_mode = #tpu.pipeline_mode<synchronous>, transform_indices = @transform_12, window_bounds = array<i64: 1, 9>}, {transform_indices = @transform_13, window_bounds = array<i64: 1, 9, 256>}]} {
    %cst = arith.constant 0.000000e+00 : f32
    %0 = vector.broadcast %cst : f32 to vector<1x18x18x32xf32>
    %c0 = arith.constant 0 : index
    %c0_0 = arith.constant 0 : index
    %c0_1 = arith.constant 0 : index
    %c0_2 = arith.constant 0 : index
    %1 = vector.load %arg15[%c0, %c0_0, %c0_1, %c0_2] : memref<1x18x18x32xf32, #tpu.memory_space<vmem>>, vector<1x18x18x32xf32>
    tpu.vector_store %arg15[%c0, %c0_0, %c0_1, %c0_2], %0 {strides = array<i32>} : memref<1x18x18x32xf32, #tpu.memory_space<vmem>>, vector<1x18x18x32xf32>,
    %c0_3 = arith.constant 0 : index
    %c0_4 = arith.constant 0 : index
    %c0_5 = arith.constant 0 : index
    %2 = vector.load %arg1[%c0_3, %c0_4, %c0_5] : memref<1x256x32xf32, #tpu.memory_space<vmem>>, vector<1x256x32xf32>
    %3 = vector.shape_cast %2 : vector<1x256x32xf32> to vector<256x32xf32>
    %c0_6 = arith.constant 0 : index
    %c0_7 = arith.constant 0 : index
    %4 = vector.load %arg2[%c0_6, %c0_7] : memref<32x32xf32, #tpu.memory_space<vmem>>, vector<32x32xf32>
    %cst_8 = arith.constant dense<0.000000e+00> : vector<256x32xf32>
    %5 = tpu.matmul %3, %4, %cst_8 {dimension_numbers = #tpu.dot_dimension_numbers<[1], [0], [0], [1], [0, 0, 1, 1], [], []>} : vector<256x32xf32>, vector<32x32xf32>, vector<256x32xf32> -> vector<256x32xf32>
    %c0_9 = arith.constant 0 : index
    %c0_10 = arith.constant 0 : index
    %6 = vector.load %arg3[%c0_9, %c0_10] : memref<1x32xf32, #tpu.memory_space<vmem>>, vector<1x32xf32>
    %7 = vector.broadcast %6 : vector<1x32xf32> to vector<256x32xf32>
    %8 = arith.addf %5, %7 : vector<256x32xf32>
    %cst_11 = arith.constant 0.000000e+00 : f32
    %9 = vector.broadcast %cst_11 : f32 to vector<256x32xf32>
    %10 = arith.maximumf %8, %9 : vector<256x32xf32>
    %11 = vector.shape_cast %10 : vector<256x32xf32> to vector<1x16x16x32xf32>
    %c0_12 = arith.constant 0 : index
    %c0_13 = arith.constant 0 : index
    %12 = vector.load %arg4[%c0_12, %c0_13] : memref<9x32xf32, #tpu.memory_space<vmem>>, vector<9x32xf32>
    %c0_14 = arith.constant 0 : index
    %c0_15 = arith.constant 0 : index
    %13 = vector.load %arg5[%c0_14, %c0_15] : memref<1x32xf32, #tpu.memory_space<vmem>>, vector<1x32xf32>
    %c0_16 = arith.constant 0 : index
    %c1 = arith.constant 1 : index
    %c1_17 = arith.constant 1 : index
    %c0_18 = arith.constant 0 : index
    %14 = vector.load %arg15[%c0_16, %c1, %c1_17, %c0_18] : memref<1x18x18x32xf32, #tpu.memory_space<vmem>>, vector<1x16x16x32xf32>
    tpu.vector_store %arg15[%c0_16, %c1, %c1_17, %c0_18], %11 {strides = array<i32>} : memref<1x18x18x32xf32, #tpu.memory_space<vmem>>, vector<1x16x16x32xf32>,
    %cst_19 = arith.constant 0.000000e+00 : f32
    %15 = vector.broadcast %cst_19 : f32 to vector<1x16x16x32xf32>
    %c0_20 = arith.constant 0 : index
    %c0_21 = arith.constant 0 : index
    %c0_22 = arith.constant 0 : index
    %c0_23 = arith.constant 0 : index
    %16 = vector.load %arg15[%c0_20, %c0_21, %c0_22, %c0_23] : memref<1x18x18x32xf32, #tpu.memory_space<vmem>>, vector<1x16x16x32xf32>
    %17 = vector.extract_strided_slice %12 {offsets = [0, 0], sizes = [1, 32], strides = [1, 1]} : vector<9x32xf32> to vector<1x32xf32>
    %18 = vector.shape_cast %17 : vector<1x32xf32> to vector<32xf32>
    %19 = vector.shape_cast %18 : vector<32xf32> to vector<1x1x1x32xf32>
    %20 = vector.broadcast %19 : vector<1x1x1x32xf32> to vector<1x16x16x32xf32>
    %21 = arith.mulf %16, %20 : vector<1x16x16x32xf32>
    %22 = arith.addf %15, %21 : vector<1x16x16x32xf32>
    %c0_24 = arith.constant 0 : index
    %c0_25 = arith.constant 0 : index
    %c1_26 = arith.constant 1 : index
    %c0_27 = arith.constant 0 : index
    %23 = vector.load %arg15[%c0_24, %c0_25, %c1_26, %c0_27] : memref<1x18x18x32xf32, #tpu.memory_space<vmem>>, vector<1x16x16x32xf32>
    %24 = vector.extract_strided_slice %12 {offsets = [1, 0], sizes = [1, 32], strides = [1, 1]} : vector<9x32xf32> to vector<1x32xf32>
    %25 = vector.shape_cast %24 : vector<1x32xf32> to vector<32xf32>
    %26 = vector.shape_cast %25 : vector<32xf32> to vector<1x1x1x32xf32>
    %27 = vector.broadcast %26 : vector<1x1x1x32xf32> to vector<1x16x16x32xf32>
    %28 = arith.mulf %23, %27 : vector<1x16x16x32xf32>
    %29 = arith.addf %22, %28 : vector<1x16x16x32xf32>
    %c0_28 = arith.constant 0 : index
    %c0_29 = arith.constant 0 : index
    %c2 = arith.constant 2 : index
    %c0_30 = arith.constant 0 : index
    %30 = vector.load %arg15[%c0_28, %c0_29, %c2, %c0_30] : memref<1x18x18x32xf32, #tpu.memory_space<vmem>>, vector<1x16x16x32xf32>
    %31 = vector.extract_strided_slice %12 {offsets = [2, 0], sizes = [1, 32], strides = [1, 1]} : vector<9x32xf32> to vector<1x32xf32>
    %32 = vector.shape_cast %31 : vector<1x32xf32> to vector<32xf32>
    %33 = vector.shape_cast %32 : vector<32xf32> to vector<1x1x1x32xf32>
    %34 = vector.broadcast %33 : vector<1x1x1x32xf32> to vector<1x16x16x32xf32>
    %35 = arith.mulf %30, %34 : vector<1x16x16x32xf32>
    %36 = arith.addf %29, %35 : vector<1x16x16x32xf32>
    %c0_31 = arith.constant 0 : index
    %c1_32 = arith.constant 1 : index
    %c0_33 = arith.constant 0 : index
    %c0_34 = arith.constant 0 : index
    %37 = vector.load %arg15[%c0_31, %c1_32, %c0_33, %c0_34] : memref<1x18x18x32xf32, #tpu.memory_space<vmem>>, vector<1x16x16x32xf32>
    %38 = vector.extract_strided_slice %12 {offsets = [3, 0], sizes = [1, 32], strides = [1, 1]} : vector<9x32xf32> to vector<1x32xf32>
    %39 = vector.shape_cast %38 : vector<1x32xf32> to vector<32xf32>
    %40 = vector.shape_cast %39 : vector<32xf32> to vector<1x1x1x32xf32>
    %41 = vector.broadcast %40 : vector<1x1x1x32xf32> to vector<1x16x16x32xf32>
    %42 = arith.mulf %37, %41 : vector<1x16x16x32xf32>
    %43 = arith.addf %36, %42 : vector<1x16x16x32xf32>
    %c0_35 = arith.constant 0 : index
    %c1_36 = arith.constant 1 : index
    %c1_37 = arith.constant 1 : index
    %c0_38 = arith.constant 0 : index
    %44 = vector.load %arg15[%c0_35, %c1_36, %c1_37, %c0_38] : memref<1x18x18x32xf32, #tpu.memory_space<vmem>>, vector<1x16x16x32xf32>
    %45 = vector.extract_strided_slice %12 {offsets = [4, 0], sizes = [1, 32], strides = [1, 1]} : vector<9x32xf32> to vector<1x32xf32>
    %46 = vector.shape_cast %45 : vector<1x32xf32> to vector<32xf32>
    %47 = vector.shape_cast %46 : vector<32xf32> to vector<1x1x1x32xf32>
    %48 = vector.broadcast %47 : vector<1x1x1x32xf32> to vector<1x16x16x32xf32>
    %49 = arith.mulf %44, %48 : vector<1x16x16x32xf32>
    %50 = arith.addf %43, %49 : vector<1x16x16x32xf32>
    %c0_39 = arith.constant 0 : index
    %c1_40 = arith.constant 1 : index
    %c2_41 = arith.constant 2 : index
    %c0_42 = arith.constant 0 : index
    %51 = vector.load %arg15[%c0_39, %c1_40, %c2_41, %c0_42] : memref<1x18x18x32xf32, #tpu.memory_space<vmem>>, vector<1x16x16x32xf32>
    %52 = vector.extract_strided_slice %12 {offsets = [5, 0], sizes = [1, 32], strides = [1, 1]} : vector<9x32xf32> to vector<1x32xf32>
    %53 = vector.shape_cast %52 : vector<1x32xf32> to vector<32xf32>
    %54 = vector.shape_cast %53 : vector<32xf32> to vector<1x1x1x32xf32>
    %55 = vector.broadcast %54 : vector<1x1x1x32xf32> to vector<1x16x16x32xf32>
    %56 = arith.mulf %51, %55 : vector<1x16x16x32xf32>
    %57 = arith.addf %50, %56 : vector<1x16x16x32xf32>
    %c0_43 = arith.constant 0 : index
    %c2_44 = arith.constant 2 : index
    %c0_45 = arith.constant 0 : index
    %c0_46 = arith.constant 0 : index
    %58 = vector.load %arg15[%c0_43, %c2_44, %c0_45, %c0_46] : memref<1x18x18x32xf32, #tpu.memory_space<vmem>>, vector<1x16x16x32xf32>
    %59 = vector.extract_strided_slice %12 {offsets = [6, 0], sizes = [1, 32], strides = [1, 1]} : vector<9x32xf32> to vector<1x32xf32>
    %60 = vector.shape_cast %59 : vector<1x32xf32> to vector<32xf32>
    %61 = vector.shape_cast %60 : vector<32xf32> to vector<1x1x1x32xf32>
    %62 = vector.broadcast %61 : vector<1x1x1x32xf32> to vector<1x16x16x32xf32>
    %63 = arith.mulf %58, %62 : vector<1x16x16x32xf32>
    %64 = arith.addf %57, %63 : vector<1x16x16x32xf32>
    %c0_47 = arith.constant 0 : index
    %c2_48 = arith.constant 2 : index
    %c1_49 = arith.constant 1 : index
    %c0_50 = arith.constant 0 : index
    %65 = vector.load %arg15[%c0_47, %c2_48, %c1_49, %c0_50] : memref<1x18x18x32xf32, #tpu.memory_space<vmem>>, vector<1x16x16x32xf32>
    %66 = vector.extract_strided_slice %12 {offsets = [7, 0], sizes = [1, 32], strides = [1, 1]} : vector<9x32xf32> to vector<1x32xf32>
    %67 = vector.shape_cast %66 : vector<1x32xf32> to vector<32xf32>
    %68 = vector.shape_cast %67 : vector<32xf32> to vector<1x1x1x32xf32>
    %69 = vector.broadcast %68 : vector<1x1x1x32xf32> to vector<1x16x16x32xf32>
    %70 = arith.mulf %65, %69 : vector<1x16x16x32xf32>
    %71 = arith.addf %64, %70 : vector<1x16x16x32xf32>
    %c0_51 = arith.constant 0 : index
    %c2_52 = arith.constant 2 : index
    %c2_53 = arith.constant 2 : index
    %c0_54 = arith.constant 0 : index
    %72 = vector.load %arg15[%c0_51, %c2_52, %c2_53, %c0_54] : memref<1x18x18x32xf32, #tpu.memory_space<vmem>>, vector<1x16x16x32xf32>
    %73 = vector.extract_strided_slice %12 {offsets = [8, 0], sizes = [1, 32], strides = [1, 1]} : vector<9x32xf32> to vector<1x32xf32>
    %74 = vector.shape_cast %73 : vector<1x32xf32> to vector<32xf32>
    %75 = vector.shape_cast %74 : vector<32xf32> to vector<1x1x1x32xf32>
    %76 = vector.broadcast %75 : vector<1x1x1x32xf32> to vector<1x16x16x32xf32>
    %77 = arith.mulf %72, %76 : vector<1x16x16x32xf32>
    %78 = arith.addf %71, %77 : vector<1x16x16x32xf32>
    %79 = vector.shape_cast %13 : vector<1x32xf32> to vector<1x1x1x32xf32>
    %80 = vector.broadcast %79 : vector<1x1x1x32xf32> to vector<1x16x16x32xf32>
    %81 = arith.addf %78, %80 : vector<1x16x16x32xf32>
    %c0_55 = arith.constant 0 : index
    %c0_56 = arith.constant 0 : index
    %82 = vector.load %arg6[%c0_55, %c0_56] : memref<32x32xf32, #tpu.memory_space<vmem>>, vector<32x32xf32>
    %c0_57 = arith.constant 0 : index
    %c0_58 = arith.constant 0 : index
    %83 = vector.load %arg7[%c0_57, %c0_58] : memref<1x32xf32, #tpu.memory_space<vmem>>, vector<1x32xf32>
    %84 = vector.shape_cast %81 : vector<1x16x16x32xf32> to vector<256x32xf32>
    %cst_59 = arith.constant dense<0.000000e+00> : vector<256x32xf32>
    %85 = tpu.matmul %84, %82, %cst_59 {dimension_numbers = #tpu.dot_dimension_numbers<[1], [0], [0], [1], [0, 0, 1, 1], [], []>} : vector<256x32xf32>, vector<32x32xf32>, vector<256x32xf32> -> vector<256x32xf32>
    %86 = vector.broadcast %83 : vector<1x32xf32> to vector<256x32xf32>
    %87 = arith.addf %85, %86 : vector<256x32xf32>
    %88 = vector.shape_cast %87 : vector<256x32xf32> to vector<1x16x16x32xf32>
    %cst_60 = arith.constant 0.000000e+00 : f32
    %89 = vector.broadcast %cst_60 : f32 to vector<1x16x16x32xf32>
    %90 = arith.maximumf %88, %89 : vector<1x16x16x32xf32>
    %c0_61 = arith.constant 0 : index
    %c0_62 = arith.constant 0 : index
    %91 = vector.load %arg8[%c0_61, %c0_62] : memref<9x32xf32, #tpu.memory_space<vmem>>, vector<9x32xf32>
    %c0_63 = arith.constant 0 : index
    %c0_64 = arith.constant 0 : index
    %92 = vector.load %arg9[%c0_63, %c0_64] : memref<1x32xf32, #tpu.memory_space<vmem>>, vector<1x32xf32>
    %c0_65 = arith.constant 0 : index
    %c1_66 = arith.constant 1 : index
    %c1_67 = arith.constant 1 : index
    %c0_68 = arith.constant 0 : index
    %93 = vector.load %arg15[%c0_65, %c1_66, %c1_67, %c0_68] : memref<1x18x18x32xf32, #tpu.memory_space<vmem>>, vector<1x16x16x32xf32>
    tpu.vector_store %arg15[%c0_65, %c1_66, %c1_67, %c0_68], %90 {strides = array<i32>} : memref<1x18x18x32xf32, #tpu.memory_space<vmem>>, vector<1x16x16x32xf32>,
    %cst_69 = arith.constant 0.000000e+00 : f32
    %94 = vector.broadcast %cst_69 : f32 to vector<1x16x16x32xf32>
    %c0_70 = arith.constant 0 : index
    %c0_71 = arith.constant 0 : index
    %c0_72 = arith.constant 0 : index
    %c0_73 = arith.constant 0 : index
    %95 = vector.load %arg15[%c0_70, %c0_71, %c0_72, %c0_73] : memref<1x18x18x32xf32, #tpu.memory_space<vmem>>, vector<1x16x16x32xf32>
    %96 = vector.extract_strided_slice %91 {offsets = [0, 0], sizes = [1, 32], strides = [1, 1]} : vector<9x32xf32> to vector<1x32xf32>
    %97 = vector.shape_cast %96 : vector<1x32xf32> to vector<32xf32>
    %98 = vector.shape_cast %97 : vector<32xf32> to vector<1x1x1x32xf32>
    %99 = vector.broadcast %98 : vector<1x1x1x32xf32> to vector<1x16x16x32xf32>
    %100 = arith.mulf %95, %99 : vector<1x16x16x32xf32>
    %101 = arith.addf %94, %100 : vector<1x16x16x32xf32>
    %c0_74 = arith.constant 0 : index
    %c0_75 = arith.constant 0 : index
    %c1_76 = arith.constant 1 : index
    %c0_77 = arith.constant 0 : index
    %102 = vector.load %arg15[%c0_74, %c0_75, %c1_76, %c0_77] : memref<1x18x18x32xf32, #tpu.memory_space<vmem>>, vector<1x16x16x32xf32>
    %103 = vector.extract_strided_slice %91 {offsets = [1, 0], sizes = [1, 32], strides = [1, 1]} : vector<9x32xf32> to vector<1x32xf32>
    %104 = vector.shape_cast %103 : vector<1x32xf32> to vector<32xf32>
    %105 = vector.shape_cast %104 : vector<32xf32> to vector<1x1x1x32xf32>
    %106 = vector.broadcast %105 : vector<1x1x1x32xf32> to vector<1x16x16x32xf32>
    %107 = arith.mulf %102, %106 : vector<1x16x16x32xf32>
    %108 = arith.addf %101, %107 : vector<1x16x16x32xf32>
    %c0_78 = arith.constant 0 : index
    %c0_79 = arith.constant 0 : index
    %c2_80 = arith.constant 2 : index
    %c0_81 = arith.constant 0 : index
    %109 = vector.load %arg15[%c0_78, %c0_79, %c2_80, %c0_81] : memref<1x18x18x32xf32, #tpu.memory_space<vmem>>, vector<1x16x16x32xf32>
    %110 = vector.extract_strided_slice %91 {offsets = [2, 0], sizes = [1, 32], strides = [1, 1]} : vector<9x32xf32> to vector<1x32xf32>
    %111 = vector.shape_cast %110 : vector<1x32xf32> to vector<32xf32>
    %112 = vector.shape_cast %111 : vector<32xf32> to vector<1x1x1x32xf32>
    %113 = vector.broadcast %112 : vector<1x1x1x32xf32> to vector<1x16x16x32xf32>
    %114 = arith.mulf %109, %113 : vector<1x16x16x32xf32>
    %115 = arith.addf %108, %114 : vector<1x16x16x32xf32>
    %c0_82 = arith.constant 0 : index
    %c1_83 = arith.constant 1 : index
    %c0_84 = arith.constant 0 : index
    %c0_85 = arith.constant 0 : index
    %116 = vector.load %arg15[%c0_82, %c1_83, %c0_84, %c0_85] : memref<1x18x18x32xf32, #tpu.memory_space<vmem>>, vector<1x16x16x32xf32>
    %117 = vector.extract_strided_slice %91 {offsets = [3, 0], sizes = [1, 32], strides = [1, 1]} : vector<9x32xf32> to vector<1x32xf32>
    %118 = vector.shape_cast %117 : vector<1x32xf32> to vector<32xf32>
    %119 = vector.shape_cast %118 : vector<32xf32> to vector<1x1x1x32xf32>
    %120 = vector.broadcast %119 : vector<1x1x1x32xf32> to vector<1x16x16x32xf32>
    %121 = arith.mulf %116, %120 : vector<1x16x16x32xf32>
    %122 = arith.addf %115, %121 : vector<1x16x16x32xf32>
    %c0_86 = arith.constant 0 : index
    %c1_87 = arith.constant 1 : index
    %c1_88 = arith.constant 1 : index
    %c0_89 = arith.constant 0 : index
    %123 = vector.load %arg15[%c0_86, %c1_87, %c1_88, %c0_89] : memref<1x18x18x32xf32, #tpu.memory_space<vmem>>, vector<1x16x16x32xf32>
    %124 = vector.extract_strided_slice %91 {offsets = [4, 0], sizes = [1, 32], strides = [1, 1]} : vector<9x32xf32> to vector<1x32xf32>
    %125 = vector.shape_cast %124 : vector<1x32xf32> to vector<32xf32>
    %126 = vector.shape_cast %125 : vector<32xf32> to vector<1x1x1x32xf32>
    %127 = vector.broadcast %126 : vector<1x1x1x32xf32> to vector<1x16x16x32xf32>
    %128 = arith.mulf %123, %127 : vector<1x16x16x32xf32>
    %129 = arith.addf %122, %128 : vector<1x16x16x32xf32>
    %c0_90 = arith.constant 0 : index
    %c1_91 = arith.constant 1 : index
    %c2_92 = arith.constant 2 : index
    %c0_93 = arith.constant 0 : index
    %130 = vector.load %arg15[%c0_90, %c1_91, %c2_92, %c0_93] : memref<1x18x18x32xf32, #tpu.memory_space<vmem>>, vector<1x16x16x32xf32>
    %131 = vector.extract_strided_slice %91 {offsets = [5, 0], sizes = [1, 32], strides = [1, 1]} : vector<9x32xf32> to vector<1x32xf32>
    %132 = vector.shape_cast %131 : vector<1x32xf32> to vector<32xf32>
    %133 = vector.shape_cast %132 : vector<32xf32> to vector<1x1x1x32xf32>
    %134 = vector.broadcast %133 : vector<1x1x1x32xf32> to vector<1x16x16x32xf32>
    %135 = arith.mulf %130, %134 : vector<1x16x16x32xf32>
    %136 = arith.addf %129, %135 : vector<1x16x16x32xf32>
    %c0_94 = arith.constant 0 : index
    %c2_95 = arith.constant 2 : index
    %c0_96 = arith.constant 0 : index
    %c0_97 = arith.constant 0 : index
    %137 = vector.load %arg15[%c0_94, %c2_95, %c0_96, %c0_97] : memref<1x18x18x32xf32, #tpu.memory_space<vmem>>, vector<1x16x16x32xf32>
    %138 = vector.extract_strided_slice %91 {offsets = [6, 0], sizes = [1, 32], strides = [1, 1]} : vector<9x32xf32> to vector<1x32xf32>
    %139 = vector.shape_cast %138 : vector<1x32xf32> to vector<32xf32>
    %140 = vector.shape_cast %139 : vector<32xf32> to vector<1x1x1x32xf32>
    %141 = vector.broadcast %140 : vector<1x1x1x32xf32> to vector<1x16x16x32xf32>
    %142 = arith.mulf %137, %141 : vector<1x16x16x32xf32>
    %143 = arith.addf %136, %142 : vector<1x16x16x32xf32>
    %c0_98 = arith.constant 0 : index
    %c2_99 = arith.constant 2 : index
    %c1_100 = arith.constant 1 : index
    %c0_101 = arith.constant 0 : index
    %144 = vector.load %arg15[%c0_98, %c2_99, %c1_100, %c0_101] : memref<1x18x18x32xf32, #tpu.memory_space<vmem>>, vector<1x16x16x32xf32>
    %145 = vector.extract_strided_slice %91 {offsets = [7, 0], sizes = [1, 32], strides = [1, 1]} : vector<9x32xf32> to vector<1x32xf32>
    %146 = vector.shape_cast %145 : vector<1x32xf32> to vector<32xf32>
    %147 = vector.shape_cast %146 : vector<32xf32> to vector<1x1x1x32xf32>
    %148 = vector.broadcast %147 : vector<1x1x1x32xf32> to vector<1x16x16x32xf32>
    %149 = arith.mulf %144, %148 : vector<1x16x16x32xf32>
    %150 = arith.addf %143, %149 : vector<1x16x16x32xf32>
    %c0_102 = arith.constant 0 : index
    %c2_103 = arith.constant 2 : index
    %c2_104 = arith.constant 2 : index
    %c0_105 = arith.constant 0 : index
    %151 = vector.load %arg15[%c0_102, %c2_103, %c2_104, %c0_105] : memref<1x18x18x32xf32, #tpu.memory_space<vmem>>, vector<1x16x16x32xf32>
    %152 = vector.extract_strided_slice %91 {offsets = [8, 0], sizes = [1, 32], strides = [1, 1]} : vector<9x32xf32> to vector<1x32xf32>
    %153 = vector.shape_cast %152 : vector<1x32xf32> to vector<32xf32>
    %154 = vector.shape_cast %153 : vector<32xf32> to vector<1x1x1x32xf32>
    %155 = vector.broadcast %154 : vector<1x1x1x32xf32> to vector<1x16x16x32xf32>
    %156 = arith.mulf %151, %155 : vector<1x16x16x32xf32>
    %157 = arith.addf %150, %156 : vector<1x16x16x32xf32>
    %158 = vector.shape_cast %92 : vector<1x32xf32> to vector<1x1x1x32xf32>
    %159 = vector.broadcast %158 : vector<1x1x1x32xf32> to vector<1x16x16x32xf32>
    %160 = arith.addf %157, %159 : vector<1x16x16x32xf32>
    %c0_106 = arith.constant 0 : index
    %c0_107 = arith.constant 0 : index
    %161 = vector.load %arg10[%c0_106, %c0_107] : memref<32x32xf32, #tpu.memory_space<vmem>>, vector<32x32xf32>
    %c0_108 = arith.constant 0 : index
    %c0_109 = arith.constant 0 : index
    %162 = vector.load %arg11[%c0_108, %c0_109] : memref<1x32xf32, #tpu.memory_space<vmem>>, vector<1x32xf32>
    %163 = vector.shape_cast %160 : vector<1x16x16x32xf32> to vector<256x32xf32>
    %cst_110 = arith.constant dense<0.000000e+00> : vector<256x32xf32>
    %164 = tpu.matmul %163, %161, %cst_110 {dimension_numbers = #tpu.dot_dimension_numbers<[1], [0], [0], [1], [0, 0, 1, 1], [], []>} : vector<256x32xf32>, vector<32x32xf32>, vector<256x32xf32> -> vector<256x32xf32>
    %165 = vector.broadcast %162 : vector<1x32xf32> to vector<256x32xf32>
    %166 = arith.addf %164, %165 : vector<256x32xf32>
    %167 = vector.shape_cast %166 : vector<256x32xf32> to vector<1x16x16x32xf32>
    %c0_111 = arith.constant 0 : index
    %c1_112 = arith.constant 1 : index
    %c1_113 = arith.constant 1 : index
    %c0_114 = arith.constant 0 : index
    %168 = vector.load %arg15[%c0_111, %c1_112, %c1_113, %c0_114] : memref<1x18x18x32xf32, #tpu.memory_space<vmem>>, vector<1x16x16x32xf32>
    tpu.vector_store %arg15[%c0_111, %c1_112, %c1_113, %c0_114], %167 {strides = array<i32>} : memref<1x18x18x32xf32, #tpu.memory_space<vmem>>, vector<1x16x16x32xf32>,
    %c0_115 = arith.constant 0 : index
    %c0_116 = arith.constant 0 : index
    %c0_117 = arith.constant 0 : index
    %169 = vector.load %arg12[%c0_115, %c0_116, %c0_117] : memref<9x32x9xf32, #tpu.memory_space<vmem>>, vector<9x32x9xf32>
    %cst_118 = arith.constant 0.000000e+00 : f32
    %170 = vector.broadcast %cst_118 : f32 to vector<256x9xf32>
    %c0_119 = arith.constant 0 : index
    %c0_120 = arith.constant 0 : index
    %c0_121 = arith.constant 0 : index
    %c0_122 = arith.constant 0 : index
    %171 = vector.load %arg15[%c0_119, %c0_120, %c0_121, %c0_122] : memref<1x18x18x32xf32, #tpu.memory_space<vmem>>, vector<1x16x16x32xf32>
    %172 = vector.shape_cast %171 : vector<1x16x16x32xf32> to vector<256x32xf32>
    %173 = vector.extract_strided_slice %169 {offsets = [0, 0, 0], sizes = [1, 32, 9], strides = [1, 1, 1]} : vector<9x32x9xf32> to vector<1x32x9xf32>
    %174 = vector.shape_cast %173 : vector<1x32x9xf32> to vector<32x9xf32>
    %cst_123 = arith.constant dense<0.000000e+00> : vector<256x9xf32>
    %175 = tpu.matmul %172, %174, %cst_123 {dimension_numbers = #tpu.dot_dimension_numbers<[1], [0], [0], [1], [0, 0, 1, 1], [], []>} : vector<256x32xf32>, vector<32x9xf32>, vector<256x9xf32> -> vector<256x9xf32>
    %176 = arith.addf %170, %175 : vector<256x9xf32>
    %c0_124 = arith.constant 0 : index
    %c0_125 = arith.constant 0 : index
    %c1_126 = arith.constant 1 : index
    %c0_127 = arith.constant 0 : index
    %177 = vector.load %arg15[%c0_124, %c0_125, %c1_126, %c0_127] : memref<1x18x18x32xf32, #tpu.memory_space<vmem>>, vector<1x16x16x32xf32>
    %178 = vector.shape_cast %177 : vector<1x16x16x32xf32> to vector<256x32xf32>
    %179 = vector.extract_strided_slice %169 {offsets = [1, 0, 0], sizes = [1, 32, 9], strides = [1, 1, 1]} : vector<9x32x9xf32> to vector<1x32x9xf32>
    %180 = vector.shape_cast %179 : vector<1x32x9xf32> to vector<32x9xf32>
    %cst_128 = arith.constant dense<0.000000e+00> : vector<256x9xf32>
    %181 = tpu.matmul %178, %180, %cst_128 {dimension_numbers = #tpu.dot_dimension_numbers<[1], [0], [0], [1], [0, 0, 1, 1], [], []>} : vector<256x32xf32>, vector<32x9xf32>, vector<256x9xf32> -> vector<256x9xf32>
    %182 = arith.addf %176, %181 : vector<256x9xf32>
    %c0_129 = arith.constant 0 : index
    %c0_130 = arith.constant 0 : index
    %c2_131 = arith.constant 2 : index
    %c0_132 = arith.constant 0 : index
    %183 = vector.load %arg15[%c0_129, %c0_130, %c2_131, %c0_132] : memref<1x18x18x32xf32, #tpu.memory_space<vmem>>, vector<1x16x16x32xf32>
    %184 = vector.shape_cast %183 : vector<1x16x16x32xf32> to vector<256x32xf32>
    %185 = vector.extract_strided_slice %169 {offsets = [2, 0, 0], sizes = [1, 32, 9], strides = [1, 1, 1]} : vector<9x32x9xf32> to vector<1x32x9xf32>
    %186 = vector.shape_cast %185 : vector<1x32x9xf32> to vector<32x9xf32>
    %cst_133 = arith.constant dense<0.000000e+00> : vector<256x9xf32>
    %187 = tpu.matmul %184, %186, %cst_133 {dimension_numbers = #tpu.dot_dimension_numbers<[1], [0], [0], [1], [0, 0, 1, 1], [], []>} : vector<256x32xf32>, vector<32x9xf32>, vector<256x9xf32> -> vector<256x9xf32>
    %188 = arith.addf %182, %187 : vector<256x9xf32>
    %c0_134 = arith.constant 0 : index
    %c1_135 = arith.constant 1 : index
    %c0_136 = arith.constant 0 : index
    %c0_137 = arith.constant 0 : index
    %189 = vector.load %arg15[%c0_134, %c1_135, %c0_136, %c0_137] : memref<1x18x18x32xf32, #tpu.memory_space<vmem>>, vector<1x16x16x32xf32>
    %190 = vector.shape_cast %189 : vector<1x16x16x32xf32> to vector<256x32xf32>
    %191 = vector.extract_strided_slice %169 {offsets = [3, 0, 0], sizes = [1, 32, 9], strides = [1, 1, 1]} : vector<9x32x9xf32> to vector<1x32x9xf32>
    %192 = vector.shape_cast %191 : vector<1x32x9xf32> to vector<32x9xf32>
    %cst_138 = arith.constant dense<0.000000e+00> : vector<256x9xf32>
    %193 = tpu.matmul %190, %192, %cst_138 {dimension_numbers = #tpu.dot_dimension_numbers<[1], [0], [0], [1], [0, 0, 1, 1], [], []>} : vector<256x32xf32>, vector<32x9xf32>, vector<256x9xf32> -> vector<256x9xf32>
    %194 = arith.addf %188, %193 : vector<256x9xf32>
    %c0_139 = arith.constant 0 : index
    %c1_140 = arith.constant 1 : index
    %c1_141 = arith.constant 1 : index
    %c0_142 = arith.constant 0 : index
    %195 = vector.load %arg15[%c0_139, %c1_140, %c1_141, %c0_142] : memref<1x18x18x32xf32, #tpu.memory_space<vmem>>, vector<1x16x16x32xf32>
    %196 = vector.shape_cast %195 : vector<1x16x16x32xf32> to vector<256x32xf32>
    %197 = vector.extract_strided_slice %169 {offsets = [4, 0, 0], sizes = [1, 32, 9], strides = [1, 1, 1]} : vector<9x32x9xf32> to vector<1x32x9xf32>
    %198 = vector.shape_cast %197 : vector<1x32x9xf32> to vector<32x9xf32>
    %cst_143 = arith.constant dense<0.000000e+00> : vector<256x9xf32>
    %199 = tpu.matmul %196, %198, %cst_143 {dimension_numbers = #tpu.dot_dimension_numbers<[1], [0], [0], [1], [0, 0, 1, 1], [], []>} : vector<256x32xf32>, vector<32x9xf32>, vector<256x9xf32> -> vector<256x9xf32>
    %200 = arith.addf %194, %199 : vector<256x9xf32>
    %c0_144 = arith.constant 0 : index
    %c1_145 = arith.constant 1 : index
    %c2_146 = arith.constant 2 : index
    %c0_147 = arith.constant 0 : index
    %201 = vector.load %arg15[%c0_144, %c1_145, %c2_146, %c0_147] : memref<1x18x18x32xf32, #tpu.memory_space<vmem>>, vector<1x16x16x32xf32>
    %202 = vector.shape_cast %201 : vector<1x16x16x32xf32> to vector<256x32xf32>
    %203 = vector.extract_strided_slice %169 {offsets = [5, 0, 0], sizes = [1, 32, 9], strides = [1, 1, 1]} : vector<9x32x9xf32> to vector<1x32x9xf32>
    %204 = vector.shape_cast %203 : vector<1x32x9xf32> to vector<32x9xf32>
    %cst_148 = arith.constant dense<0.000000e+00> : vector<256x9xf32>
    %205 = tpu.matmul %202, %204, %cst_148 {dimension_numbers = #tpu.dot_dimension_numbers<[1], [0], [0], [1], [0, 0, 1, 1], [], []>} : vector<256x32xf32>, vector<32x9xf32>, vector<256x9xf32> -> vector<256x9xf32>
    %206 = arith.addf %200, %205 : vector<256x9xf32>
    %c0_149 = arith.constant 0 : index
    %c2_150 = arith.constant 2 : index
    %c0_151 = arith.constant 0 : index
    %c0_152 = arith.constant 0 : index
    %207 = vector.load %arg15[%c0_149, %c2_150, %c0_151, %c0_152] : memref<1x18x18x32xf32, #tpu.memory_space<vmem>>, vector<1x16x16x32xf32>
    %208 = vector.shape_cast %207 : vector<1x16x16x32xf32> to vector<256x32xf32>
    %209 = vector.extract_strided_slice %169 {offsets = [6, 0, 0], sizes = [1, 32, 9], strides = [1, 1, 1]} : vector<9x32x9xf32> to vector<1x32x9xf32>
    %210 = vector.shape_cast %209 : vector<1x32x9xf32> to vector<32x9xf32>
    %cst_153 = arith.constant dense<0.000000e+00> : vector<256x9xf32>
    %211 = tpu.matmul %208, %210, %cst_153 {dimension_numbers = #tpu.dot_dimension_numbers<[1], [0], [0], [1], [0, 0, 1, 1], [], []>} : vector<256x32xf32>, vector<32x9xf32>, vector<256x9xf32> -> vector<256x9xf32>
    %212 = arith.addf %206, %211 : vector<256x9xf32>
    %c0_154 = arith.constant 0 : index
    %c2_155 = arith.constant 2 : index
    %c1_156 = arith.constant 1 : index
    %c0_157 = arith.constant 0 : index
    %213 = vector.load %arg15[%c0_154, %c2_155, %c1_156, %c0_157] : memref<1x18x18x32xf32, #tpu.memory_space<vmem>>, vector<1x16x16x32xf32>
    %214 = vector.shape_cast %213 : vector<1x16x16x32xf32> to vector<256x32xf32>
    %215 = vector.extract_strided_slice %169 {offsets = [7, 0, 0], sizes = [1, 32, 9], strides = [1, 1, 1]} : vector<9x32x9xf32> to vector<1x32x9xf32>
    %216 = vector.shape_cast %215 : vector<1x32x9xf32> to vector<32x9xf32>
    %cst_158 = arith.constant dense<0.000000e+00> : vector<256x9xf32>
    %217 = tpu.matmul %214, %216, %cst_158 {dimension_numbers = #tpu.dot_dimension_numbers<[1], [0], [0], [1], [0, 0, 1, 1], [], []>} : vector<256x32xf32>, vector<32x9xf32>, vector<256x9xf32> -> vector<256x9xf32>
    %218 = arith.addf %212, %217 : vector<256x9xf32>
    %c0_159 = arith.constant 0 : index
    %c2_160 = arith.constant 2 : index
    %c2_161 = arith.constant 2 : index
    %c0_162 = arith.constant 0 : index
    %219 = vector.load %arg15[%c0_159, %c2_160, %c2_161, %c0_162] : memref<1x18x18x32xf32, #tpu.memory_space<vmem>>, vector<1x16x16x32xf32>
    %220 = vector.shape_cast %219 : vector<1x16x16x32xf32> to vector<256x32xf32>
    %221 = vector.extract_strided_slice %169 {offsets = [8, 0, 0], sizes = [1, 32, 9], strides = [1, 1, 1]} : vector<9x32x9xf32> to vector<1x32x9xf32>
    %222 = vector.shape_cast %221 : vector<1x32x9xf32> to vector<32x9xf32>
    %cst_163 = arith.constant dense<0.000000e+00> : vector<256x9xf32>
    %223 = tpu.matmul %220, %222, %cst_163 {dimension_numbers = #tpu.dot_dimension_numbers<[1], [0], [0], [1], [0, 0, 1, 1], [], []>} : vector<256x32xf32>, vector<32x9xf32>, vector<256x9xf32> -> vector<256x9xf32>
    %224 = arith.addf %218, %223 : vector<256x9xf32>
    %c0_164 = arith.constant 0 : index
    %c0_165 = arith.constant 0 : index
    %225 = vector.load %arg13[%c0_164, %c0_165] : memref<1x9xf32, #tpu.memory_space<vmem>>, vector<1x9xf32>
    %226 = vector.broadcast %225 : vector<1x9xf32> to vector<256x9xf32>
    %227 = arith.addf %224, %226 : vector<256x9xf32>
    %228 = vector.shape_cast %227 : vector<256x9xf32> to vector<1x256x9xf32>
    %229 = vector.shape_cast %228 : vector<1x256x9xf32> to vector<256x9xf32>
    %230 = tpu.transpose %229, [1, 0] : vector<256x9xf32> -> vector<9x256xf32>
    %c0_166 = arith.constant 0 : index
    %c0_167 = arith.constant 0 : index
    %c0_168 = arith.constant 0 : index
    %231 = vector.load %arg14[%c0_166, %c0_167, %c0_168] : memref<1x9x256xf32, #tpu.memory_space<vmem>>, vector<1x9x256xf32>
    %232 = vector.shape_cast %231 : vector<1x9x256xf32> to vector<9x256xf32>
    %233 = vector.shape_cast %230 : vector<9x256xf32> to vector<1x9x256xf32>
    tpu.vector_store %arg14[%c0_166, %c0_167, %c0_168], %233 {strides = array<i32>} : memref<1x9x256xf32, #tpu.memory_space<vmem>>, vector<1x9x256xf32>,
    return
  }
  func.func @transform_0(%arg0: i32) -> (i32, i32, i32) {
    %c0_i32 = arith.constant 0 : i32
    %c0_i32_0 = arith.constant 0 : i32
    %c0_i32_1 = arith.constant 0 : i32
    return %arg0, %c0_i32, %c0_i32_0 : i32, i32, i32
  }
  func.func @transform_1(%arg0: i32) -> (i32, i32) {
    %c0_i32 = arith.constant 0 : i32
    %c0_i32_0 = arith.constant 0 : i32
    %c0_i32_1 = arith.constant 0 : i32
    return %c0_i32, %c0_i32_0 : i32, i32
  }
  func.func @transform_2(%arg0: i32) -> (i32, i32) {
    %c0_i32 = arith.constant 0 : i32
    %c0_i32_0 = arith.constant 0 : i32
    %c0_i32_1 = arith.constant 0 : i32
    return %c0_i32, %c0_i32_0 : i32, i32
  }
  func.func @transform_3(%arg0: i32) -> (i32, i32) {
    %c0_i32 = arith.constant 0 : i32
    %c0_i32_0 = arith.constant 0 : i32
    %c0_i32_1 = arith.constant 0 : i32
    return %c0_i32, %c0_i32_0 : i32, i32
  }
  func.func @transform_4(%arg0: i32) -> (i32, i32) {
    %c0_i32 = arith.constant 0 : i32
    %c0_i32_0 = arith.constant 0 : i32
    %c0_i32_1 = arith.constant 0 : i32
    return %c0_i32, %c0_i32_0 : i32, i32
  }
  func.func @transform_5(%arg0: i32) -> (i32, i32) {
    %c0_i32 = arith.constant 0 : i32
    %c0_i32_0 = arith.constant 0 : i32
    %c0_i32_1 = arith.constant 0 : i32
    return %c0_i32, %c0_i32_0 : i32, i32
  }
  func.func @transform_6(%arg0: i32) -> (i32, i32) {
    %c0_i32 = arith.constant 0 : i32
    %c0_i32_0 = arith.constant 0 : i32
    %c0_i32_1 = arith.constant 0 : i32
    return %c0_i32, %c0_i32_0 : i32, i32
  }
  func.func @transform_7(%arg0: i32) -> (i32, i32) {
    %c0_i32 = arith.constant 0 : i32
    %c0_i32_0 = arith.constant 0 : i32
    %c0_i32_1 = arith.constant 0 : i32
    return %c0_i32, %c0_i32_0 : i32, i32
  }
  func.func @transform_8(%arg0: i32) -> (i32, i32) {
    %c0_i32 = arith.constant 0 : i32
    %c0_i32_0 = arith.constant 0 : i32
    %c0_i32_1 = arith.constant 0 : i32
    return %c0_i32, %c0_i32_0 : i32, i32
  }
  func.func @transform_9(%arg0: i32) -> (i32, i32) {
    %c0_i32 = arith.constant 0 : i32
    %c0_i32_0 = arith.constant 0 : i32
    %c0_i32_1 = arith.constant 0 : i32
    return %c0_i32, %c0_i32_0 : i32, i32
  }
  func.func @transform_10(%arg0: i32) -> (i32, i32) {
    %c0_i32 = arith.constant 0 : i32
    %c0_i32_0 = arith.constant 0 : i32
    %c0_i32_1 = arith.constant 0 : i32
    return %c0_i32, %c0_i32_0 : i32, i32
  }
  func.func @transform_11(%arg0: i32) -> (i32, i32, i32) {
    %c0_i32 = arith.constant 0 : i32
    %c0_i32_0 = arith.constant 0 : i32
    %c0_i32_1 = arith.constant 0 : i32
    %c0_i32_2 = arith.constant 0 : i32
    return %c0_i32, %c0_i32_0, %c0_i32_1 : i32, i32, i32
  }
  func.func @transform_12(%arg0: i32) -> (i32, i32) {
    %c0_i32 = arith.constant 0 : i32
    %c0_i32_0 = arith.constant 0 : i32
    %c0_i32_1 = arith.constant 0 : i32
    return %c0_i32, %c0_i32_0 : i32, i32
  }
  func.func @transform_13(%arg0: i32) -> (i32, i32, i32) {
    %c0_i32 = arith.constant 0 : i32
    %c0_i32_0 = arith.constant 0 : i32
    %c0_i32_1 = arith.constant 0 : i32
    return %arg0, %c0_i32, %c0_i32_0 : i32, i32, i32
  }
}

</mosaic_0001>

<bundles_post_ra>
// kernel: net_forward.1
= control target key start
LH: loop header
LB: loop body
LE: loop exit
PB: predicated region body
PF: predicated region fallthrough
CT: control target
= control target key end

     0   :  { %s9122_s25 = smov 0   ;;  %s11776_s0 = inlined_call_operand.vmem [shape: f32[2,256,32], index: 0, kind: input, shape index: {}]   ;;  %s11777_s1 = inlined_call_operand.vmem [shape: f32[32,32], index: 1, kind: input, shape index: {}]   ;;  %s11778_s2 = inlined_call_operand.vmem [shape: f32[1,32], index: 2, kind: input, shape index: {}]   ;;  %s11779_s3 = inlined_call_operand.vmem [shape: f32[9,32], index: 3, kind: input, shape index: {}]   ;;  %s11780_s4 = inlined_call_operand.vmem [shape: f32[1,32], index: 4, kind: input, shape index: {}]   ;;  %s11781_s5 = inlined_call_operand.vmem [shape: f32[32,32], index: 5, kind: input, shape index: {}]   ;;  %s11782_s6 = inlined_call_operand.vmem [shape: f32[1,32], index: 6, kind: input, shape index: {}]   ;;  %s11783_s7 = inlined_call_operand.vmem [shape: f32[9,32], index: 7, kind: input, shape index: {}]   ;;  %s11784_s8 = inlined_call_operand.vmem [shape: f32[1,32], index: 8, kind: input, shape index: {}]   ;;  %s11785_s9 = inlined_call_operand.vmem [shape: f32[32,32], index: 9, kind: input, shape index: {}]   ;;  %s11786_s10 = inlined_call_operand.vmem [shape: f32[1,32], index: 10, kind: input, shape index: {}]   ;;  %s11787_s11 = inlined_call_operand.vmem [shape: f32[9,32,9], index: 11, kind: input, shape index: {}]   ;;  %s11788_s12 = inlined_call_operand.vmem [shape: f32[1,9], index: 12, kind: input, shape index: {}]   ;;  %s11789_s13 = inlined_call_operand.vmem [shape: f32[2,9,256], index: 13, kind: output, shape index: {}]  }
   0x1 LB: > { %s7168_s26 = sadd.s32 4294967295, %s9049_s25   ;;  %p7172_p0 = scmp.ge.s32.totalorder %s9049_s25, 1  ;;  %s9049_s25 = sphi %s9122_s25, %s23_s25  }
   0x2   : > { %p387_p1 = scmp.lt.s32.totalorder %s9049_s25, 3 }
   0x4   : > { %p388_p2 = pnand %p7172_p0, %p387_p1 }
   0x6   : > { %391 = sbr.rel (%p388_p2) target bundleno = 1534 (0x5fe), region = 72 }
   0xd   : > { %v529_v0 = vld [vmem:[%s11777_s1] sm:$0xff]  ;;  %v530_v1 = vld [vmem:[%s11777_s1 + $0x8] sm:$0xff]  ;;  %v531_v2 = vld [vmem:[%s11777_s1 + $0x10] sm:$0xff]  ;;  %p9141_p3 = scmp.lt.s32.totalorder %s7168_s26, 1  ;;  %vm441_vm0 = vcmask 261120   ;;  %vm444_vm1 = vcmask 254976   ;;  %v961_v45 = vlaneseq }
   0xe   : > { %v8677_v3 = vpack.c.bf16 %v530_v1, %v529_v0  ;;  %v532_v4 = vld [vmem:[%s11777_s1 + $0x18] sm:$0xff]  ;;  %v9051_v5 = vmov 0.0   ;;  %v1868_v7 = vld [vmem:[%s11781_s5] sm:$0xff]  ;;  %v1869_v8 = vld [vmem:[%s11781_s5 + $0x8] sm:$0xff] }
   0xf   : > { %447 = vst.msk [vmem:[#allocation2 + $0x20] sm:$0xff] %vm441_vm0, %v9051_v5  ;;  %442 = vst.msk [vmem:[#allocation2] sm:$0xff] %vm441_vm0, %v9051_v5  ;;  %v8681_v6 = vpack.c.bf16 %v532_v4, %v531_v2  ;;  %s11878_s26 = smov (!%p9141_p3, %s7168_s26), 1  ;;  %v8685_v9 = vpack.c.bf16 %v1869_v8, %v1868_v7  ;;  %v1870_v11 = vld [vmem:[%s11781_s5 + $0x10] sm:$0xff]  ;;  %v1871_v12 = vld [vmem:[%s11781_s5 + $0x18] sm:$0xff]  ;;  %v9290_v46 = vshrl.u32 %v961_v45, 7 }
  0x10   : > { %443 = vst.msk [vmem:[#allocation2 + $0x8] sm:$0xff] %vm441_vm0, %v9051_v5  ;;  %446 = vst.msk [vmem:[#allocation2 + $0x18] sm:$0xff] %vm441_vm0, %v9051_v5  ;;  %8678 = vmatprep.subr.bf16.mxu0 %v8677_v3  ;;  %s7571_s23 = sshll.u32 %s11878_s26, 8  ;;  %v8689_v15 = vpack.c.bf16 %v1871_v12, %v1870_v11  ;;  %v9297_v49 = vld [vmem:[%s11779_s3] sm:$0xff]  ;;  %s7572_s21 = sshll.u32 %s11878_s26, 5 }
  0x11   : > { %449 = vst.msk [vmem:[#allocation2 + $0x30] sm:$0xff] %vm441_vm0, %v9051_v5  ;;  %450 = vst.msk [vmem:[#allocation2 + $0x38] sm:$0xff] %vm441_vm0, %v9051_v5  ;;  %8680 = vmatpush3.bf16.msra.mxu0 %v8677_v3  ;;  %s9218_s28 = scalar_lea.vmem %s11776_s0, %s7571_s23  ;;  %v963_v47 = vsub.s32 0, %v9290_v46  ;;  %v1063_v48 = vsub.s32 1, %v9290_v46  ;;  %v9302_v50 = vld [vmem:[%s11778_s2] ss:$0 sm:$0xff]  ;;  %s440_s24 = scalar_lea.vmem %s11789_s13, %s7572_s21 }
  0x12   : > { %452 = vst.msk [vmem:[#allocation2 + $0x48] sm:$0xff] %vm441_vm0, %v9051_v5  ;;  %453 = vst.msk [vmem:[#allocation2 + $0x50] sm:$0xff] %vm441_vm0, %v9051_v5  ;;  %8682 = vmatprep.subr.bf16.mxu0 %v8681_v6  ;;  %v497_v10 = vld [vmem:[%s9218_s28] sm:$0xff]  ;;  %v498_v13 = vld [vmem:[%s9218_s28 + $0x8] sm:$0xff]  ;;  %v1163_v54 = vsub.s32 2, %v9290_v46  ;;  %v1363_v11 = vsub.s32 4, %v9290_v46 }
  0x13   : > { %455 = vst.msk [vmem:[#allocation2 + $0x60] sm:$0xff] %vm441_vm0, %v9051_v5  ;;  %456 = vst.msk [vmem:[#allocation2 + $0x68] sm:$0xff] %vm441_vm0, %v9051_v5  ;;  %8013 = vmatprep.mubr.msk.f32.mxu0 %vm441_vm0, %v497_v10  ;;  %v499_v14 = vld [vmem:[%s9218_s28 + $0x10] sm:$0xff]  ;;  %v500_v16 = vld [vmem:[%s9218_s28 + $0x18] sm:$0xff]  ;;  %v9307_v52 = vrot.slane %v9297_v49, %v963_v47  ;;  %v9312_v53 = vrot.slane %v9297_v49, %v1063_v48  ;;  %v1263_v10 = vsub.s32 3, %v9290_v46 }
  0x14   : > { %458 = vst.msk [vmem:[#allocation2 + $0x78] sm:$0xff] %vm441_vm0, %v9051_v5  ;;  %459 = vst.msk [vmem:[#allocation2 + $0x80] sm:$0xff] %vm441_vm0, %v9051_v5  ;;  %v501_v17 = vld [vmem:[%s9218_s28 + $0x20] sm:$0xff]  ;;  %v502_v18 = vld [vmem:[%s9218_s28 + $0x28] sm:$0xff]  ;;  %v9322_v3 = vrot.slane %v9297_v49, %v1163_v54 }
  0x15   : > { %461 = vst.msk [vmem:[#allocation2 + $0x90] sm:$0xff] %vm441_vm0, %v9051_v5  ;;  %462 = vst.msk [vmem:[#allocation2 + $0x98] sm:$0xff] %vm441_vm0, %v9051_v5  ;;  %8684 = vmatpush3.bf16.msra.mxu0 %v8681_v6  ;;  %v503_v19 = vld [vmem:[%s9218_s28 + $0x30] sm:$0xff]  ;;  %v504_v20 = vld [vmem:[%s9218_s28 + $0x38] sm:$0xff] }
  0x16   : > { %464 = vst.msk [vmem:[#allocation2 + $0xa8] sm:$0xff] %vm441_vm0, %v9051_v5  ;;  %465 = vst.msk [vmem:[#allocation2 + $0xb0] sm:$0xff] %vm441_vm0, %v9051_v5  ;;  %8686 = vmatprep.subr.bf16.mxu0 %v8685_v9  ;;  %v505_v21 = vld [vmem:[%s9218_s28 + $0x40] sm:$0xff]  ;;  %v506_v22 = vld [vmem:[%s9218_s28 + $0x48] sm:$0xff] }
  0x17   : > { %467 = vst.msk [vmem:[#allocation2 + $0xc0] sm:$0xff] %vm441_vm0, %v9051_v5  ;;  %468 = vst.msk [vmem:[#allocation2 + $0xc8] sm:$0xff] %vm441_vm0, %v9051_v5  ;;  %v507_v23 = vld [vmem:[%s9218_s28 + $0x50] sm:$0xff]  ;;  %v508_v24 = vld [vmem:[%s9218_s28 + $0x58] sm:$0xff] }
  0x18   : > { %470 = vst.msk [vmem:[#allocation2 + $0xd8] sm:$0xff] %vm441_vm0, %v9051_v5  ;;  %471 = vst.msk [vmem:[#allocation2 + $0xe0] sm:$0xff] %vm441_vm0, %v9051_v5  ;;  %8014 = vmatmul.mubr.msk.f32.vlgmr.msra.gmra.mrb[0].mxu0 %vm441_vm0, %v498_v13  ;;  %v509_v25 = vld [vmem:[%s9218_s28 + $0x60] sm:$0xff]  ;;  %v510_v26 = vld [vmem:[%s9218_s28 + $0x68] sm:$0xff] }
  0x19   : > { %473 = vst.msk [vmem:[#allocation2 + $0xf0] sm:$0xff] %vm441_vm0, %v9051_v5  ;;  %474 = vst.msk [vmem:[#allocation2 + $0xf8] sm:$0xff] %vm441_vm0, %v9051_v5  ;;  %8016 = vmatprep.mubr.msk.f32.mxu0 %vm441_vm0, %v499_v14  ;;  %8688 = vmatpush3.bf16.msra.mxu0 %v8685_v9  ;;  %v511_v27 = vld [vmem:[%s9218_s28 + $0x70] sm:$0xff]  ;;  %v512_v28 = vld [vmem:[%s9218_s28 + $0x78] sm:$0xff]  ;;  %v1463_v14 = vsub.s32 5, %v9290_v46 }
  0x1a   : > { %476 = vst.msk [vmem:[#allocation2 + $0x108] sm:$0xff] %vm441_vm0, %v9051_v5  ;;  %477 = vst.msk [vmem:[#allocation2 + $0x110] sm:$0xff] %vm441_vm0, %v9051_v5  ;;  %8690 = vmatprep.subr.bf16.mxu0 %v8689_v15  ;;  %v513_v29 = vld [vmem:[%s9218_s28 + $0x80] sm:$0xff]  ;;  %v514_v30 = vld [vmem:[%s9218_s28 + $0x88] sm:$0xff] }
  0x1b   : > { %479 = vst.msk [vmem:[#allocation2 + $0x120] sm:$0xff] %vm441_vm0, %v9051_v5  ;;  %480 = vst.msk [vmem:[#allocation2 + $0x128] sm:$0xff] %vm441_vm0, %v9051_v5  ;;  %v515_v31 = vld [vmem:[%s9218_s28 + $0x90] sm:$0xff]  ;;  %v516_v32 = vld [vmem:[%s9218_s28 + $0x98] sm:$0xff] }
  0x1c   : > { %482 = vst.msk [vmem:[#allocation2 + $0x138] sm:$0xff] %vm441_vm0, %v9051_v5  ;;  %483 = vst.msk [vmem:[#allocation2 + $0x140] sm:$0xff] %vm441_vm0, %v9051_v5  ;;  %8017 = vmatmul.mubr.msk.f32.gmra.mrb[2].mxu0 %vm441_vm0, %v500_v16  ;;  %v517_v33 = vld [vmem:[%s9218_s28 + $0xa0] sm:$0xff]  ;;  %v518_v34 = vld [vmem:[%s9218_s28 + $0xa8] sm:$0xff] }
  0x1d   : > { %485 = vst.msk [vmem:[#allocation2 + $0x150] sm:$0xff] %vm441_vm0, %v9051_v5  ;;  %486 = vst.msk [vmem:[#allocation2 + $0x158] sm:$0xff] %vm441_vm0, %v9051_v5  ;;  %8019 = vmatprep.mubr.msk.f32.mxu0 %vm441_vm0, %v501_v17  ;;  %8692 = vmatpush3.bf16.msra.mxu0 %v8689_v15  ;;  %v519_v35 = vld [vmem:[%s9218_s28 + $0xb0] sm:$0xff]  ;;  %v520_v36 = vld [vmem:[%s9218_s28 + $0xb8] sm:$0xff] }
  0x1e   : > { %488 = vst.msk [vmem:[#allocation2 + $0x168] sm:$0xff] %vm441_vm0, %v9051_v5  ;;  %489 = vst.msk [vmem:[#allocation2 + $0x170] sm:$0xff] %vm441_vm0, %v9051_v5  ;;  %v521_v37 = vld [vmem:[%s9218_s28 + $0xc0] sm:$0xff]  ;;  %v522_v38 = vld [vmem:[%s9218_s28 + $0xc8] sm:$0xff] }
  0x1f   : > { %491 = vst.msk [vmem:[#allocation2 + $0x180] sm:$0xff] %vm441_vm0, %v9051_v5  ;;  %492 = vst.msk [vmem:[#allocation2 + $0x188] sm:$0xff] %vm441_vm0, %v9051_v5  ;;  %v523_v39 = vld [vmem:[%s9218_s28 + $0xd0] sm:$0xff]  ;;  %v524_v40 = vld [vmem:[%s9218_s28 + $0xd8] sm:$0xff] }
  0x20   : > { %494 = vst.msk [vmem:[#allocation2 + $0x198] sm:$0xff] %vm441_vm0, %v9051_v5  ;;  %495 = vst.msk [vmem:[#allocation2 + $0x1a0] sm:$0xff] %vm441_vm0, %v9051_v5  ;;  %8020 = vmatmul.mubr.msk.f32.gmra.mrb[4].mxu0 %vm441_vm0, %v502_v18  ;;  %v525_v41 = vld [vmem:[%s9218_s28 + $0xe0] sm:$0xff]  ;;  %v526_v42 = vld [vmem:[%s9218_s28 + $0xe8] sm:$0xff] }
  0x21   : > { %448 = vst.msk [vmem:[#allocation2 + $0x28] sm:$0x3] %vm444_vm1, %v9051_v5  ;;  %445 = vst.msk [vmem:[#allocation2 + $0x10] sm:$0x3] %vm444_vm1, %v9051_v5  ;;  %8022 = vmatprep.mubr.msk.f32.mxu0 %vm441_vm0, %v503_v19  ;;  %v527_v43 = vld [vmem:[%s9218_s28 + $0xf0] sm:$0xff]  ;;  %v528_v44 = vld [vmem:[%s9218_s28 + $0xf8] sm:$0xff] }
  0x22   : > { %451 = vst.msk [vmem:[#allocation2 + $0x40] sm:$0x3] %vm444_vm1, %v9051_v5  ;;  %454 = vst.msk [vmem:[#allocation2 + $0x58] sm:$0x3] %vm444_vm1, %v9051_v5  ;;  %v929_v57 = vld [vmem:[#allocation2] sm:$0xff]  ;;  %v930_v60 = vld [vmem:[#allocation2 + $0x8] sm:$0xff] }
  0x23   : > { %457 = vst.msk [vmem:[#allocation2 + $0x70] sm:$0x3] %vm444_vm1, %v9051_v5  ;;  %460 = vst.msk [vmem:[#allocation2 + $0x88] sm:$0x3] %vm444_vm1, %v9051_v5  ;;  %v1029_v58 = vld [vmem:[#allocation2 + $0x1] sm:$0xff]  ;;  %v965_v1 = vmul.f32 %v9307_v52, %v929_v57  ;;  %v966_v7 = vmul.f32 %v9307_v52, %v930_v60 }
  0x24   : > { %463 = vst.msk [vmem:[#allocation2 + $0xa0] sm:$0x3] %vm444_vm1, %v9051_v5  ;;  %466 = vst.msk [vmem:[#allocation2 + $0xb8] sm:$0x3] %vm444_vm1, %v9051_v5  ;;  %8023 = vmatmul.mubr.msk.f32.gmra.mrb[6].mxu0 %vm441_vm0, %v504_v20  ;;  %v1065_v2 = vmul.f32 %v9312_v53, %v1029_v58  ;;  %v1129_v6 = vld [vmem:[#allocation2 + $0x2] sm:$0xff] }
  0x25   : > { %469 = vst.msk [vmem:[#allocation2 + $0xd0] sm:$0x3] %vm444_vm1, %v9051_v5  ;;  %472 = vst.msk [vmem:[#allocation2 + $0xe8] sm:$0x3] %vm444_vm1, %v9051_v5  ;;  %8025 = vmatprep.mubr.msk.f32.mxu0 %vm441_vm0, %v505_v21  ;;  %v1165_v18 = vmul.f32 %v9322_v3, %v1129_v6  ;;  %v1664_v21 = vsub.s32 7, %v9290_v46 }
  0x26   : > { %475 = vst.msk [vmem:[#allocation2 + $0x100] sm:$0x3] %vm444_vm1, %v9051_v5  ;;  %478 = vst.msk [vmem:[#allocation2 + $0x118] sm:$0x3] %vm444_vm1, %v9051_v5  ;;  %v1097_v17 = vadd.f32 %v1065_v2, %v965_v1 }
  0x27   : > { %481 = vst.msk [vmem:[#allocation2 + $0x130] sm:$0x3] %vm444_vm1, %v9051_v5  ;;  %484 = vst.msk [vmem:[#allocation2 + $0x148] sm:$0x3] %vm444_vm1, %v9051_v5 }
  0x28   : > { %487 = vst.msk [vmem:[#allocation2 + $0x160] sm:$0x3] %vm444_vm1, %v9051_v5  ;;  %490 = vst.msk [vmem:[#allocation2 + $0x178] sm:$0x3] %vm444_vm1, %v9051_v5  ;;  %8026 = vmatmul.mubr.msk.f32.gmra.mrb[8].mxu0 %vm441_vm0, %v506_v22  ;;  %v1030_v61 = vld [vmem:[#allocation2 + $0x9] sm:$0xff] }
  0x29   : > { %493 = vst.msk [vmem:[#allocation2 + $0x190] sm:$0x3] %vm444_vm1, %v9051_v5  ;;  %496 = vst.msk [vmem:[#allocation2 + $0x1a8] sm:$0x3] %vm444_vm1, %v9051_v5  ;;  %8028 = vmatprep.mubr.msk.f32.mxu0 %vm441_vm0, %v507_v23  ;;  %v1066_v8 = vmul.f32 %v9312_v53, %v1030_v61  ;;  %v1130_v12 = vld [vmem:[#allocation2 + $0xa] sm:$0xff] }
  0x2a   : > { %v1166_v23 = vmul.f32 %v9322_v3, %v1130_v12 }
  0x2b   : > { %v1098_v22 = vadd.f32 %v1066_v8, %v966_v7  ;;  %v9393_v8 = vld [vmem:[%s11779_s3 + $0x8] ss:$0 sm:$0xff] }
  0x2c   : > { %8029 = vmatmul.mubr.msk.f32.gmra.mrb[10].mxu0 %vm441_vm0, %v508_v24 }
  0x2d   : > { %8031 = vmatprep.mubr.msk.f32.mxu0 %vm441_vm0, %v509_v25  ;;  %v9343_v25 = vrot.slane %v9297_v49, %v1263_v10 }
  0x30   : > { %8032 = vmatmul.mubr.msk.f32.gmra.mrb[12].mxu0 %vm441_vm0, %v510_v26  ;;  %v9348_v26 = vrot.slane %v9297_v49, %v1363_v11 }
  0x31   : > { %8034 = vmatprep.mubr.msk.f32.mxu0 %vm441_vm0, %v511_v27  ;;  %v1564_v27 = vsub.s32 6, %v9290_v46 }
  0x34   : > { %8035 = vmatmul.mubr.msk.f32.gmra.mrb[14].mxu0 %vm441_vm0, %v512_v28 }
  0x35   : > { %8037 = vmatprep.mubr.msk.f32.mxu0 %vm441_vm0, %v513_v29  ;;  %v9354_v29 = vrot.slane %v9297_v49, %v1463_v14 }
  0x38   : > { %8038 = vmatmul.mubr.msk.f32.gmra.mrb[16].mxu0 %vm441_vm0, %v514_v30 }
  0x39   : > { %8040 = vmatprep.mubr.msk.f32.mxu0 %vm441_vm0, %v515_v31 }
  0x3c   : > { %8041 = vmatmul.mubr.msk.f32.gmra.mrb[18].mxu0 %vm441_vm0, %v516_v32  ;;  %v1197_v32 = vadd.f32 %v1165_v18, %v1097_v17 }
  0x3d   : > { %8043 = vmatprep.mubr.msk.f32.mxu0 %vm441_vm0, %v517_v33 }
  0x40   : > { %8044 = vmatmul.mubr.msk.f32.gmra.mrb[20].mxu0 %vm441_vm0, %v518_v34 }
  0x41   : > { %8046 = vmatprep.mubr.msk.f32.mxu0 %vm441_vm0, %v519_v35 }
  0x44   : > { %8047 = vmatmul.mubr.msk.f32.gmra.mrb[22].mxu0 %vm441_vm0, %v520_v36 }
  0x45   : > { %8049 = vmatprep.mubr.msk.f32.mxu0 %vm441_vm0, %v521_v37 }
  0x48   : > { %8050 = vmatmul.mubr.msk.f32.gmra.mrb[24].mxu0 %vm441_vm0, %v522_v38 }
  0x49   : > { %8052 = vmatprep.mubr.msk.f32.mxu0 %vm441_vm0, %v523_v39  ;;  %v9363_v39 = vrot.slane %v9297_v49, %v1664_v21 }
  0x4c   : > { %8053 = vmatmul.mubr.msk.f32.gmra.mrb[26].mxu0 %vm441_vm0, %v524_v40  ;;  %v1198_v40 = vadd.f32 %v1166_v23, %v1098_v22 }
  0x4d   : > { %8055 = vmatprep.mubr.msk.f32.mxu0 %vm441_vm0, %v525_v41 }
  0x50   : > { %8056 = vmatmul.mubr.msk.f32.gmra.mrb[28].mxu0 %vm441_vm0, %v526_v42 }
  0x51   : > { %8058 = vmatprep.mubr.msk.f32.mxu0 %vm441_vm0, %v527_v43 }
  0x54   : > { %8059 = vmatmul.mubr.msk.f32.gmra.mrb[30].mxu0 %vm441_vm0, %v528_v44  ;;  %v9371_v44 = vrot.slane %v9297_v49, %v1564_v27 }
  0xeb   : > { %v8015_v51 = vpop.f32.mrb[0].mxu0 }
  0xec   : > { %v708_v55 = vadd.f32 %v8015_v51, %v9302_v50  ;;  %v702_v56 = vpop.f32.mrb[1].mxu0 }
  0xed   : > { %v703_v59 = vadd.f32 %v9302_v50, %v702_v56 }
  0xee   : > { %v862_v62 = vmax.f32 %v708_v55, 0.0 }
  0xef   : > { %v861_v63 = vmax.f32 %v703_v59, 0.0  ;;  %v8018_v0 = vpop.f32.mrb[2].mxu0 }
  0xf0   : > { %898 = vst.msk [vmem:[#allocation2 + $0x21] sm:$0xff] %vm441_vm0, %v862_v62  ;;  %v718_v4 = vadd.f32 %v8018_v0, %v9302_v50  ;;  %v712_v5 = vpop.f32.mrb[3].mxu0 }
  0xf1   : > { %897 = vst.msk [vmem:[#allocation2 + $0x19] sm:$0xff] %vm441_vm0, %v861_v63  ;;  %v713_v9 = vadd.f32 %v9302_v50, %v712_v5 }
  0xf2   : > { %v864_v13 = vmax.f32 %v718_v4, 0.0 }
  0xf3   : > { %v863_v15 = vmax.f32 %v713_v9, 0.0  ;;  %v8021_v16 = vpop.f32.mrb[4].mxu0 }
  0xf4   : > { %900 = vst.msk [vmem:[#allocation2 + $0x39] sm:$0xff] %vm441_vm0, %v864_v13  ;;  %v728_v19 = vadd.f32 %v8021_v16, %v9302_v50  ;;  %v722_v20 = vpop.f32.mrb[5].mxu0 }
  0xf5   : > { %899 = vst.msk [vmem:[#allocation2 + $0x31] sm:$0xff] %vm441_vm0, %v863_v15  ;;  %v723_v24 = vadd.f32 %v9302_v50, %v722_v20 }
  0xf6   : > { %v866_v28 = vmax.f32 %v728_v19, 0.0 }
  0xf7   : > { %v865_v30 = vmax.f32 %v723_v24, 0.0  ;;  %v8024_v31 = vpop.f32.mrb[6].mxu0  ;;  %v1330_v33 = vld [vmem:[#allocation2 + $0x21] sm:$0xff] }
  0xf8   : > { %v9356_v34 = vld [vmem:[#allocation2 + $0x22] sm:$0xff]  ;;  %902 = vst.msk [vmem:[#allocation2 + $0x51] sm:$0xff] %vm441_vm0, %v866_v28  ;;  %v738_v35 = vadd.f32 %v8024_v31, %v9302_v50  ;;  %v732_v36 = vpop.f32.mrb[7].mxu0  ;;  %v1229_v37 = vld [vmem:[#allocation2 + $0x18] sm:$0xff]  ;;  %v1366_v51 = vmul.f32 %v9348_v26, %v1330_v33  ;;  %v1068_v6 = vmul.f32 %v1330_v33, %v9312_v53 }
  0xf9   : > { %v1329_v38 = vld [vmem:[#allocation2 + $0x19] sm:$0xff]  ;;  %901 = vst.msk [vmem:[#allocation2 + $0x49] sm:$0xff] %vm441_vm0, %v865_v30  ;;  %v733_v41 = vadd.f32 %v9302_v50, %v732_v36  ;;  %v1265_v42 = vmul.f32 %v9343_v25, %v1229_v37  ;;  %v1466_v58 = vmul.f32 %v9354_v29, %v9356_v34  ;;  %v967_v63 = vmul.f32 %v1229_v37, %v9307_v52 }
  0xfa   : > { %v1429_v43 = vld [vmem:[#allocation2 + $0x1a] sm:$0xff]  ;;  %v868_v55 = vmax.f32 %v738_v35, 0.0  ;;  %v1365_v56 = vmul.f32 %v9348_v26, %v1329_v38  ;;  %v1067_v49 = vmul.f32 %v1329_v38, %v9312_v53 }
  0xfb   : > { %v1230_v45 = vld [vmem:[#allocation2 + $0x20] sm:$0xff]  ;;  %v867_v59 = vmax.f32 %v733_v41, 0.0  ;;  %v8027_v60 = vpop.f32.mrb[8].mxu0  ;;  %v1297_v61 = vadd.f32 %v1265_v42, %v1197_v32  ;;  %v1465_v2 = vmul.f32 %v9354_v29, %v1429_v43  ;;  %v1167_v15 = vmul.f32 %v1429_v43, %v9322_v3 }
  0xfc   : > { %v1266_v57 = vmul.f32 %v9343_v25, %v1230_v45  ;;  %v9378_v62 = vld [vmem:[#allocation2 + $0x39] sm:$0xff]  ;;  %904 = vst.msk [vmem:[#allocation2 + $0x69] sm:$0xff] %vm441_vm0, %v868_v55  ;;  %v748_v0 = vadd.f32 %v8027_v60, %v9302_v50  ;;  %v742_v1 = vpop.f32.mrb[9].mxu0  ;;  %v9385_v4 = vld [vmem:[#allocation2 + $0x30] sm:$0xff]  ;;  %v968_v16 = vmul.f32 %v1230_v45, %v9307_v52  ;;  %v1099_v31 = vadd.f32 %v1067_v49, %v967_v63 }
  0xfd   : > { %903 = vst.msk [vmem:[#allocation2 + $0x61] sm:$0xff] %vm441_vm0, %v867_v59  ;;  %v743_v7 = vadd.f32 %v9302_v50, %v742_v1  ;;  %v1397_v9 = vadd.f32 %v1365_v56, %v1297_v61  ;;  %v9395_v12 = vld [vmem:[#allocation2 + $0x38] sm:$0xff]  ;;  %v1566_v18 = vmul.f32 %v9371_v44, %v9385_v4  ;;  %v1667_v22 = vmul.f32 %v9363_v39, %v9378_v62  ;;  %v9432_v1 = vld [vmem:[%s11780_s4] ss:$0 sm:$0xff] }
  0xfe   : > { %v1298_v5 = vadd.f32 %v1266_v57, %v1198_v40  ;;  %v9397_v13 = vld [vmem:[#allocation2 + $0x3a] sm:$0xff]  ;;  %v870_v17 = vmax.f32 %v748_v0, 0.0  ;;  %v9403_v19 = vld [vmem:[#allocation2 + $0x31] sm:$0xff]  ;;  %v1267_v32 = vmul.f32 %v9385_v4, %v9343_v25  ;;  %v1567_v37 = vmul.f32 %v9371_v44, %v9395_v12 }
  0xff   : > { %v869_v23 = vmax.f32 %v743_v7, 0.0  ;;  %v8030_v24 = vpop.f32.mrb[10].mxu0  ;;  %v1497_v28 = vadd.f32 %v1465_v2, %v1397_v9  ;;  %v9407_v30 = vld [vmem:[#allocation2 + $0x32] sm:$0xff]  ;;  %v1767_v38 = vmul.f32 %v9393_v8, %v9397_v13  ;;  %v1666_v42 = vmul.f32 %v9363_v39, %v9403_v19 }
 0x100   : > { %v1398_v20 = vadd.f32 %v1366_v51, %v1298_v5  ;;  %906 = vst.msk [vmem:[#allocation2 + $0x81] sm:$0xff] %vm441_vm0, %v870_v17  ;;  %v758_v33 = vadd.f32 %v8030_v24, %v9302_v50  ;;  %v752_v35 = vpop.f32.mrb[11].mxu0  ;;  %v1199_v43 = vadd.f32 %v1167_v15, %v1099_v31  ;;  %v1766_v51 = vmul.f32 %v9393_v8, %v9407_v30  ;;  %v9425_v61 = vld [vmem:[#allocation2 + $0x48] sm:$0xff] }
 0x101   : > { %905 = vst.msk [vmem:[#allocation2 + $0x79] sm:$0xff] %vm441_vm0, %v869_v23  ;;  %v753_v40 = vadd.f32 %v9302_v50, %v752_v35  ;;  %v1598_v41 = vadd.f32 %v1566_v18, %v1497_v28  ;;  %v1367_v56 = vmul.f32 %v9403_v19, %v9348_v26  ;;  %v1100_v63 = vadd.f32 %v1068_v6, %v968_v16  ;;  %v9434_v5 = vld [vmem:[#allocation2 + $0x49] sm:$0xff] }
 0x102   : > { %v1498_v36 = vadd.f32 %v1466_v58, %v1398_v20  ;;  %v872_v45 = vmax.f32 %v758_v33, 0.0  ;;  %v1299_v60 = vadd.f32 %v1267_v32, %v1199_v43  ;;  %v1168_v7 = vmul.f32 %v9356_v34, %v9322_v3  ;;  %v9446_v23 = vld [vmem:[#allocation2 + $0x4a] sm:$0xff] }
 0x103   : > { %v871_v57 = vmax.f32 %v753_v40, 0.0  ;;  %v8033_v58 = vpop.f32.mrb[12].mxu0  ;;  %v1698_v59 = vadd.f32 %v1666_v42, %v1598_v41  ;;  %v1268_v9 = vmul.f32 %v9395_v12, %v9343_v25  ;;  %v1467_v17 = vmul.f32 %v9407_v30, %v9354_v29  ;;  %v9456_v41 = vld [vmem:[#allocation2 + $0x50] sm:$0xff] }
 0x104   : > { %v1599_v55 = vadd.f32 %v1567_v37, %v1498_v36  ;;  %908 = vst.msk [vmem:[#allocation2 + $0x99] sm:$0xff] %vm441_vm0, %v872_v45  ;;  %v768_v49 = vadd.f32 %v8033_v58, %v9302_v50  ;;  %v762_v0 = vpop.f32.mrb[13].mxu0  ;;  %v1399_v16 = vadd.f32 %v1367_v56, %v1299_v60  ;;  %v1200_v34 = vadd.f32 %v1168_v7, %v1100_v63  ;;  %v9468_v58 = vld [vmem:[#allocation2 + $0x51] sm:$0xff] }
 0x105   : > { %907 = vst.msk [vmem:[#allocation2 + $0x91] sm:$0xff] %vm441_vm0, %v871_v57  ;;  %v763_v6 = vadd.f32 %v9302_v50, %v762_v0  ;;  %v1798_v15 = vadd.f32 %v1766_v51, %v1698_v59  ;;  %v1668_v33 = vmul.f32 %v9363_v39, %v9434_v5  ;;  %v1368_v40 = vmul.f32 %v9378_v62, %v9348_v26 }
 0x106   : > { %v1699_v2 = vadd.f32 %v1667_v22, %v1599_v55  ;;  %v874_v18 = vmax.f32 %v768_v49, 0.0  ;;  %v1568_v22 = vmul.f32 %v9371_v44, %v9425_v61  ;;  %v1499_v32 = vadd.f32 %v1467_v17, %v1399_v16 }
 0x107   : > { %v873_v24 = vmax.f32 %v763_v6, 0.0  ;;  %v8036_v28 = vpop.f32.mrb[14].mxu0  ;;  %v1836_v31 = vadd.f32 %v9432_v1, %v1798_v15  ;;  %v1768_v45 = vmul.f32 %v9393_v8, %v9446_v23  ;;  %v969_v51 = vmul.f32 %v9385_v4, %v9307_v52 }
 0x108   : > { %v1799_v20 = vadd.f32 %v1767_v38, %v1699_v2  ;;  %910 = vst.msk [vmem:[#allocation2 + $0xb1] sm:$0xff] %vm441_vm0, %v874_v18  ;;  %v778_v35 = vadd.f32 %v8036_v28, %v9302_v50  ;;  %v772_v36 = vpop.f32.mrb[15].mxu0  ;;  %v1300_v38 = vadd.f32 %v1268_v9, %v1200_v34  ;;  %v1600_v43 = vadd.f32 %v1568_v22, %v1499_v32  ;;  %v9474_v2 = vld [vmem:[#allocation2 + $0x52] sm:$0xff] }
 0x109   : > { %909 = vst.msk [vmem:[#allocation2 + $0xa9] sm:$0xff] %vm441_vm0, %v873_v24  ;;  %v773_v42 = vadd.f32 %v9302_v50, %v772_v36  ;;  %8069 = vmatprep.mubr.msk.f32.mxu0 %vm441_vm0, %v1836_v31  ;;  %v1468_v57 = vmul.f32 %v9397_v13, %v9354_v29  ;;  %v1069_v59 = vmul.f32 %v9403_v19, %v9312_v53 }
 0x10a   : > { %v1837_v37 = vadd.f32 %v9432_v1, %v1799_v20  ;;  %v876_v55 = vmax.f32 %v778_v35, 0.0  ;;  %v1400_v56 = vadd.f32 %v1368_v40, %v1300_v38  ;;  %v1700_v49 = vadd.f32 %v1668_v33, %v1600_v43  ;;  %v9499_v43 = vld [vmem:[#allocation2 + $0x61] sm:$0xff] }
 0x10b   : > { %v875_v60 = vmax.f32 %v773_v42, 0.0  ;;  %v8039_v63 = vpop.f32.mrb[16].mxu0  ;;  %v1569_v0 = vmul.f32 %v9371_v44, %v9456_v41  ;;  %v1169_v4 = vmul.f32 %v9407_v30, %v9322_v3  ;;  %v1101_v15 = vadd.f32 %v1069_v59, %v969_v51  ;;  %v9497_v42 = vld [vmem:[#allocation2 + $0x60] sm:$0xff] }
 0x10c   : > { %8070 = vmatmul.mubr.msk.f32.vlgmr.msra.gmra.mrb[32].mxu0 %vm441_vm0, %v1837_v37  ;;  %912 = vst.msk [vmem:[#allocation2 + $0xc9] sm:$0xff] %vm441_vm0, %v876_v55  ;;  %v788_v7 = vadd.f32 %v8039_v63, %v9302_v50  ;;  %v782_v9 = vpop.f32.mrb[17].mxu0  ;;  %v1500_v6 = vadd.f32 %v1468_v57, %v1400_v56  ;;  %v1269_v19 = vmul.f32 %v9425_v61, %v9343_v25 }
 0x10d   : > { %911 = vst.msk [vmem:[#allocation2 + $0xc1] sm:$0xff] %vm441_vm0, %v875_v60  ;;  %v783_v16 = vadd.f32 %v9302_v50, %v782_v9  ;;  %v1800_v17 = vadd.f32 %v1768_v45, %v1700_v49  ;;  %v1669_v18 = vmul.f32 %v9363_v39, %v9468_v58  ;;  %v1769_v22 = vmul.f32 %v9393_v8, %v9474_v2 }
 0x10e   : > { %v878_v20 = vmax.f32 %v788_v7, 0.0  ;;  %v1601_v30 = vadd.f32 %v1569_v0, %v1500_v6  ;;  %v1201_v34 = vadd.f32 %v1169_v4, %v1101_v15  ;;  %v970_v32 = vmul.f32 %v9395_v12, %v9307_v52 }
 0x10f   : > { %v877_v24 = vmax.f32 %v783_v16, 0.0  ;;  %v1838_v28 = vadd.f32 %v9432_v1, %v1800_v17  ;;  %v8042_v31 = vpop.f32.mrb[18].mxu0  ;;  %v1070_v33 = vmul.f32 %v9378_v62, %v9312_v53  ;;  %v1369_v40 = vmul.f32 %v9434_v5, %v9348_v26  ;;  %v9520_v17 = vld [vmem:[#allocation2 + $0x68] sm:$0xff] }
 0x110   : > { %914 = vst.msk [vmem:[#allocation2 + $0xe1] sm:$0xff] %vm441_vm0, %v878_v20  ;;  %v1701_v35 = vadd.f32 %v1669_v18, %v1601_v30  ;;  %v798_v36 = vadd.f32 %v8042_v31, %v9302_v50  ;;  %v792_v37 = vpop.f32.mrb[19].mxu0  ;;  %v1301_v38 = vadd.f32 %v1269_v19, %v1201_v34  ;;  %v1170_v45 = vmul.f32 %v9397_v13, %v9322_v3  ;;  %v1734_v19 = vld [vmem:[#allocation2 + $0x62] sm:$0xff] }
 0x111   : > { %913 = vst.msk [vmem:[#allocation2 + $0xd9] sm:$0xff] %vm441_vm0, %v877_v24  ;;  %8072 = vmatprep.mubr.msk.f32.mxu0 %vm441_vm0, %v1838_v28  ;;  %v793_v62 = vadd.f32 %v9302_v50, %v792_v37  ;;  %v1102_v12 = vadd.f32 %v1070_v33, %v970_v32  ;;  %v1270_v51 = vmul.f32 %v9456_v41, %v9343_v25  ;;  %v9530_v24 = vld [vmem:[#allocation2 + $0x69] sm:$0xff] }
 0x112   : > { %v1801_v55 = vadd.f32 %v1769_v22, %v1701_v35  ;;  %v880_v56 = vmax.f32 %v798_v36, 0.0  ;;  %v1401_v57 = vadd.f32 %v1369_v40, %v1301_v38  ;;  %v1469_v59 = vmul.f32 %v9446_v23, %v9354_v29  ;;  %v9534_v33 = vld [vmem:[#allocation2 + $0x6a] sm:$0xff] }
 0x113   : > { %v879_v60 = vmax.f32 %v793_v62, 0.0  ;;  %v1570_v63 = vmul.f32 %v9371_v44, %v9497_v42  ;;  %v1670_v49 = vmul.f32 %v9363_v39, %v9499_v43  ;;  %v1202_v0 = vadd.f32 %v1170_v45, %v1102_v12  ;;  %v8045_v4 = vpop.f32.mrb[20].mxu0  ;;  %v9542_v62 = vld [vmem:[#allocation2 + $0x78] sm:$0xff] }
 0x114   : > { %v1839_v13 = vadd.f32 %v9432_v1, %v1801_v55  ;;  %916 = vst.msk [vmem:[#allocation2 + $0xf9] sm:$0xff] %vm441_vm0, %v880_v56  ;;  %v1501_v7 = vadd.f32 %v1469_v59, %v1401_v57  ;;  %v1370_v9 = vmul.f32 %v9468_v58, %v9348_v26  ;;  %v808_v6 = vadd.f32 %v8045_v4, %v9302_v50  ;;  %v802_v15 = vpop.f32.mrb[21].mxu0 }
 0x115   : > { %915 = vst.msk [vmem:[#allocation2 + $0xf1] sm:$0xff] %vm441_vm0, %v879_v60  ;;  %v1302_v16 = vadd.f32 %v1270_v51, %v1202_v0  ;;  %v803_v18 = vadd.f32 %v9302_v50, %v802_v15  ;;  %v971_v20 = vmul.f32 %v9425_v61, %v9307_v52  ;;  %v1071_v30 = vmul.f32 %v9434_v5, %v9312_v53 }
 0x116   : > { %8073 = vmatmul.mubr.msk.f32.gmra.mrb[34].mxu0 %vm441_vm0, %v1839_v13  ;;  %v1602_v22 = vadd.f32 %v1570_v63, %v1501_v7  ;;  %v1470_v34 = vmul.f32 %v9474_v2, %v9354_v29  ;;  %v882_v28 = vmax.f32 %v808_v6, 0.0  ;;  %v1171_v31 = vmul.f32 %v9446_v23, %v9322_v3 }
 0x117   : > { %v1402_v32 = vadd.f32 %v1370_v9, %v1302_v16  ;;  %v881_v35 = vmax.f32 %v803_v18, 0.0  ;;  %v1103_v61 = vadd.f32 %v1071_v30, %v971_v20  ;;  %v1271_v5 = vmul.f32 %v9497_v42, %v9343_v25  ;;  %v8048_v36 = vpop.f32.mrb[22].mxu0  ;;  %v9571_v30 = vld [vmem:[#allocation2 + $0x79] sm:$0xff] }
 0x118   : > { %v1702_v37 = vadd.f32 %v1670_v49, %v1602_v22  ;;  %v1770_v38 = vmul.f32 %v9393_v8, %v1734_v19  ;;  %v1571_v40 = vmul.f32 %v9371_v44, %v9520_v17  ;;  %918 = vst.msk [vmem:[#allocation2 + $0x111] sm:$0xff] %vm441_vm0, %v882_v28  ;;  %v812_v23 = vpop.f32.mrb[23].mxu0  ;;  %v1671_v45 = vmul.f32 %v9363_v39, %v9530_v24  ;;  %v9573_v22 = vld [vmem:[#allocation2 + $0x7a] sm:$0xff] }
 0x119   : > { %v1502_v12 = vadd.f32 %v1470_v34, %v1402_v32  ;;  %917 = vst.msk [vmem:[#allocation2 + $0x109] sm:$0xff] %vm441_vm0, %v881_v35  ;;  %v1203_v51 = vadd.f32 %v1171_v31, %v1103_v61  ;;  %v972_v55 = vmul.f32 %v9456_v41, %v9307_v52  ;;  %v1771_v57 = vmul.f32 %v9393_v8, %v9534_v33  ;;  %v9580_v61 = vld [vmem:[#allocation2 + $0x80] sm:$0xff] }
 0x11a   : > { %v1802_v56 = vadd.f32 %v1770_v38, %v1702_v37  ;;  %v1371_v59 = vmul.f32 %v9499_v43, %v9348_v26  ;;  %v1072_v60 = vmul.f32 %v9468_v58, %v9312_v53  ;;  %v1471_v0 = vmul.f32 %v1734_v19, %v9354_v29 }
 0x11b   : > { %v1603_v63 = vadd.f32 %v1571_v40, %v1502_v12  ;;  %v1303_v49 = vadd.f32 %v1271_v5, %v1203_v51  ;;  %v1572_v4 = vmul.f32 %v9371_v44, %v9542_v62  ;;  %v9558_v13 = vpop.f32.mrb[24].mxu0  ;;  %v1172_v9 = vmul.f32 %v9474_v2, %v9322_v3  ;;  %v9585_v40 = vld [vmem:[#allocation2 + $0x81] sm:$0xff] }
 0x11c   : > { %v1840_v41 = vadd.f32 %v9432_v1, %v1802_v56  ;;  %v1104_v7 = vadd.f32 %v1072_v60, %v972_v55  ;;  %v1272_v6 = vmul.f32 %v9520_v17, %v9343_v25  ;;  %v9565_v15 = vpop.f32.mrb[25].mxu0  ;;  %v1372_v18 = vmul.f32 %v9530_v24, %v9348_v26  ;;  %v9596_v56 = vld [vmem:[#allocation2 + $0x82] sm:$0xff] }
 0x11d   : > { %v1703_v58 = vadd.f32 %v1671_v45, %v1603_v63  ;;  %v1403_v16 = vadd.f32 %v1371_v59, %v1303_v49  ;;  %v818_v20 = vadd.f32 %v8048_v36, %v9302_v50  ;;  %v813_v2 = vadd.f32 %v9302_v50, %v812_v23 }
 0x11e   : > { %8075 = vmatprep.mubr.msk.f32.mxu0 %vm441_vm0, %v1840_v41  ;;  %v1204_v34 = vadd.f32 %v1172_v9, %v1104_v7  ;;  %v973_v28 = vmul.f32 %v9497_v42, %v9307_v52  ;;  %v1073_v31 = vmul.f32 %v9499_v43, %v9312_v53  ;;  %v1173_v36 = vmul.f32 %v1734_v19, %v9322_v3 }
 0x11f   : > { %v1803_v32 = vadd.f32 %v1771_v57, %v1703_v58  ;;  %v1503_v35 = vadd.f32 %v1471_v0, %v1403_v16  ;;  %v884_v5 = vmax.f32 %v818_v20, 0.0  ;;  %v9583_v37 = vpop.f32.mrb[26].mxu0  ;;  %v883_v12 = vmax.f32 %v813_v2, 0.0  ;;  %v9619_v20 = vld [vmem:[#allocation2 + $0x91] sm:$0xff] }
 0x120   : > { %v1304_v38 = vadd.f32 %v1272_v6, %v1204_v34  ;;  %v1105_v23 = vadd.f32 %v1073_v31, %v973_v28  ;;  %v1273_v42 = vmul.f32 %v9542_v62, %v9343_v25  ;;  %v9589_v45 = vpop.f32.mrb[27].mxu0  ;;  %v1672_v55 = vmul.f32 %v9363_v39, %v9571_v30 }
 0x121   : > { %v1841_v43 = vadd.f32 %v9432_v1, %v1803_v32  ;;  %v1604_v51 = vadd.f32 %v1572_v4, %v1503_v35  ;;  %v1772_v19 = vmul.f32 %v9393_v8, %v9573_v22  ;;  %920 = vst.msk [vmem:[#allocation2 + $0x129] sm:$0xff] %vm441_vm0, %v884_v5  ;;  %v1472_v59 = vmul.f32 %v9534_v33, %v9354_v29  ;;  %v9607_v4 = vld [vmem:[#allocation2 + $0x90] sm:$0xff] }
 0x122   : > { %v1404_v57 = vadd.f32 %v1372_v18, %v1304_v38  ;;  %v1573_v60 = vmul.f32 %v9371_v44, %v9580_v61  ;;  %919 = vst.msk [vmem:[#allocation2 + $0x121] sm:$0xff] %vm441_vm0, %v883_v12  ;;  %v1205_v63 = vadd.f32 %v1173_v36, %v1105_v23  ;;  %v1673_v0 = vmul.f32 %v9363_v39, %v9585_v40 }
 0x123   : > { %8076 = vmatmul.mubr.msk.f32.gmra.mrb[36].mxu0 %vm441_vm0, %v1841_v43  ;;  %v1704_v49 = vadd.f32 %v1672_v55, %v1604_v51  ;;  %v974_v41 = vmul.f32 %v9520_v17, %v9307_v52  ;;  %v1074_v7 = vmul.f32 %v9530_v24, %v9312_v53  ;;  %v9613_v9 = vpop.f32.mrb[28].mxu0  ;;  %v1773_v58 = vmul.f32 %v9393_v8, %v9596_v56 }
 0x124   : > { %v1504_v6 = vadd.f32 %v1472_v59, %v1404_v57  ;;  %v1305_v16 = vadd.f32 %v1273_v42, %v1205_v63  ;;  %v1373_v18 = vmul.f32 %v9571_v30, %v9348_v26  ;;  %v9621_v34 = vpop.f32.mrb[29].mxu0  ;;  %v1174_v17 = vmul.f32 %v9534_v33, %v9322_v3  ;;  %v1738_v57 = vld [vmem:[#allocation2 + $0x92] sm:$0xff] }
 0x125   : > { %v1804_v2 = vadd.f32 %v1772_v19, %v1704_v49  ;;  %v1106_v28 = vadd.f32 %v1074_v7, %v974_v41  ;;  %v1274_v24 = vmul.f32 %v9580_v61, %v9343_v25  ;;  %v1473_v35 = vmul.f32 %v9573_v22, %v9354_v29  ;;  %v9653_v41 = vld [vmem:[#allocation2 + $0x99] sm:$0xff] }
 0x126   : > { %v1605_v31 = vadd.f32 %v1573_v60, %v1504_v6  ;;  %v1405_v32 = vadd.f32 %v1373_v18, %v1305_v16  ;;  %v1574_v5 = vmul.f32 %v9371_v44, %v9607_v4  ;;  %v1674_v38 = vmul.f32 %v9363_v39, %v9619_v20  ;;  %v9655_v16 = vld [vmem:[#allocation2 + $0x9a] sm:$0xff] }
 0x127   : > { %v1842_v36 = vadd.f32 %v9432_v1, %v1804_v2  ;;  %v1206_v12 = vadd.f32 %v1174_v17, %v1106_v28  ;;  %v828_v33 = vadd.f32 %v9558_v13, %v9302_v50  ;;  %v9636_v23 = vpop.f32.mrb[30].mxu0  ;;  %v823_v51 = vadd.f32 %v9302_v50, %v9565_v15  ;;  %v9647_v13 = vld [vmem:[#allocation2 + $0x98] sm:$0xff] }
 0x128   : > { %v1705_v42 = vadd.f32 %v1673_v0, %v1605_v31  ;;  %v1505_v43 = vadd.f32 %v1473_v35, %v1405_v32  ;;  %v975_v55 = vmul.f32 %v9542_v62, %v9307_v52  ;;  %v9642_v19 = vpop.f32.mrb[31].mxu0  ;;  %v1374_v60 = vmul.f32 %v9585_v40, %v9348_v26  ;;  %v9667_v31 = vld [vmem:[#allocation2 + $0xa8] sm:$0xff] }
 0x129   : > { %8078 = vmatprep.mubr.msk.f32.mxu0 %vm441_vm0, %v1842_v36  ;;  %v1306_v59 = vadd.f32 %v1274_v24, %v1206_v12  ;;  %v886_v63 = vmax.f32 %v828_v33, 0.0  ;;  %v1075_v49 = vmul.f32 %v9571_v30, %v9312_v53  ;;  %v1474_v62 = vmul.f32 %v9596_v56, %v9354_v29 }
 0x12a   : > { %v1805_v0 = vadd.f32 %v1773_v58, %v1705_v42  ;;  %v1606_v15 = vadd.f32 %v1574_v5, %v1505_v43  ;;  %v885_v7 = vmax.f32 %v823_v51, 0.0  ;;  %v1175_v2 = vmul.f32 %v9573_v22, %v9322_v3 }
 0x12b   : > { %v1406_v6 = vadd.f32 %v1374_v60, %v1306_v59  ;;  %922 = vst.msk [vmem:[#allocation2 + $0x141] sm:$0xff] %vm441_vm0, %v886_v63  ;;  %v1107_v18 = vadd.f32 %v1075_v49, %v975_v55  ;;  %v1275_v30 = vmul.f32 %v9607_v4, %v9343_v25  ;;  %v1774_v17 = vmul.f32 %v9393_v8, %v1738_v57 }
 0x12c   : > { %v1843_v58 = vadd.f32 %v9432_v1, %v1805_v0  ;;  %v1706_v28 = vadd.f32 %v1674_v38, %v1606_v15  ;;  %v1575_v24 = vmul.f32 %v9371_v44, %v9647_v13  ;;  %921 = vst.msk [vmem:[#allocation2 + $0x139] sm:$0xff] %vm441_vm0, %v885_v7  ;;  %v1675_v35 = vmul.f32 %v9363_v39, %v9653_v41  ;;  %v9693_v7 = vld [vmem:[#allocation2 + $0xaa] sm:$0xff] }
 0x12d   : > { %v1506_v32 = vadd.f32 %v1474_v62, %v1406_v6  ;;  %v1207_v22 = vadd.f32 %v1175_v2, %v1107_v18  ;;  %v976_v5 = vmul.f32 %v9580_v61, %v9307_v52  ;;  %v1775_v38 = vmul.f32 %v9393_v8, %v9655_v16  ;;  %v1640_v62 = vld [vmem:[#allocation2 + $0xa9] sm:$0xff] }
 0x12e   : > { %8079 = vmatmul.mubr.msk.f32.gmra.mrb[38].mxu0 %vm441_vm0, %v1843_v58  ;;  %v1806_v36 = vadd.f32 %v1774_v17, %v1706_v28  ;;  %v1375_v12 = vmul.f32 %v9619_v20, %v9348_v26  ;;  %v1076_v33 = vmul.f32 %v9585_v40, %v9312_v53  ;;  %v1475_v51 = vmul.f32 %v1738_v57, %v9354_v29  ;;  %v9701_v28 = vld [vmem:[#allocation2 + $0xb0] sm:$0xff] }
 0x12f   : > { %v1607_v42 = vadd.f32 %v1575_v24, %v1506_v32  ;;  %v1307_v43 = vadd.f32 %v1275_v30, %v1207_v22  ;;  %v1576_v55 = vmul.f32 %v9371_v44, %v9667_v31  ;;  %v1176_v60 = vmul.f32 %v9596_v56, %v9322_v3  ;;  %v9704_v32 = vld [vmem:[#allocation2 + $0xb1] sm:$0xff] }
 0x130   : > { %v1844_v61 = vadd.f32 %v9432_v1, %v1806_v36  ;;  %v1108_v59 = vadd.f32 %v1076_v33, %v976_v5  ;;  %v1276_v63 = vmul.f32 %v9647_v13, %v9343_v25  ;;  %v1376_v40 = vmul.f32 %v9653_v41, %v9348_v26 }
 0x131   : > { %v1707_v49 = vadd.f32 %v1675_v35, %v1607_v42  ;;  %v1407_v0 = vadd.f32 %v1375_v12, %v1307_v43  ;;  %v838_v15 = vadd.f32 %v9583_v37, %v9302_v50  ;;  %v833_v56 = vadd.f32 %v9302_v50, %v9589_v45 }
 0x132   : > { %8081 = vmatprep.mubr.msk.f32.mxu0 %vm441_vm0, %v1844_v61  ;;  %v1208_v6 = vadd.f32 %v1176_v60, %v1108_v59  ;;  %v977_v18 = vmul.f32 %v9607_v4, %v9307_v52  ;;  %v1077_v2 = vmul.f32 %v9619_v20, %v9312_v53  ;;  %v1177_v17 = vmul.f32 %v1738_v57, %v9322_v3 }
 0x133   : > { %v1807_v30 = vadd.f32 %v1775_v38, %v1707_v49  ;;  %v1507_v58 = vadd.f32 %v1475_v51, %v1407_v0  ;;  %v888_v37 = vmax.f32 %v838_v15, 0.0  ;;  %v887_v35 = vmax.f32 %v833_v56, 0.0  ;;  %v9712_v38 = vld [vmem:[#allocation2 + $0xb2] sm:$0xff] }
 0x134   : > { %v1308_v24 = vadd.f32 %v1276_v63, %v1208_v6  ;;  %v1109_v22 = vadd.f32 %v1077_v2, %v977_v18  ;;  %v1277_v45 = vmul.f32 %v9667_v31, %v9343_v25  ;;  %v1676_v20 = vmul.f32 %v9363_v39, %v1640_v62 }
 0x135   : > { %v1845_v4 = vadd.f32 %v9432_v1, %v1807_v30  ;;  %v1608_v5 = vadd.f32 %v1576_v55, %v1507_v58  ;;  %v1776_v36 = vmul.f32 %v9393_v8, %v9693_v7  ;;  %924 = vst.msk [vmem:[#allocation2 + $0x159] sm:$0xff] %vm441_vm0, %v888_v37  ;;  %v1476_v12 = vmul.f32 %v9655_v16, %v9354_v29  ;;  %v9723_v55 = vld [vmem:[#allocation2 + $0xc0] sm:$0xff] }
 0x136   : > { %v1408_v57 = vadd.f32 %v1376_v40, %v1308_v24  ;;  %v1577_v33 = vmul.f32 %v9371_v44, %v9701_v28  ;;  %923 = vst.msk [vmem:[#allocation2 + $0x151] sm:$0xff] %vm441_vm0, %v887_v35  ;;  %v1209_v42 = vadd.f32 %v1177_v17, %v1109_v22  ;;  %v1677_v51 = vmul.f32 %v9363_v39, %v9704_v32  ;;  %v9732_v40 = vld [vmem:[#allocation2 + $0xc1] sm:$0xff] }
 0x137   : > { %8082 = vmatmul.mubr.msk.f32.gmra.mrb[40].mxu0 %vm441_vm0, %v1845_v4  ;;  %v1708_v43 = vadd.f32 %v1676_v20, %v1608_v5  ;;  %v978_v61 = vmul.f32 %v9647_v13, %v9307_v52  ;;  %v1078_v59 = vmul.f32 %v9653_v41, %v9312_v53  ;;  %v1777_v63 = vmul.f32 %v9393_v8, %v9712_v38  ;;  %v1742_v4 = vld [vmem:[#allocation2 + $0xc2] sm:$0xff] }
 0x138   : > { %v1508_v60 = vadd.f32 %v1476_v12, %v1408_v57  ;;  %v1309_v49 = vadd.f32 %v1277_v45, %v1209_v42  ;;  %v1377_v0 = vmul.f32 %v1640_v62, %v9348_v26  ;;  %v1178_v56 = vmul.f32 %v9655_v16, %v9322_v3  ;;  %v9759_v42 = vld [vmem:[#allocation2 + $0xc9] sm:$0xff] }
 0x139   : > { %v1808_v15 = vadd.f32 %v1776_v36, %v1708_v43  ;;  %v1110_v6 = vadd.f32 %v1078_v59, %v978_v61  ;;  %v1278_v13 = vmul.f32 %v9701_v28, %v9343_v25  ;;  %v1477_v41 = vmul.f32 %v9693_v7, %v9354_v29  ;;  %v9754_v36 = vld [vmem:[#allocation2 + $0xc8] sm:$0xff] }
 0x13a   : > { %v1609_v18 = vadd.f32 %v1577_v33, %v1508_v60  ;;  %v1409_v2 = vadd.f32 %v1377_v0, %v1309_v49  ;;  %v1578_v30 = vmul.f32 %v9371_v44, %v9723_v55  ;;  %v1678_v37 = vmul.f32 %v9363_v39, %v9732_v40 }
 0x13b   : > { %v1846_v58 = vadd.f32 %v9432_v1, %v1808_v15  ;;  %v1210_v17 = vadd.f32 %v1178_v56, %v1110_v6  ;;  %v848_v16 = vadd.f32 %v9613_v9, %v9302_v50  ;;  %v843_v22 = vadd.f32 %v9302_v50, %v9621_v34  ;;  %v9773_v15 = vld [vmem:[#allocation2 + $0xd8] sm:$0xff] }
 0x13c   : > { %v1709_v24 = vadd.f32 %v1677_v51, %v1609_v18  ;;  %v1509_v35 = vadd.f32 %v1477_v41, %v1409_v2  ;;  %v979_v45 = vmul.f32 %v9667_v31, %v9307_v52  ;;  %v1378_v20 = vmul.f32 %v9704_v32, %v9348_v26  ;;  %v9761_v51 = vld [vmem:[#allocation2 + $0xca] sm:$0xff] }
 0x13d   : > { %8084 = vmatprep.mubr.msk.f32.mxu0 %vm441_vm0, %v1846_v58  ;;  %v1310_v5 = vadd.f32 %v1278_v13, %v1210_v17  ;;  %v890_v57 = vmax.f32 %v848_v16, 0.0  ;;  %v1079_v9 = vmul.f32 %v1640_v62, %v9312_v53  ;;  %v1478_v34 = vmul.f32 %v9712_v38, %v9354_v29 }
 0x13e   : > { %v1809_v12 = vadd.f32 %v1777_v63, %v1709_v24  ;;  %v1610_v33 = vadd.f32 %v1578_v30, %v1509_v35  ;;  %v889_v31 = vmax.f32 %v843_v22, 0.0  ;;  %v1179_v59 = vmul.f32 %v9693_v7, %v9322_v3 }
 0x13f   : > { %v1410_v43 = vadd.f32 %v1378_v20, %v1310_v5  ;;  %926 = vst.msk [vmem:[#allocation2 + $0x171] sm:$0xff] %vm441_vm0, %v890_v57  ;;  %v1111_v61 = vadd.f32 %v1079_v9, %v979_v45  ;;  %v1279_v62 = vmul.f32 %v9723_v55, %v9343_v25  ;;  %v1778_v49 = vmul.f32 %v9393_v8, %v1742_v4  ;;  %v1644_v57 = vld [vmem:[#allocation2 + $0xd9] sm:$0xff] }
 0x140   : > { %v1847_v60 = vadd.f32 %v9432_v1, %v1809_v12  ;;  %v1710_v63 = vadd.f32 %v1678_v37, %v1610_v33  ;;  %v1579_v0 = vmul.f32 %v9371_v44, %v9754_v36  ;;  %925 = vst.msk [vmem:[#allocation2 + $0x169] sm:$0xff] %vm441_vm0, %v889_v31  ;;  %v1679_v56 = vmul.f32 %v9363_v39, %v9759_v42 }
 0x141   : > { %v1510_v6 = vadd.f32 %v1478_v34, %v1410_v43  ;;  %v1211_v7 = vadd.f32 %v1179_v59, %v1111_v61  ;;  %v980_v13 = vmul.f32 %v9701_v28, %v9307_v52  ;;  %v1779_v2 = vmul.f32 %v9393_v8, %v9761_v51  ;;  %v1744_v43 = vld [vmem:[#allocation2 + $0xda] sm:$0xff] }
 0x142   : > { %8085 = vmatmul.mubr.msk.f32.gmra.mrb[42].mxu0 %vm441_vm0, %v1847_v60  ;;  %v1810_v18 = vadd.f32 %v1778_v49, %v1710_v63  ;;  %v1379_v41 = vmul.f32 %v9732_v40, %v9348_v26  ;;  %v1080_v30 = vmul.f32 %v9704_v32, %v9312_v53  ;;  %v1479_v17 = vmul.f32 %v1742_v4, %v9354_v29 }
 0x143   : > { %v1611_v58 = vadd.f32 %v1579_v0, %v1510_v6  ;;  %v1311_v37 = vadd.f32 %v1279_v62, %v1211_v7  ;;  %v1580_v16 = vmul.f32 %v9371_v44, %v9773_v15  ;;  %v1180_v35 = vmul.f32 %v9712_v38, %v9322_v3  ;;  %v1545_v62 = vld [vmem:[#allocation2 + $0xe0] sm:$0xff] }
 0x144   : > { %v1848_v28 = vadd.f32 %v9432_v1, %v1810_v18  ;;  %v1112_v24 = vadd.f32 %v1080_v30, %v980_v13  ;;  %v1280_v22 = vmul.f32 %v9754_v36, %v9343_v25  ;;  %v1380_v32 = vmul.f32 %v9759_v42, %v9348_v26  ;;  %v1645_v0 = vld [vmem:[#allocation2 + $0xe1] sm:$0xff] }
 0x145   : > { %v1711_v45 = vadd.f32 %v1679_v56, %v1611_v58  ;;  %v1411_v5 = vadd.f32 %v1379_v41, %v1311_v37  ;;  %v858_v20 = vadd.f32 %v9636_v23, %v9302_v50  ;;  %v853_v12 = vadd.f32 %v9302_v50, %v9642_v19  ;;  %v1745_v18 = vld [vmem:[#allocation2 + $0xe2] sm:$0xff] }
 0x146   : > { %8087 = vmatprep.mubr.msk.f32.mxu0 %vm441_vm0, %v1848_v28  ;;  %v1212_v9 = vadd.f32 %v1180_v35, %v1112_v24  ;;  %v981_v38 = vmul.f32 %v9723_v55, %v9307_v52  ;;  %v1081_v33 = vmul.f32 %v9732_v40, %v9312_v53  ;;  %v1181_v59 = vmul.f32 %v1742_v4, %v9322_v3  ;;  %v1646_v24 = vld [vmem:[#allocation2 + $0xf1] sm:$0xff] }
 0x147   : > { %v1811_v34 = vadd.f32 %v1779_v2, %v1711_v45  ;;  %v1511_v31 = vadd.f32 %v1479_v17, %v1411_v5  ;;  %v892_v61 = vmax.f32 %v858_v20, 0.0  ;;  %v891_v60 = vmax.f32 %v853_v12, 0.0  ;;  %v9828_v20 = vld [vmem:[#allocation2 + $0xf2] sm:$0xff] }
 0x148   : > { %v1312_v23 = vadd.f32 %v1280_v22, %v1212_v9  ;;  %v1113_v63 = vadd.f32 %v1081_v33, %v981_v38  ;;  %v1281_v49 = vmul.f32 %v9773_v15, %v9343_v25  ;;  %v1680_v55 = vmul.f32 %v9363_v39, %v1644_v57 }
 0x149   : > { %v1849_v50 = vadd.f32 %v9432_v1, %v1811_v34  ;;  %v1612_v19 = vadd.f32 %v1580_v16, %v1511_v31  ;;  %928 = vst.msk [vmem:[#allocation2 + $0x189] sm:$0xff] %vm441_vm0, %v892_v61  ;;  %v1780_v40 = vmul.f32 %v9393_v8, %v1744_v43  ;;  %v1480_v4 = vmul.f32 %v9761_v51, %v9354_v29  ;;  %v1546_v16 = vld [vmem:[#allocation2 + $0xf0] sm:$0xff]  ;;  %v1547_v61 = vld [vmem:[#allocation2 + $0xf8] sm:$0xff] }
 0x14a   : > { %v1412_v6 = vadd.f32 %v1380_v32, %v1312_v23  ;;  %927 = vst.msk [vmem:[#allocation2 + $0x181] sm:$0xff] %vm441_vm0, %v891_v60  ;;  %v1213_v56 = vadd.f32 %v1181_v59, %v1113_v63  ;;  %v1581_v13 = vmul.f32 %v9371_v44, %v1545_v62  ;;  %v982_v2 = vmul.f32 %v9754_v36, %v9307_v52 }
 0x14b   : > { %8088 = vmatmul.mubr.msk.f32.gmra.mrb[44].mxu0 %vm441_vm0, %v1849_v50  ;;  %v1712_v7 = vadd.f32 %v1680_v55, %v1612_v19  ;;  %v1082_v41 = vmul.f32 %v9759_v42, %v9312_v53  ;;  %v1681_v58 = vmul.f32 %v9363_v39, %v1645_v0  ;;  %v1381_v17 = vmul.f32 %v1644_v57, %v9348_v26 }
 0x14c   : > { %v1512_v30 = vadd.f32 %v1480_v4, %v1412_v6  ;;  %v1313_v37 = vadd.f32 %v1281_v49, %v1213_v56  ;;  %v1182_v22 = vmul.f32 %v9761_v51, %v9322_v3  ;;  %v1282_v45 = vmul.f32 %v1545_v62, %v9343_v25 }
 0x14d   : > { %v1812_v28 = vadd.f32 %v1780_v40, %v1712_v7  ;;  %v1114_v35 = vadd.f32 %v1082_v41, %v982_v2  ;;  %v1781_v36 = vmul.f32 %v9393_v8, %v1745_v18  ;;  %v1481_v42 = vmul.f32 %v1744_v43, %v9354_v29  ;;  %v1747_v2 = vld [vmem:[#allocation2 + $0xfa] sm:$0xff] }
 0x14e   : > { %v1613_v5 = vadd.f32 %v1581_v13, %v1512_v30  ;;  %v1413_v32 = vadd.f32 %v1381_v17, %v1313_v37  ;;  %v1582_v12 = vmul.f32 %v9371_v44, %v1546_v16  ;;  %v983_v33 = vmul.f32 %v9773_v15, %v9307_v52  ;;  %v1647_v15 = vld [vmem:[#allocation2 + $0xf9] sm:$0xff]  ;;  %v9846_v30 = vld [vmem:[#allocation2 + $0x108] sm:$0xff] }
 0x14f   : > { %v1850_v9 = vadd.f32 %v9432_v1, %v1812_v28  ;;  %v1214_v38 = vadd.f32 %v1182_v22, %v1114_v35  ;;  %v1682_v31 = vmul.f32 %v9363_v39, %v1646_v24  ;;  %v1083_v59 = vmul.f32 %v1644_v57, %v9312_v53  ;;  %v1648_v22 = vld [vmem:[#allocation2 + $0x109] sm:$0xff] }
 0x150   : > { %v1713_v34 = vadd.f32 %v1681_v58, %v1613_v5  ;;  %v1513_v51 = vadd.f32 %v1481_v42, %v1413_v32  ;;  %v1782_v23 = vmul.f32 %v9393_v8, %v9828_v20  ;;  %v1382_v63 = vmul.f32 %v1645_v0, %v9348_v26 }
 0x151   : > { %8090 = vmatprep.mubr.msk.f32.mxu0 %vm441_vm0, %v1850_v9  ;;  %v1314_v60 = vadd.f32 %v1282_v45, %v1214_v38  ;;  %v1183_v49 = vmul.f32 %v1744_v43, %v9322_v3  ;;  %v1115_v55 = vadd.f32 %v1083_v59, %v983_v33  ;;  %v1283_v40 = vmul.f32 %v1546_v16, %v9343_v25  ;;  %v1748_v45 = vld [vmem:[#allocation2 + $0x10a] sm:$0xff] }
 0x152   : > { %v1813_v50 = vadd.f32 %v1781_v36, %v1713_v34  ;;  %v1614_v19 = vadd.f32 %v1582_v12, %v1513_v51  ;;  %v1482_v4 = vmul.f32 %v1745_v18, %v9354_v29  ;;  %v1583_v57 = vmul.f32 %v9371_v44, %v1547_v61  ;;  %v9863_v59 = vld [vmem:[#allocation2 + $0x110] sm:$0xff] }
 0x153   : > { %v1414_v6 = vadd.f32 %v1382_v63, %v1314_v60  ;;  %v984_v56 = vmul.f32 %v1545_v62, %v9307_v52  ;;  %v1215_v41 = vadd.f32 %v1183_v49, %v1115_v55  ;;  %v1084_v43 = vmul.f32 %v1645_v0, %v9312_v53 }
 0x154   : > { %v1851_v7 = vadd.f32 %v9432_v1, %v1813_v50  ;;  %v1714_v13 = vadd.f32 %v1682_v31, %v1614_v19  ;;  %v1683_v37 = vmul.f32 %v9363_v39, %v1647_v15  ;;  %v1383_v17 = vmul.f32 %v1646_v24, %v9348_v26  ;;  %v1649_v19 = vld [vmem:[#allocation2 + $0x111] sm:$0xff] }
 0x155   : > { %v1514_v58 = vadd.f32 %v1482_v4, %v1414_v6  ;;  %v1184_v28 = vmul.f32 %v1745_v18, %v9322_v3  ;;  %v1315_v62 = vadd.f32 %v1283_v40, %v1215_v41  ;;  %v1116_v5 = vadd.f32 %v1084_v43, %v984_v56 }
 0x156   : > { %8091 = vmatmul.mubr.msk.f32.gmra.mrb[46].mxu0 %vm441_vm0, %v1851_v7  ;;  %v1814_v35 = vadd.f32 %v1782_v23, %v1714_v13  ;;  %v1284_v36 = vmul.f32 %v1547_v61, %v9343_v25  ;;  %v1783_v42 = vmul.f32 %v9393_v8, %v1747_v2  ;;  %v1483_v0 = vmul.f32 %v9828_v20, %v9354_v29 }
 0x157   : > { %v1615_v32 = vadd.f32 %v1583_v57, %v1514_v58  ;;  %v1584_v9 = vmul.f32 %v9371_v44, %v9846_v30  ;;  %v1415_v12 = vadd.f32 %v1383_v17, %v1315_v62  ;;  %v1216_v38 = vadd.f32 %v1184_v28, %v1116_v5  ;;  %v9880_v58 = vld [vmem:[#allocation2 + $0x120] sm:$0xff] }
 0x158   : > { %v1852_v18 = vadd.f32 %v9432_v1, %v1814_v35  ;;  %v985_v33 = vmul.f32 %v1546_v16, %v9307_v52  ;;  %v1684_v51 = vmul.f32 %v9363_v39, %v1648_v22  ;;  %v1784_v31 = vmul.f32 %v9393_v8, %v1748_v45  ;;  %v9869_v16 = vld [vmem:[#allocation2 + $0x112] sm:$0xff] }
 0x159   : > { %v1715_v34 = vadd.f32 %v1683_v37, %v1615_v32  ;;  %v1085_v23 = vmul.f32 %v1646_v24, %v9312_v53  ;;  %v1515_v60 = vadd.f32 %v1483_v0, %v1415_v12  ;;  %v1316_v63 = vadd.f32 %v1284_v36, %v1216_v38 }
 0x15a   : > { %8093 = vmatprep.mubr.msk.f32.mxu0 %vm441_vm0, %v1852_v18  ;;  %v1384_v49 = vmul.f32 %v1647_v15, %v9348_v26  ;;  %v1484_v50 = vmul.f32 %v1747_v2, %v9354_v29  ;;  %v1185_v6 = vmul.f32 %v9828_v20, %v9322_v3  ;;  %v1285_v4 = vmul.f32 %v9846_v30, %v9343_v25  ;;  %v1750_v18 = vld [vmem:[#allocation2 + $0x122] sm:$0xff] }
 0x15b   : > { %v1815_v55 = vadd.f32 %v1783_v42, %v1715_v34  ;;  %v1117_v40 = vadd.f32 %v1085_v23, %v985_v33  ;;  %v1616_v24 = vadd.f32 %v1584_v9, %v1515_v60  ;;  %v1585_v56 = vmul.f32 %v9371_v44, %v9863_v59 }
 0x15c   : > { %v1416_v57 = vadd.f32 %v1384_v49, %v1316_v63  ;;  %v986_v7 = vmul.f32 %v1547_v61, %v9307_v52  ;;  %v1685_v41 = vmul.f32 %v9363_v39, %v1649_v19  ;;  %v1086_v37 = vmul.f32 %v1647_v15, %v9312_v53  ;;  %v1651_v49 = vld [vmem:[#allocation2 + $0x129] sm:$0xff] }
 0x15d   : > { %v1853_v13 = vadd.f32 %v9432_v1, %v1815_v55  ;;  %v1217_v43 = vadd.f32 %v1185_v6, %v1117_v40  ;;  %v1716_v20 = vadd.f32 %v1684_v51, %v1616_v24  ;;  %v1785_v28 = vmul.f32 %v9393_v8, %v9869_v16  ;;  %v1650_v8 = vld [vmem:[#allocation2 + $0x121] sm:$0xff] }
 0x15e   : > { %v1516_v17 = vadd.f32 %v1484_v50, %v1416_v57  ;;  %v1385_v35 = vmul.f32 %v1648_v22, %v9348_v26  ;;  %v1118_v61 = vadd.f32 %v1086_v37, %v986_v7  ;;  %v1186_v5 = vmul.f32 %v1747_v2, %v9322_v3  ;;  %v9908_v40 = vld [vmem:[%s11779_s3 + $0x8] ss:$0 sm:$0xff] }
 0x15f   : > { %8094 = vmatmul.mubr.msk.f32.gmra.mrb[48].mxu0 %vm441_vm0, %v1853_v13  ;;  %v1317_v62 = vadd.f32 %v1285_v4, %v1217_v43  ;;  %v1286_v36 = vmul.f32 %v9863_v59, %v9343_v25  ;;  %v1816_v32 = vadd.f32 %v1784_v31, %v1716_v20  ;;  %v1485_v15 = vmul.f32 %v1748_v45, %v9354_v29  ;;  %v9898_v31 = vld [vmem:[#allocation2 + $0x128] sm:$0xff] }
 0x160   : > { %v1617_v42 = vadd.f32 %v1585_v56, %v1516_v17  ;;  %v1586_v0 = vmul.f32 %v9371_v44, %v9880_v58  ;;  %v1218_v12 = vadd.f32 %v1186_v5, %v1118_v61  ;;  %v987_v38 = vmul.f32 %v9846_v30, %v9307_v52  ;;  %v1751_v56 = vld [vmem:[#allocation2 + $0x12a] sm:$0xff] }
 0x161   : > { %v1417_v9 = vadd.f32 %v1385_v35, %v1317_v62  ;;  %v1087_v33 = vmul.f32 %v1648_v22, %v9312_v53  ;;  %v1854_v2 = vadd.f32 %v9432_v1, %v1816_v32  ;;  %v1386_v51 = vmul.f32 %v1649_v19, %v9348_v26  ;;  %v1552_v62 = vld [vmem:[#allocation2 + $0x138] sm:$0xff] }
 0x162   : > { %v1717_v34 = vadd.f32 %v1685_v41, %v1617_v42  ;;  %v1187_v23 = vmul.f32 %v1748_v45, %v9322_v3  ;;  %v1318_v63 = vadd.f32 %v1286_v36, %v1218_v12  ;;  %v1287_v55 = vmul.f32 %v9880_v58, %v9343_v25 }
 0x163   : > { %v1517_v60 = vadd.f32 %v1485_v15, %v1417_v9  ;;  %v1119_v50 = vadd.f32 %v1087_v33, %v987_v38  ;;  %8096 = vmatprep.mubr.msk.f32.mxu0 %vm441_vm0, %v1854_v2  ;;  %v1686_v22 = vmul.f32 %v9363_v39, %v1650_v8  ;;  %v1786_v6 = vmul.f32 %v9908_v40, %v1750_v18  ;;  %v1752_v9 = vld [vmem:[#allocation2 + $0x13a] sm:$0xff] }
 0x164   : > { %v1817_v30 = vadd.f32 %v1785_v28, %v1717_v34  ;;  %v1486_v45 = vmul.f32 %v9869_v16, %v9354_v29  ;;  %v1418_v24 = vadd.f32 %v1386_v51, %v1318_v63  ;;  %v1587_v57 = vmul.f32 %v9371_v44, %v9898_v31 }
 0x165   : > { %v1618_v4 = vadd.f32 %v1586_v0, %v1517_v60  ;;  %v1219_v7 = vadd.f32 %v1187_v23, %v1119_v50  ;;  %v1687_v41 = vmul.f32 %v9363_v39, %v1651_v49  ;;  %v988_v43 = vmul.f32 %v9863_v59, %v9307_v52  ;;  %v1652_v0 = vld [vmem:[#allocation2 + $0x139] sm:$0xff] }
 0x166   : > { %v1855_v13 = vadd.f32 %v9432_v1, %v1817_v30  ;;  %v1088_v37 = vmul.f32 %v1649_v19, %v9312_v53  ;;  %v1518_v17 = vadd.f32 %v1486_v45, %v1418_v24  ;;  %v1387_v35 = vmul.f32 %v1650_v8, %v9348_v26  ;;  %v1553_v60 = vld [vmem:[#allocation2 + $0x140] sm:$0xff] }
 0x167   : > { %v1718_v20 = vadd.f32 %v1686_v22, %v1618_v4  ;;  %v1319_v28 = vadd.f32 %v1287_v55, %v1219_v7  ;;  %v1787_v61 = vmul.f32 %v9908_v40, %v1751_v56  ;;  %v1188_v1 = vmul.f32 %v9869_v16, %v9322_v3  ;;  %v9935_v16 = vld [vmem:[%s11780_s4] ss:$0 sm:$0xff]  ;;  %v1653_v45 = vld [vmem:[#allocation2 + $0x141] sm:$0xff] }
 0x168   : > { %8097 = vmatmul.mubr.msk.f32.gmra.mrb[50].mxu0 %vm441_vm0, %v1855_v13  ;;  %v1120_v5 = vadd.f32 %v1088_v37, %v988_v43  ;;  %v1288_v36 = vmul.f32 %v9898_v31, %v9343_v25  ;;  %v1619_v32 = vadd.f32 %v1587_v57, %v1518_v17  ;;  %v1487_v42 = vmul.f32 %v1750_v18, %v9354_v29 }
 0x169   : > { %v1818_v59 = vadd.f32 %v1786_v6, %v1718_v20  ;;  %v1419_v19 = vadd.f32 %v1387_v35, %v1319_v28  ;;  %v1588_v15 = vmul.f32 %v9371_v44, %v1552_v62  ;;  %v989_v38 = vmul.f32 %v9880_v58, %v9307_v52 }
 0x16a   : > { %v1220_v12 = vadd.f32 %v1188_v1, %v1120_v5  ;;  %v1089_v33 = vmul.f32 %v1650_v8, %v9312_v53  ;;  %v1719_v34 = vadd.f32 %v1687_v41, %v1619_v32  ;;  %v1388_v23 = vmul.f32 %v1651_v49, %v9348_v26  ;;  %v1753_v41 = vld [vmem:[#allocation2 + $0x142] sm:$0xff]  ;;  %v1654_v1 = vld [vmem:[#allocation2 + $0x151] sm:$0xff] }
 0x16b   : > { %v1856_v2 = vadd.f32 %v9935_v16, %v1818_v59  ;;  %v1519_v51 = vadd.f32 %v1487_v42, %v1419_v19  ;;  %v1189_v55 = vmul.f32 %v1750_v18, %v9322_v3  ;;  %v1289_v58 = vmul.f32 %v1552_v62, %v9343_v25 }
 0x16c   : > { %v1320_v63 = vadd.f32 %v1288_v36, %v1220_v12  ;;  %v1121_v50 = vadd.f32 %v1089_v33, %v989_v38  ;;  %v1819_v8 = vadd.f32 %v1787_v61, %v1719_v34  ;;  %v1688_v22 = vmul.f32 %v9363_v39, %v1652_v0  ;;  %v1554_v61 = vld [vmem:[#allocation2 + $0x150] sm:$0xff] }
 0x16d   : > { %8099 = vmatprep.mubr.msk.f32.mxu0 %vm441_vm0, %v1856_v2  ;;  %v1620_v30 = vadd.f32 %v1588_v15, %v1519_v51  ;;  %v1788_v6 = vmul.f32 %v9908_v40, %v1752_v9  ;;  %v1488_v24 = vmul.f32 %v1751_v56, %v9354_v29  ;;  %v1589_v57 = vmul.f32 %v9371_v44, %v1553_v60  ;;  %v9957_v15 = vld [vmem:[#allocation2 + $0x152] sm:$0xff] }
 0x16e   : > { %v1420_v4 = vadd.f32 %v1388_v23, %v1320_v63  ;;  %v1221_v7 = vadd.f32 %v1189_v55, %v1121_v50  ;;  %v1857_v13 = vadd.f32 %v9935_v16, %v1819_v8  ;;  %v990_v43 = vmul.f32 %v9898_v31, %v9307_v52  ;;  %v1555_v23 = vld [vmem:[#allocation2 + $0x158] sm:$0xff] }
 0x16f   : > { %v1720_v18 = vadd.f32 %v1688_v22, %v1620_v30  ;;  %v1090_v37 = vmul.f32 %v1651_v49, %v9312_v53  ;;  %v1689_v17 = vmul.f32 %v9363_v39, %v1653_v45  ;;  %v1389_v35 = vmul.f32 %v1652_v0, %v9348_v26 }
 0x170   : > { %v1520_v20 = vadd.f32 %v1488_v24, %v1420_v4  ;;  %v1321_v28 = vadd.f32 %v1289_v58, %v1221_v7  ;;  %8100 = vmatmul.mubr.msk.f32.gmra.mrb[52].mxu0 %vm441_vm0, %v1857_v13  ;;  %v1190_v59 = vmul.f32 %v1751_v56, %v9322_v3  ;;  %v1290_v32 = vmul.f32 %v1553_v60, %v9343_v25 }
 0x171   : > { %v1820_v5 = vadd.f32 %v1788_v6, %v1720_v18  ;;  %v1122_v36 = vadd.f32 %v1090_v37, %v990_v43  ;;  %v1789_v31 = vmul.f32 %v9908_v40, %v1753_v41  ;;  %v1489_v42 = vmul.f32 %v1752_v9, %v9354_v29  ;;  %v1755_v43 = vld [vmem:[#allocation2 + $0x15a] sm:$0xff] }
 0x172   : > { %v1621_v19 = vadd.f32 %v1589_v57, %v1520_v20  ;;  %v1421_v49 = vadd.f32 %v1389_v35, %v1321_v28  ;;  %v1590_v38 = vmul.f32 %v9371_v44, %v1554_v61  ;;  %v991_v2 = vmul.f32 %v1552_v62, %v9307_v52  ;;  %v1655_v62 = vld [vmem:[#allocation2 + $0x159] sm:$0xff]  ;;  %v9974_v20 = vld [vmem:[#allocation2 + $0x168] sm:$0xff] }
 0x173   : > { %v1858_v12 = vadd.f32 %v9935_v16, %v1820_v5  ;;  %v1222_v33 = vadd.f32 %v1190_v59, %v1122_v36  ;;  %v1690_v56 = vmul.f32 %v9363_v39, %v1654_v1  ;;  %v1091_v63 = vmul.f32 %v1652_v0, %v9312_v53  ;;  %v1656_v59 = vld [vmem:[#allocation2 + $0x169] sm:$0xff] }
 0x174   : > { %v1721_v34 = vadd.f32 %v1689_v17, %v1621_v19  ;;  %v1521_v51 = vadd.f32 %v1489_v42, %v1421_v49  ;;  %v1790_v50 = vmul.f32 %v9908_v40, %v9957_v15  ;;  %v1390_v58 = vmul.f32 %v1653_v45, %v9348_v26 }
 0x175   : > { %8102 = vmatprep.mubr.msk.f32.mxu0 %vm441_vm0, %v1858_v12  ;;  %v1322_v55 = vadd.f32 %v1290_v32, %v1222_v33  ;;  %v1191_v8 = vmul.f32 %v1752_v9, %v9322_v3  ;;  %v1123_v6 = vadd.f32 %v1091_v63, %v991_v2  ;;  %v1291_v4 = vmul.f32 %v1554_v61, %v9343_v25  ;;  %v1756_v32 = vld [vmem:[#allocation2 + $0x16a] sm:$0xff] }
 0x176   : > { %v1821_v30 = vadd.f32 %v1789_v31, %v1721_v34  ;;  %v1622_v22 = vadd.f32 %v1590_v38, %v1521_v51  ;;  %v1490_v57 = vmul.f32 %v1753_v41, %v9354_v29  ;;  %v1591_v0 = vmul.f32 %v9371_v44, %v1555_v23  ;;  %v9991_v63 = vld [vmem:[#allocation2 + $0x170] sm:$0xff] }
 0x177   : > { %v1422_v24 = vadd.f32 %v1390_v58, %v1322_v55  ;;  %v992_v7 = vmul.f32 %v1553_v60, %v9307_v52  ;;  %v1223_v37 = vadd.f32 %v1191_v8, %v1123_v6  ;;  %v1092_v9 = vmul.f32 %v1653_v45, %v9312_v53 }
 0x178   : > { %v1859_v13 = vadd.f32 %v9935_v16, %v1821_v30  ;;  %v1722_v18 = vadd.f32 %v1690_v56, %v1622_v22  ;;  %v1691_v28 = vmul.f32 %v9363_v39, %v1655_v62  ;;  %v1391_v35 = vmul.f32 %v1654_v1, %v9348_v26  ;;  %v1657_v22 = vld [vmem:[#allocation2 + $0x171] sm:$0xff] }
 0x179   : > { %v1522_v17 = vadd.f32 %v1490_v57, %v1422_v24  ;;  %v1192_v5 = vmul.f32 %v1753_v41, %v9322_v3  ;;  %v1323_v60 = vadd.f32 %v1291_v4, %v1223_v37  ;;  %v1124_v19 = vadd.f32 %v1092_v9, %v992_v7 }
 0x17a   : > { %8103 = vmatmul.mubr.msk.f32.gmra.mrb[54].mxu0 %vm441_vm0, %v1859_v13  ;;  %v1822_v36 = vadd.f32 %v1790_v50, %v1722_v18  ;;  %v1292_v31 = vmul.f32 %v1555_v23, %v9343_v25  ;;  %v1791_v42 = vmul.f32 %v9908_v40, %v1755_v43  ;;  %v1491_v45 = vmul.f32 %v9957_v15, %v9354_v29 }
 0x17b   : > { %v1623_v49 = vadd.f32 %v1591_v0, %v1522_v17  ;;  %v1592_v12 = vmul.f32 %v9371_v44, %v9974_v20  ;;  %v1423_v38 = vadd.f32 %v1391_v35, %v1323_v60  ;;  %v1224_v33 = vadd.f32 %v1192_v5, %v1124_v19  ;;  %v1558_v17 = vld [vmem:[#allocation2 + $0x180] sm:$0xff] }
 0x17c   : > { %v1860_v41 = vadd.f32 %v9935_v16, %v1822_v36  ;;  %v993_v2 = vmul.f32 %v1554_v61, %v9307_v52  ;;  %v1692_v51 = vmul.f32 %v9363_v39, %v1656_v59  ;;  %v1792_v56 = vmul.f32 %v9908_v40, %v1756_v32  ;;  %v9997_v61 = vld [vmem:[#allocation2 + $0x172] sm:$0xff] }
 0x17d   : > { %v1723_v34 = vadd.f32 %v1691_v28, %v1623_v49  ;;  %v1093_v50 = vmul.f32 %v1654_v1, %v9312_v53  ;;  %v1523_v55 = vadd.f32 %v1491_v45, %v1423_v38  ;;  %v1324_v58 = vadd.f32 %v1292_v31, %v1224_v33  ;;  %v1758_v38 = vld [vmem:[#allocation2 + $0x182] sm:$0xff] }
 0x17e   : > { %8105 = vmatprep.mubr.msk.f32.mxu0 %vm441_vm0, %v1860_v41  ;;  %v1392_v8 = vmul.f32 %v1655_v62, %v9348_v26  ;;  %v1492_v30 = vmul.f32 %v1755_v43, %v9354_v29  ;;  %v1193_v24 = vmul.f32 %v9957_v15, %v9322_v3  ;;  %v1293_v57 = vmul.f32 %v9974_v20, %v9343_v25  ;;  %v1658_v41 = vld [vmem:[#allocation2 + $0x181] sm:$0xff] }
 0x17f   : > { %v1823_v6 = vadd.f32 %v1791_v42, %v1723_v34  ;;  %v1125_v4 = vadd.f32 %v1093_v50, %v993_v2  ;;  %v1624_v1 = vadd.f32 %v1592_v12, %v1523_v55  ;;  %v1593_v7 = vmul.f32 %v9371_v44, %v9991_v63 }
 0x180   : > { %v1424_v0 = vadd.f32 %v1392_v8, %v1324_v58  ;;  %v994_v13 = vmul.f32 %v1555_v23, %v9307_v52  ;;  %v1693_v37 = vmul.f32 %v9363_v39, %v1657_v22  ;;  %v1094_v28 = vmul.f32 %v1655_v62, %v9312_v53 }
 0x181   : > { %v1861_v18 = vadd.f32 %v9935_v16, %v1823_v6  ;;  %v1225_v9 = vadd.f32 %v1193_v24, %v1125_v4  ;;  %v1724_v35 = vadd.f32 %v1692_v51, %v1624_v1  ;;  %v1793_v5 = vmul.f32 %v9908_v40, %v9997_v61 }
 0x182   : > { %v1524_v15 = vadd.f32 %v1492_v30, %v1424_v0  ;;  %v1393_v36 = vmul.f32 %v1656_v59, %v9348_v26  ;;  %v1126_v19 = vadd.f32 %v1094_v28, %v994_v13  ;;  %v1194_v23 = vmul.f32 %v1755_v43, %v9322_v3  ;;  %v1659_v30 = vld [vmem:[#allocation2 + $0x189] sm:$0xff]  ;;  %v3205_v28 = vld [vmem:[%s11785_s9] sm:$0xff] }
 0x183   : > { %8106 = vmatmul.mubr.msk.f32.gmra.mrb[56].mxu0 %vm441_vm0, %v1861_v18  ;;  %v1325_v60 = vadd.f32 %v1293_v57, %v1225_v9  ;;  %v1294_v31 = vmul.f32 %v9991_v63, %v9343_v25  ;;  %v1824_v49 = vadd.f32 %v1792_v56, %v1724_v35  ;;  %v1493_v62 = vmul.f32 %v1756_v32, %v9354_v29  ;;  %v1559_v56 = vld [vmem:[#allocation2 + $0x188] sm:$0xff] }
 0x184   : > { %v1625_v42 = vadd.f32 %v1593_v7, %v1524_v15  ;;  %v1594_v45 = vmul.f32 %v9371_v44, %v1558_v17  ;;  %v1226_v33 = vadd.f32 %v1194_v23, %v1126_v19  ;;  %v995_v2 = vmul.f32 %v9974_v20, %v9307_v52  ;;  %v3206_v35 = vld [vmem:[%s11785_s9 + $0x8] sm:$0xff] }
 0x185   : > { %v1425_v12 = vadd.f32 %v1393_v36, %v1325_v60  ;;  %v1095_v34 = vmul.f32 %v1656_v59, %v9312_v53  ;;  %v1862_v43 = vadd.f32 %v9935_v16, %v1824_v49  ;;  %v1394_v50 = vmul.f32 %v1657_v22, %v9348_v26  ;;  %v1759_v36 = vld [vmem:[#allocation2 + $0x18a] sm:$0xff] }
 0x186   : > { %v1725_v51 = vadd.f32 %v1693_v37, %v1625_v42  ;;  %v1195_v55 = vmul.f32 %v1756_v32, %v9322_v3  ;;  %v1326_v8 = vadd.f32 %v1294_v31, %v1226_v33  ;;  %v1295_v4 = vmul.f32 %v1558_v17, %v9343_v25  ;;  %v1560_v37 = vld [vmem:[#allocation2 + $0x198] sm:$0xff] }
 0x187   : > { %v1525_v58 = vadd.f32 %v1493_v62, %v1425_v12  ;;  %v1127_v6 = vadd.f32 %v1095_v34, %v995_v2  ;;  %8108 = vmatprep.mubr.msk.f32.mxu0 %vm441_vm0, %v1862_v43  ;;  %v1694_v20 = vmul.f32 %v9363_v39, %v1658_v41  ;;  %v1794_v59 = vmul.f32 %v9908_v40, %v1758_v38  ;;  %v1760_v33 = vld [vmem:[#allocation2 + $0x19a] sm:$0xff] }
 0x188   : > { %v1825_v24 = vadd.f32 %v1793_v5, %v1725_v51  ;;  %v1494_v57 = vmul.f32 %v9997_v61, %v9354_v29  ;;  %v1426_v0 = vadd.f32 %v1394_v50, %v1326_v8  ;;  %v1595_v32 = vmul.f32 %v9371_v44, %v1559_v56 }
 0x189   : > { %v1626_v1 = vadd.f32 %v1594_v45, %v1525_v58  ;;  %v1227_v7 = vadd.f32 %v1195_v55, %v1127_v6  ;;  %v1695_v18 = vmul.f32 %v9363_v39, %v1659_v30  ;;  %v996_v9 = vmul.f32 %v9991_v63, %v9307_v52  ;;  %v3207_v52 = vld [vmem:[%s11785_s9 + $0x10] sm:$0xff]  ;;  %v1661_v6 = vld [vmem:[#allocation2 + $0x1a1] sm:$0xff] }
 0x18a   : > { %v1863_v13 = vadd.f32 %v9935_v16, %v1825_v24  ;;  %v1096_v17 = vmul.f32 %v1657_v22, %v9312_v53  ;;  %v1526_v5 = vadd.f32 %v1494_v57, %v1426_v0  ;;  %v1395_v19 = vmul.f32 %v1658_v41, %v9348_v26  ;;  %v3208_v53 = vld [vmem:[%s11785_s9 + $0x18] sm:$0xff] }
 0x18b   : > { %v1726_v15 = vadd.f32 %v1694_v20, %v1626_v1  ;;  %v1327_v60 = vadd.f32 %v1295_v4, %v1227_v7  ;;  %v1495_v63 = vmul.f32 %v1758_v38, %v9354_v29  ;;  %v1660_v22 = vld [vmem:[#allocation2 + $0x199] sm:$0xff]  ;;  %v1196_v31 = vmul.f32 %v9997_v61, %v9322_v3  ;;  %v1761_v1 = vld [vmem:[#allocation2 + $0x1a2] sm:$0xff] }
 0x18c   : > { %8109 = vmatmul.mubr.msk.f32.gmra.mrb[58].mxu0 %vm441_vm0, %v1863_v13  ;;  %v1128_v23 = vadd.f32 %v1096_v17, %v996_v9  ;;  %v1296_v49 = vmul.f32 %v1559_v56, %v9343_v25  ;;  %v1627_v62 = vadd.f32 %v1595_v32, %v1526_v5  ;;  %v1596_v12 = vmul.f32 %v9371_v44, %v1560_v37  ;;  %v1561_v3 = vld [vmem:[#allocation2 + $0x1a0] sm:$0xff] }
 0x18d   : > { %v1826_v42 = vadd.f32 %v1794_v59, %v1726_v15  ;;  %v1427_v45 = vadd.f32 %v1395_v19, %v1327_v60  ;;  %v1795_v41 = vmul.f32 %v9908_v40, %v1759_v36  ;;  %v8693_v34 = vpack.c.bf16 %v3206_v35, %v3205_v28  ;;  %v10077_v37 = vld [vmem:[%s11782_s6] ss:$0 sm:$0xff]  ;;  %v2367_v15 = vld [vmem:[#allocation2 + $0x1] sm:$0xff]  ;;  %v2368_v60 = vld [vmem:[#allocation2 + $0x9] sm:$0xff] }
 0x18e   : > { %v1228_v2 = vadd.f32 %v1196_v31, %v1128_v23  ;;  %v8697_v43 = vpack.c.bf16 %v3208_v53, %v3207_v52  ;;  %v1727_v51 = vadd.f32 %v1695_v18, %v1627_v62  ;;  %v1696_v55 = vmul.f32 %v9363_v39, %v1660_v22  ;;  %v2267_v35 = vld [vmem:[#allocation2] sm:$0xff]  ;;  %v2468_v31 = vld [vmem:[#allocation2 + $0xa] sm:$0xff] }
 0x18f   : > { %v1864_v38 = vadd.f32 %v9935_v16, %v1826_v42  ;;  %v1527_v50 = vadd.f32 %v1495_v63, %v1427_v45  ;;  %v1396_v25 = vmul.f32 %v1659_v30, %v9348_v26  ;;  %8694 = vmatprep.subr.bf16.mxu0 %v8693_v34  ;;  %v1796_v8 = vmul.f32 %v9908_v40, %v1760_v33 }
 0x190   : > { %v1328_v61 = vadd.f32 %v1296_v49, %v1228_v2  ;;  %v1827_v56 = vadd.f32 %v1795_v41, %v1727_v51  ;;  %8696 = vmatpush3.bf16.msra.mxu0 %v8693_v34  ;;  %v1496_v24 = vmul.f32 %v1759_v36, %v9354_v29  ;;  %v1597_v20 = vmul.f32 %v9371_v44, %v1561_v3  ;;  %v2268_v36 = vld [vmem:[#allocation2 + $0x8] sm:$0xff] }
 0x191   : > { %8111 = vmatprep.mubr.msk.f32.mxu0 %vm441_vm0, %v1864_v38  ;;  %v1628_v58 = vadd.f32 %v1596_v12, %v1527_v50  ;;  %8698 = vmatprep.subr.bf16.mxu0 %v8697_v43  ;;  %v1697_v30 = vmul.f32 %v9363_v39, %v1661_v6  ;;  %v1797_v7 = vmul.f32 %v9908_v40, %v1761_v1  ;;  %v2232_v39 = vld [vmem:[%s11783_s7] sm:$0xff] }
 0x192   : > { %v1428_v4 = vadd.f32 %v1396_v25, %v1328_v61  ;;  %v1865_v59 = vadd.f32 %v9935_v16, %v1827_v56  ;;  %v10081_v9 = vrot.slane %v2232_v39, %v963_v47  ;;  %v10085_v17 = vrot.slane %v2232_v39, %v1063_v48  ;;  %v2467_v48 = vld [vmem:[#allocation2 + $0x2] sm:$0xff] }
 0x193   : > { %v1728_v57 = vadd.f32 %v1696_v55, %v1628_v58  ;;  %v10093_v63 = vrot.slane %v2232_v39, %v1163_v54  ;;  %v10103_v54 = vrot.slane %v2232_v39, %v1263_v10  ;;  %v10110_v55 = vrot.slane %v2232_v39, %v1363_v11 }
 0x194   : > { %v1528_v26 = vadd.f32 %v1496_v24, %v1428_v4  ;;  %8112 = vmatmul.mubr.msk.f32.gmra.mrb[60].mxu0 %vm441_vm0, %v1865_v59  ;;  %v2303_v53 = vmul.f32 %v10081_v9, %v2267_v35  ;;  %v2403_v47 = vmul.f32 %v10085_v17, %v2367_v15  ;;  %v2304_v22 = vmul.f32 %v10081_v9, %v2268_v36 }
 0x195   : > { %v1828_v0 = vadd.f32 %v1796_v8, %v1728_v57  ;;  %8700 = vmatpush3.bf16.msra.mxu0 %v8697_v43  ;;  %v2404_v23 = vmul.f32 %v10085_v17, %v2368_v60  ;;  %v2503_v42 = vmul.f32 %v10093_v63, %v2467_v48  ;;  %v2504_v45 = vmul.f32 %v10093_v63, %v2468_v31 }
 0x196   : > { %v1629_v32 = vadd.f32 %v1597_v20, %v1528_v26  ;;  %v2435_v49 = vadd.f32 %v2403_v47, %v2303_v53  ;;  %v10120_v11 = vrot.slane %v2232_v39, %v1463_v14  ;;  %v10132_v14 = vrot.slane %v2232_v39, %v1664_v21 }
 0x197   : > { %v1866_v13 = vadd.f32 %v9935_v16, %v1828_v0  ;;  %v2436_v62 = vadd.f32 %v2404_v23, %v2304_v22 }
 0x198   : > { %v1729_v29 = vadd.f32 %v1697_v30, %v1629_v32  ;;  %v2535_v41 = vadd.f32 %v2503_v42, %v2435_v49 }
 0x199   : > { %8114 = vmatprep.mubr.msk.f32.mxu0 %vm441_vm0, %v1866_v13  ;;  %v2536_v43 = vadd.f32 %v2504_v45, %v2436_v62  ;;  %v10128_v13 = vrot.slane %v2232_v39, %v1564_v27 }
 0x19a   : > { %v1829_v44 = vadd.f32 %v1797_v7, %v1729_v29 }
 0x19c   : > { %v1867_v18 = vadd.f32 %v9935_v16, %v1829_v44 }
 0x19e   : > { %8115 = vmatmul.mubr.msk.f32.gmra.mrb[62].mxu0 %vm441_vm0, %v1867_v18 }
 0x1df   : > { %v8071_v40 = vpop.f32.mrb[32].mxu0 }
 0x1e0   : > { %v2047_v16 = vadd.f32 %v8071_v40, %v10077_v37  ;;  %v2041_v28 = vpop.f32.mrb[33].mxu0  ;;  %v10139_v40 = vld [vmem:[%s11783_s7 + $0x8] ss:$0 sm:$0xff] }
 0x1e1   : > { %v2042_v5 = vadd.f32 %v10077_v37, %v2041_v28 }
 0x1e2   : > { %v2201_v19 = vmax.f32 %v2047_v16, 0.0 }
 0x1e3   : > { %v2200_v52 = vmax.f32 %v2042_v5, 0.0 }
 0x1e4   : > { %2236 = vst.msk [vmem:[#allocation2 + $0x21] sm:$0xff] %vm441_vm0, %v2201_v19 }
 0x1e5   : > { %2235 = vst.msk [vmem:[#allocation2 + $0x19] sm:$0xff] %vm441_vm0, %v2200_v52 }
 0x1e9   : > { %v8074_v12 = vpop.f32.mrb[34].mxu0 }
 0x1ea   : > { %v2057_v33 = vadd.f32 %v8074_v12, %v10077_v37  ;;  %v2051_v2 = vpop.f32.mrb[35].mxu0 }
 0x1eb   : > { %v2052_v38 = vadd.f32 %v10077_v37, %v2051_v2  ;;  %v2668_v25 = vld [vmem:[#allocation2 + $0x21] sm:$0xff] }
 0x1ec   : > { %v2567_v34 = vld [vmem:[#allocation2 + $0x18] sm:$0xff]  ;;  %v2568_v3 = vld [vmem:[#allocation2 + $0x20] sm:$0xff]  ;;  %v2203_v61 = vmax.f32 %v2057_v33, 0.0  ;;  %v2406_v59 = vmul.f32 %v2668_v25, %v10085_v17  ;;  %v2704_v1 = vmul.f32 %v10110_v55, %v2668_v25 }
 0x1ed   : > { %v2603_v51 = vmul.f32 %v10103_v54, %v2567_v34  ;;  %v2667_v50 = vld [vmem:[#allocation2 + $0x19] sm:$0xff]  ;;  %v2604_v10 = vmul.f32 %v10103_v54, %v2568_v3  ;;  %v2202_v56 = vmax.f32 %v2052_v38, 0.0  ;;  %v2305_v6 = vmul.f32 %v2567_v34, %v10081_v9  ;;  %v2768_v30 = vld [vmem:[#allocation2 + $0x22] sm:$0xff] }
 0x1ee   : > { %2238 = vst.msk [vmem:[#allocation2 + $0x39] sm:$0xff] %vm441_vm0, %v2203_v61  ;;  %v2405_v4 = vmul.f32 %v2667_v50, %v10085_v17  ;;  %v2703_v24 = vmul.f32 %v10110_v55, %v2667_v50  ;;  %v2306_v20 = vmul.f32 %v2568_v3, %v10081_v9  ;;  %v2767_v57 = vld [vmem:[#allocation2 + $0x1a] sm:$0xff]  ;;  %v2804_v44 = vmul.f32 %v10120_v11, %v2768_v30 }
 0x1ef   : > { %v2635_v58 = vadd.f32 %v2603_v51, %v2535_v41  ;;  %v2636_v8 = vadd.f32 %v2604_v10, %v2536_v43  ;;  %2237 = vst.msk [vmem:[#allocation2 + $0x31] sm:$0xff] %vm441_vm0, %v2202_v56  ;;  %v2803_v7 = vmul.f32 %v10120_v11, %v2767_v57  ;;  %v2505_v18 = vmul.f32 %v2767_v57, %v10093_v63  ;;  %v10159_v3 = vld [vmem:[%s11784_s8] ss:$0 sm:$0xff] }
 0x1f0   : > { %v2437_v32 = vadd.f32 %v2405_v4, %v2305_v6  ;;  %v2438_v29 = vadd.f32 %v2406_v59, %v2306_v20  ;;  %v2506_v27 = vmul.f32 %v2768_v30, %v10093_v63 }
 0x1f1   : > { %v2735_v26 = vadd.f32 %v2703_v24, %v2635_v58  ;;  %v2736_v0 = vadd.f32 %v2704_v1, %v2636_v8 }
 0x1f2   : > { %v2537_v39 = vadd.f32 %v2505_v18, %v2437_v32  ;;  %v2538_v48 = vadd.f32 %v2506_v27, %v2438_v29 }
 0x1f3   : > { %v2835_v16 = vadd.f32 %v2803_v7, %v2735_v26  ;;  %v2836_v21 = vadd.f32 %v2804_v44, %v2736_v0 }
 0x1f5   : > { %v2968_v28 = vld [vmem:[#allocation2 + $0x39] sm:$0xff] }
 0x1f6   : > { %v3068_v35 = vld [vmem:[#allocation2 + $0x3a] sm:$0xff]  ;;  %v8077_v15 = vpop.f32.mrb[36].mxu0  ;;  %v2867_v5 = vld [vmem:[#allocation2 + $0x30] sm:$0xff]  ;;  %v3004_v47 = vmul.f32 %v10132_v14, %v2968_v28  ;;  %v2408_v56 = vmul.f32 %v2968_v28, %v10085_v17  ;;  %v2706_v8 = vmul.f32 %v2968_v28, %v10110_v55 }
 0x1f7   : > { %v2967_v46 = vld [vmem:[#allocation2 + $0x31] sm:$0xff]  ;;  %v2067_v36 = vadd.f32 %v8077_v15, %v10077_v37  ;;  %v2061_v60 = vpop.f32.mrb[37].mxu0  ;;  %v2903_v19 = vmul.f32 %v10128_v13, %v2867_v5  ;;  %v3104_v31 = vmul.f32 %v10139_v40, %v3068_v35  ;;  %v2605_v49 = vmul.f32 %v2867_v5, %v10103_v54 }
 0x1f8   : > { %v3067_v52 = vld [vmem:[#allocation2 + $0x32] sm:$0xff]  ;;  %v2062_v22 = vadd.f32 %v10077_v37, %v2061_v60  ;;  %v3003_v45 = vmul.f32 %v10132_v14, %v2967_v46  ;;  %v2307_v51 = vmul.f32 %v2867_v5, %v10081_v9  ;;  %v2407_v50 = vmul.f32 %v2967_v46, %v10085_v17 }
 0x1f9   : > { %v2868_v53 = vld [vmem:[#allocation2 + $0x38] sm:$0xff]  ;;  %v2205_v42 = vmax.f32 %v2067_v36, 0.0  ;;  %v2935_v62 = vadd.f32 %v2903_v19, %v2835_v16  ;;  %v3103_v33 = vmul.f32 %v10139_v40, %v3067_v52  ;;  %v2637_v34 = vadd.f32 %v2605_v49, %v2537_v39 }
 0x1fa   : > { %v2904_v23 = vmul.f32 %v10128_v13, %v2868_v53  ;;  %v2606_v12 = vmul.f32 %v2868_v53, %v10103_v54  ;;  %v2204_v41 = vmax.f32 %v2062_v22, 0.0  ;;  %v2705_v10 = vmul.f32 %v2967_v46, %v10110_v55 }
 0x1fb   : > { %2240 = vst.msk [vmem:[#allocation2 + $0x51] sm:$0xff] %vm441_vm0, %v2205_v42  ;;  %v3035_v43 = vadd.f32 %v3003_v45, %v2935_v62  ;;  %v2308_v25 = vmul.f32 %v2868_v53, %v10081_v9  ;;  %v2439_v59 = vadd.f32 %v2407_v50, %v2307_v51  ;;  %v2805_v26 = vmul.f32 %v3067_v52, %v10120_v11 }
 0x1fc   : > { %v2936_v2 = vadd.f32 %v2904_v23, %v2836_v21  ;;  %v2638_v38 = vadd.f32 %v2606_v12, %v2538_v48  ;;  %2239 = vst.msk [vmem:[#allocation2 + $0x49] sm:$0xff] %vm441_vm0, %v2204_v41  ;;  %v2737_v4 = vadd.f32 %v2705_v10, %v2637_v34  ;;  %v2806_v0 = vmul.f32 %v3068_v35, %v10120_v11 }
 0x1fd   : > { %v3135_v58 = vadd.f32 %v3103_v33, %v3035_v43  ;;  %v2440_v57 = vadd.f32 %v2408_v56, %v2308_v25  ;;  %v2507_v32 = vmul.f32 %v3067_v52, %v10093_v63  ;;  %v2508_v7 = vmul.f32 %v3068_v35, %v10093_v63 }
 0x1fe   : > { %v3036_v61 = vadd.f32 %v3004_v47, %v2936_v2  ;;  %v2738_v20 = vadd.f32 %v2706_v8, %v2638_v38  ;;  %v2837_v18 = vadd.f32 %v2805_v26, %v2737_v4 }
 0x1ff   : > { %v3173_v24 = vadd.f32 %v10159_v3, %v3135_v58  ;;  %v2539_v21 = vadd.f32 %v2507_v32, %v2439_v59  ;;  %v2540_v39 = vadd.f32 %v2508_v7, %v2440_v57 }
 0x200   : > { %v3136_v6 = vadd.f32 %v3104_v31, %v3036_v61  ;;  %v2838_v46 = vadd.f32 %v2806_v0, %v2738_v20 }
 0x201   : > { %v8080_v30 = vpop.f32.mrb[38].mxu0  ;;  %8125 = vmatprep.mubr.msk.f32.mxu0 %vm441_vm0, %v3173_v24 }
 0x202   : > { %v3174_v1 = vadd.f32 %v10159_v3, %v3136_v6  ;;  %v2077_v29 = vadd.f32 %v8080_v30, %v10077_v37  ;;  %v2071_v44 = vpop.f32.mrb[39].mxu0  ;;  %v2970_v16 = vld [vmem:[#allocation2 + $0x51] sm:$0xff] }
 0x203   : > { %v3070_v28 = vld [vmem:[#allocation2 + $0x52] sm:$0xff]  ;;  %v2072_v27 = vadd.f32 %v10077_v37, %v2071_v44  ;;  %v2869_v15 = vld [vmem:[#allocation2 + $0x48] sm:$0xff]  ;;  %v3006_v35 = vmul.f32 %v10132_v14, %v2970_v16  ;;  %v2708_v23 = vmul.f32 %v2970_v16, %v10110_v55  ;;  %v2410_v10 = vmul.f32 %v2970_v16, %v10085_v17 }
 0x204   : > { %8126 = vmatmul.mubr.msk.f32.vlgmr.msra.gmra.mrb[64].mxu0 %vm441_vm0, %v3174_v1  ;;  %v2969_v5 = vld [vmem:[#allocation2 + $0x49] sm:$0xff]  ;;  %v2207_v36 = vmax.f32 %v2077_v29, 0.0  ;;  %v2905_v60 = vmul.f32 %v10128_v13, %v2869_v15  ;;  %v3106_v52 = vmul.f32 %v10139_v40, %v3070_v28  ;;  %v2607_v22 = vmul.f32 %v2869_v15, %v10103_v54 }
 0x205   : > { %v2870_v19 = vld [vmem:[#allocation2 + $0x50] sm:$0xff]  ;;  %v2206_v53 = vmax.f32 %v2072_v27, 0.0  ;;  %v3005_v49 = vmul.f32 %v10132_v14, %v2969_v5  ;;  %v2707_v42 = vmul.f32 %v2969_v5, %v10110_v55  ;;  %v2309_v41 = vmul.f32 %v2869_v15, %v10081_v9 }
 0x206   : > { %v3069_v47 = vld [vmem:[#allocation2 + $0x4a] sm:$0xff]  ;;  %v2906_v48 = vmul.f32 %v10128_v13, %v2870_v19  ;;  %2242 = vst.msk [vmem:[#allocation2 + $0x69] sm:$0xff] %vm441_vm0, %v2207_v36  ;;  %v2937_v31 = vadd.f32 %v2905_v60, %v2837_v18  ;;  %v2608_v62 = vmul.f32 %v2870_v19, %v10103_v54  ;;  %v2639_v12 = vadd.f32 %v2607_v22, %v2539_v21 }
 0x207   : > { %2241 = vst.msk [vmem:[#allocation2 + $0x61] sm:$0xff] %vm441_vm0, %v2206_v53  ;;  %v2409_v33 = vmul.f32 %v2969_v5, %v10085_v17  ;;  %v3105_v34 = vmul.f32 %v10139_v40, %v3069_v47  ;;  %v2310_v38 = vmul.f32 %v2870_v19, %v10081_v9  ;;  %v2807_v58 = vmul.f32 %v3069_v47, %v10120_v11 }
 0x208   : > { %v2938_v45 = vadd.f32 %v2906_v48, %v2838_v46  ;;  %v3037_v2 = vadd.f32 %v3005_v49, %v2937_v31  ;;  %v2640_v43 = vadd.f32 %v2608_v62, %v2540_v39  ;;  %v2739_v50 = vadd.f32 %v2707_v42, %v2639_v12 }
 0x209   : > { %v2441_v61 = vadd.f32 %v2409_v33, %v2309_v41  ;;  %v2808_v20 = vmul.f32 %v3070_v28, %v10120_v11  ;;  %v2509_v59 = vmul.f32 %v3069_v47, %v10093_v63  ;;  %v2442_v26 = vadd.f32 %v2410_v10, %v2310_v38 }
 0x20a   : > { %v3038_v51 = vadd.f32 %v3006_v35, %v2938_v45  ;;  %v8083_v25 = vpop.f32.mrb[40].mxu0  ;;  %v3137_v56 = vadd.f32 %v3105_v34, %v3037_v2  ;;  %v2740_v8 = vadd.f32 %v2708_v23, %v2640_v43  ;;  %v2510_v30 = vmul.f32 %v3070_v28, %v10093_v63 }
 0x20b   : > { %v2087_v6 = vadd.f32 %v8083_v25, %v10077_v37  ;;  %v2081_v4 = vpop.f32.mrb[41].mxu0  ;;  %v2839_v7 = vadd.f32 %v2807_v58, %v2739_v50  ;;  %v2541_v18 = vadd.f32 %v2509_v59, %v2441_v61 }
 0x20c   : > { %v3138_v24 = vadd.f32 %v3106_v52, %v3038_v51  ;;  %v2082_v57 = vadd.f32 %v10077_v37, %v2081_v4  ;;  %v3175_v1 = vadd.f32 %v10159_v3, %v3137_v56  ;;  %v2840_v46 = vadd.f32 %v2808_v20, %v2740_v8 }
 0x20d   : > { %v2209_v0 = vmax.f32 %v2087_v6, 0.0  ;;  %v2972_v29 = vld [vmem:[#allocation2 + $0x69] sm:$0xff]  ;;  %v2542_v21 = vadd.f32 %v2510_v30, %v2442_v26 }
 0x20e   : > { %v3176_v32 = vadd.f32 %v10159_v3, %v3138_v24  ;;  %v3072_v44 = vld [vmem:[#allocation2 + $0x6a] sm:$0xff]  ;;  %v2208_v16 = vmax.f32 %v2082_v57, 0.0  ;;  %8128 = vmatprep.mubr.msk.f32.mxu0 %vm441_vm0, %v3175_v1  ;;  %v2871_v27 = vld [vmem:[#allocation2 + $0x60] sm:$0xff]  ;;  %v3008_v36 = vmul.f32 %v10132_v14, %v2972_v29  ;;  %v2710_v31 = vmul.f32 %v2972_v29, %v10110_v55 }
 0x20f   : > { %v2971_v15 = vld [vmem:[#allocation2 + $0x61] sm:$0xff]  ;;  %2244 = vst.msk [vmem:[#allocation2 + $0x81] sm:$0xff] %vm441_vm0, %v2209_v0  ;;  %v2907_v28 = vmul.f32 %v10128_v13, %v2871_v27  ;;  %v3108_v60 = vmul.f32 %v10139_v40, %v3072_v44  ;;  %v2609_v19 = vmul.f32 %v2871_v27, %v10103_v54  ;;  %v2311_v62 = vmul.f32 %v2871_v27, %v10081_v9 }
 0x210   : > { %v3071_v5 = vld [vmem:[#allocation2 + $0x62] sm:$0xff]  ;;  %8129 = vmatmul.mubr.msk.f32.gmra.mrb[66].mxu0 %vm441_vm0, %v3176_v32  ;;  %2243 = vst.msk [vmem:[#allocation2 + $0x79] sm:$0xff] %vm441_vm0, %v2208_v16  ;;  %v3007_v35 = vmul.f32 %v10132_v14, %v2971_v15  ;;  %v2709_v23 = vmul.f32 %v2971_v15, %v10110_v55  ;;  %v2411_v45 = vmul.f32 %v2971_v15, %v10085_v17 }
 0x211   : > { %v2872_v39 = vld [vmem:[#allocation2 + $0x68] sm:$0xff]  ;;  %v3107_v52 = vmul.f32 %v10139_v40, %v3071_v5  ;;  %v2939_v48 = vadd.f32 %v2907_v28, %v2839_v7  ;;  %v2641_v22 = vadd.f32 %v2609_v19, %v2541_v18  ;;  %v2809_v33 = vmul.f32 %v3071_v5, %v10120_v11 }
 0x212   : > { %v2908_v53 = vmul.f32 %v10128_v13, %v2872_v39  ;;  %v2610_v47 = vmul.f32 %v2872_v39, %v10103_v54  ;;  %v2810_v2 = vmul.f32 %v3072_v44, %v10120_v11  ;;  %v2443_v38 = vadd.f32 %v2411_v45, %v2311_v62 }
 0x213   : > { %v3039_v12 = vadd.f32 %v3007_v35, %v2939_v48  ;;  %v2741_v41 = vadd.f32 %v2709_v23, %v2641_v22  ;;  %v2511_v51 = vmul.f32 %v3071_v5, %v10093_v63  ;;  %v2312_v25 = vmul.f32 %v2872_v39, %v10081_v9 }
 0x214   : > { %v2940_v49 = vadd.f32 %v2908_v53, %v2840_v46  ;;  %v2642_v42 = vadd.f32 %v2610_v47, %v2542_v21  ;;  %v2412_v56 = vmul.f32 %v2972_v29, %v10085_v17  ;;  %v2512_v59 = vmul.f32 %v3072_v44, %v10093_v63 }
 0x215   : > { %v8086_v50 = vpop.f32.mrb[42].mxu0  ;;  %v3139_v61 = vadd.f32 %v3107_v52, %v3039_v12  ;;  %v2841_v10 = vadd.f32 %v2809_v33, %v2741_v41  ;;  %v2543_v7 = vadd.f32 %v2511_v51, %v2443_v38 }
 0x216   : > { %v3040_v34 = vadd.f32 %v3008_v36, %v2940_v49  ;;  %v2742_v43 = vadd.f32 %v2710_v31, %v2642_v42  ;;  %v2097_v58 = vadd.f32 %v8086_v50, %v10077_v37  ;;  %v2091_v8 = vpop.f32.mrb[43].mxu0  ;;  %v2974_v24 = vld [vmem:[#allocation2 + $0x81] sm:$0xff] }
 0x217   : > { %v10221_v20 = vld [vmem:[#allocation2 + $0x82] sm:$0xff]  ;;  %v2092_v57 = vadd.f32 %v10077_v37, %v2091_v8  ;;  %v3177_v1 = vadd.f32 %v10159_v3, %v3139_v61  ;;  %v2873_v26 = vld [vmem:[#allocation2 + $0x78] sm:$0xff]  ;;  %v3010_v32 = vmul.f32 %v10132_v14, %v2974_v24  ;;  %v2712_v22 = vmul.f32 %v2974_v24, %v10110_v55 }
 0x218   : > { %v3140_v6 = vadd.f32 %v3108_v60, %v3040_v34  ;;  %v2842_v4 = vadd.f32 %v2810_v2, %v2742_v43  ;;  %v2973_v30 = vld [vmem:[#allocation2 + $0x79] sm:$0xff]  ;;  %v2211_v29 = vmax.f32 %v2097_v58, 0.0  ;;  %v2909_v16 = vmul.f32 %v10128_v13, %v2873_v26 }
 0x219   : > { %v3073_v0 = vld [vmem:[#allocation2 + $0x7a] sm:$0xff]  ;;  %v3110_v15 = vmul.f32 %v10139_v40, %v10221_v20  ;;  %v2210_v44 = vmax.f32 %v2092_v57, 0.0  ;;  %8131 = vmatprep.mubr.msk.f32.mxu0 %vm441_vm0, %v3177_v1  ;;  %v3009_v5 = vmul.f32 %v10132_v14, %v2973_v30  ;;  %v2611_v21 = vmul.f32 %v2873_v26, %v10103_v54 }
 0x21a   : > { %v3178_v18 = vadd.f32 %v10159_v3, %v3140_v6  ;;  %v2874_v27 = vld [vmem:[#allocation2 + $0x80] sm:$0xff]  ;;  %2246 = vst.msk [vmem:[#allocation2 + $0x99] sm:$0xff] %vm441_vm0, %v2211_v29  ;;  %v2941_v28 = vadd.f32 %v2909_v16, %v2841_v10  ;;  %v3109_v39 = vmul.f32 %v10139_v40, %v3073_v0  ;;  %v2711_v36 = vmul.f32 %v2973_v30, %v10110_v55 }
 0x21b   : > { %v2910_v46 = vmul.f32 %v10128_v13, %v2874_v27  ;;  %v2444_v60 = vadd.f32 %v2412_v56, %v2312_v25  ;;  %2245 = vst.msk [vmem:[#allocation2 + $0x91] sm:$0xff] %vm441_vm0, %v2210_v44  ;;  %v2643_v35 = vadd.f32 %v2611_v21, %v2543_v7  ;;  %v2811_v52 = vmul.f32 %v3073_v0, %v10120_v11 }
 0x21c   : > { %8132 = vmatmul.mubr.msk.f32.gmra.mrb[68].mxu0 %vm441_vm0, %v3178_v18  ;;  %v2612_v53 = vmul.f32 %v2874_v27, %v10103_v54  ;;  %v3041_v47 = vadd.f32 %v3009_v5, %v2941_v28  ;;  %v2313_v23 = vmul.f32 %v2873_v26, %v10081_v9  ;;  %v2812_v42 = vmul.f32 %v10221_v20, %v10120_v11 }
 0x21d   : > { %v2942_v19 = vadd.f32 %v2910_v46, %v2842_v4  ;;  %v2544_v48 = vadd.f32 %v2512_v59, %v2444_v60  ;;  %v2743_v49 = vadd.f32 %v2711_v36, %v2643_v35  ;;  %v2413_v62 = vmul.f32 %v2973_v30, %v10085_v17 }
 0x21e   : > { %v8089_v45 = vpop.f32.mrb[44].mxu0  ;;  %v3141_v12 = vadd.f32 %v3109_v39, %v3041_v47  ;;  %v2314_v33 = vmul.f32 %v2874_v27, %v10081_v9  ;;  %v2414_v2 = vmul.f32 %v2974_v24, %v10085_v17  ;;  %v2513_v50 = vmul.f32 %v3073_v0, %v10093_v63 }
 0x21f   : > { %v3042_v31 = vadd.f32 %v3010_v32, %v2942_v19  ;;  %v2644_v41 = vadd.f32 %v2612_v53, %v2544_v48  ;;  %v2107_v34 = vadd.f32 %v8089_v45, %v10077_v37  ;;  %v2101_v43 = vpop.f32.mrb[45].mxu0  ;;  %v2445_v51 = vadd.f32 %v2413_v62, %v2313_v23 }
 0x220   : > { %v2102_v61 = vadd.f32 %v10077_v37, %v2101_v43  ;;  %v3179_v10 = vadd.f32 %v10159_v3, %v3141_v12  ;;  %v2446_v56 = vadd.f32 %v2414_v2, %v2314_v33  ;;  %v2843_v6 = vadd.f32 %v2811_v52, %v2743_v49 }
 0x221   : > { %v3142_v38 = vadd.f32 %v3110_v15, %v3042_v31  ;;  %v2744_v25 = vadd.f32 %v2712_v22, %v2644_v41  ;;  %v2213_v58 = vmax.f32 %v2107_v34, 0.0  ;;  %v2976_v4 = vld [vmem:[#allocation2 + $0x99] sm:$0xff]  ;;  %v2545_v24 = vadd.f32 %v2513_v50, %v2445_v51 }
 0x222   : > { %v3076_v59 = vld [vmem:[#allocation2 + $0x9a] sm:$0xff]  ;;  %v2212_v57 = vmax.f32 %v2102_v61, 0.0  ;;  %8134 = vmatprep.mubr.msk.f32.mxu0 %vm441_vm0, %v3179_v10  ;;  %v2875_v1 = vld [vmem:[#allocation2 + $0x90] sm:$0xff]  ;;  %v3012_v32 = vmul.f32 %v10132_v14, %v2976_v4  ;;  %v2514_v7 = vmul.f32 %v10221_v20, %v10093_v63  ;;  %v2714_v19 = vmul.f32 %v2976_v4, %v10110_v55 }
 0x223   : > { %v3180_v8 = vadd.f32 %v10159_v3, %v3142_v38  ;;  %v2975_v26 = vld [vmem:[#allocation2 + $0x91] sm:$0xff]  ;;  %v2844_v0 = vadd.f32 %v2812_v42, %v2744_v25  ;;  %2248 = vst.msk [vmem:[#allocation2 + $0xb1] sm:$0xff] %vm441_vm0, %v2213_v58  ;;  %v2911_v29 = vmul.f32 %v10128_v13, %v2875_v1  ;;  %v3112_v27 = vmul.f32 %v10139_v40, %v3076_v59 }
 0x224   : > { %v3075_v30 = vld [vmem:[#allocation2 + $0x92] sm:$0xff]  ;;  %v3011_v18 = vmul.f32 %v10132_v14, %v2975_v26  ;;  %v2613_v15 = vmul.f32 %v2875_v1, %v10103_v54  ;;  %2247 = vst.msk [vmem:[#allocation2 + $0xa9] sm:$0xff] %vm441_vm0, %v2212_v57  ;;  %v2713_v20 = vmul.f32 %v2975_v26, %v10110_v55  ;;  %v2546_v46 = vadd.f32 %v2514_v7, %v2446_v56 }
 0x225   : > { %8135 = vmatmul.mubr.msk.f32.gmra.mrb[70].mxu0 %vm441_vm0, %v3180_v8  ;;  %v2876_v16 = vld [vmem:[#allocation2 + $0x98] sm:$0xff]  ;;  %v3111_v44 = vmul.f32 %v10139_v40, %v3075_v30  ;;  %v2943_v21 = vadd.f32 %v2911_v29, %v2843_v6  ;;  %v2813_v39 = vmul.f32 %v3075_v30, %v10120_v11  ;;  %v2315_v35 = vmul.f32 %v2875_v1, %v10081_v9 }
 0x226   : > { %v2912_v5 = vmul.f32 %v10128_v13, %v2876_v16  ;;  %v2645_v28 = vadd.f32 %v2613_v15, %v2545_v24  ;;  %v2614_v36 = vmul.f32 %v2876_v16, %v10103_v54  ;;  %v2415_v52 = vmul.f32 %v2975_v26, %v10085_v17 }
 0x227   : > { %v3043_v53 = vadd.f32 %v3011_v18, %v2943_v21  ;;  %v2515_v22 = vmul.f32 %v3075_v30, %v10093_v63  ;;  %v2316_v49 = vmul.f32 %v2876_v16, %v10081_v9  ;;  %v2416_v42 = vmul.f32 %v2976_v4, %v10085_v17 }
 0x228   : > { %v2944_v60 = vadd.f32 %v2912_v5, %v2844_v0  ;;  %v2745_v47 = vadd.f32 %v2713_v20, %v2645_v28  ;;  %v2646_v48 = vadd.f32 %v2614_v36, %v2546_v46  ;;  %v2447_v31 = vadd.f32 %v2415_v52, %v2315_v35 }
 0x229   : > { %v8092_v62 = vpop.f32.mrb[46].mxu0  ;;  %v3143_v45 = vadd.f32 %v3111_v44, %v3043_v53  ;;  %v2814_v33 = vmul.f32 %v3076_v59, %v10120_v11  ;;  %v2516_v61 = vmul.f32 %v3076_v59, %v10093_v63  ;;  %v2448_v4 = vadd.f32 %v2416_v42, %v2316_v49 }
 0x22a   : > { %v3044_v23 = vadd.f32 %v3012_v32, %v2944_v60  ;;  %v2845_v12 = vadd.f32 %v2813_v39, %v2745_v47  ;;  %v2746_v41 = vadd.f32 %v2714_v19, %v2646_v48  ;;  %v2117_v2 = vadd.f32 %v8092_v62, %v10077_v37  ;;  %v2111_v34 = vpop.f32.mrb[47].mxu0  ;;  %v2978_v38 = vld [vmem:[#allocation2 + $0xb1] sm:$0xff] }
 0x22b   : > { %v10278_v51 = vld [vmem:[#allocation2 + $0xb2] sm:$0xff]  ;;  %v2547_v50 = vadd.f32 %v2515_v22, %v2447_v31  ;;  %v2112_v10 = vadd.f32 %v10077_v37, %v2111_v34  ;;  %v3181_v25 = vadd.f32 %v10159_v3, %v3143_v45  ;;  %v2877_v56 = vld [vmem:[#allocation2 + $0xa8] sm:$0xff]  ;;  %v3014_v30 = vmul.f32 %v10132_v14, %v2978_v38 }
 0x22c   : > { %v3144_v43 = vadd.f32 %v3112_v27, %v3044_v23  ;;  %v2977_v58 = vld [vmem:[#allocation2 + $0xa9] sm:$0xff]  ;;  %v2846_v6 = vadd.f32 %v2814_v33, %v2746_v41  ;;  %v2215_v24 = vmax.f32 %v2117_v2, 0.0  ;;  %v2913_v1 = vmul.f32 %v10128_v13, %v2877_v56 }
 0x22d   : > { %v3077_v8 = vld [vmem:[#allocation2 + $0xaa] sm:$0xff]  ;;  %v2214_v0 = vmax.f32 %v2112_v10, 0.0  ;;  %8137 = vmatprep.mubr.msk.f32.mxu0 %vm441_vm0, %v3181_v25  ;;  %v3013_v59 = vmul.f32 %v10132_v14, %v2977_v58  ;;  %v3114_v18 = vmul.f32 %v10139_v40, %v10278_v51  ;;  %v2615_v16 = vmul.f32 %v2877_v56, %v10103_v54 }
 0x22e   : > { %v3182_v57 = vadd.f32 %v10159_v3, %v3144_v43  ;;  %v2878_v26 = vld [vmem:[#allocation2 + $0xb0] sm:$0xff]  ;;  %v3113_v32 = vmul.f32 %v10139_v40, %v3077_v8  ;;  %2250 = vst.msk [vmem:[#allocation2 + $0xc9] sm:$0xff] %vm441_vm0, %v2215_v24  ;;  %v2945_v29 = vadd.f32 %v2913_v1, %v2845_v12  ;;  %v2715_v27 = vmul.f32 %v2977_v58, %v10110_v55 }
 0x22f   : > { %v2914_v7 = vmul.f32 %v10128_v13, %v2878_v26  ;;  %2249 = vst.msk [vmem:[#allocation2 + $0xc1] sm:$0xff] %vm441_vm0, %v2214_v0  ;;  %v2815_v44 = vmul.f32 %v3077_v8, %v10120_v11  ;;  %v2548_v5 = vadd.f32 %v2516_v61, %v2448_v4  ;;  %v2616_v20 = vmul.f32 %v2878_v26, %v10103_v54 }
 0x230   : > { %8138 = vmatmul.mubr.msk.f32.gmra.mrb[72].mxu0 %vm441_vm0, %v3182_v57  ;;  %v3045_v46 = vadd.f32 %v3013_v59, %v2945_v29  ;;  %v2647_v21 = vadd.f32 %v2615_v16, %v2547_v50  ;;  %v2716_v28 = vmul.f32 %v2978_v38, %v10110_v55  ;;  %v2317_v39 = vmul.f32 %v2877_v56, %v10081_v9 }
 0x231   : > { %v2946_v15 = vadd.f32 %v2914_v7, %v2846_v6  ;;  %v2648_v60 = vadd.f32 %v2616_v20, %v2548_v5  ;;  %v2417_v19 = vmul.f32 %v2977_v58, %v10085_v17  ;;  %v2517_v35 = vmul.f32 %v3077_v8, %v10093_v63 }
 0x232   : > { %v8095_v52 = vpop.f32.mrb[48].mxu0  ;;  %v3145_v53 = vadd.f32 %v3113_v32, %v3045_v46  ;;  %v2747_v47 = vadd.f32 %v2715_v27, %v2647_v21  ;;  %v2318_v48 = vmul.f32 %v2878_v26, %v10081_v9  ;;  %v2418_v22 = vmul.f32 %v2978_v38, %v10085_v17 }
 0x233   : > { %v3046_v36 = vadd.f32 %v3014_v30, %v2946_v15  ;;  %v2127_v23 = vadd.f32 %v8095_v52, %v10077_v37  ;;  %v2121_v31 = vpop.f32.mrb[49].mxu0  ;;  %v2748_v42 = vadd.f32 %v2716_v28, %v2648_v60  ;;  %v2449_v62 = vadd.f32 %v2417_v19, %v2317_v39 }
 0x234   : > { %v2122_v45 = vadd.f32 %v10077_v37, %v2121_v31  ;;  %v3183_v12 = vadd.f32 %v10159_v3, %v3145_v53  ;;  %v2816_v41 = vmul.f32 %v10278_v51, %v10120_v11  ;;  %v2450_v33 = vadd.f32 %v2418_v22, %v2318_v48 }
 0x235   : > { %v3146_v49 = vadd.f32 %v3114_v18, %v3046_v36  ;;  %v2217_v2 = vmax.f32 %v2127_v23, 0.0  ;;  %v2847_v43 = vadd.f32 %v2815_v44, %v2747_v47  ;;  %v2980_v50 = vld [vmem:[#allocation2 + $0xc9] sm:$0xff]  ;;  %v2549_v61 = vadd.f32 %v2517_v35, %v2449_v62 }
 0x236   : > { %v10311_v38 = vld [vmem:[#allocation2 + $0xca] sm:$0xff]  ;;  %v2216_v10 = vmax.f32 %v2122_v45, 0.0  ;;  %8140 = vmatprep.mubr.msk.f32.mxu0 %vm441_vm0, %v3183_v12  ;;  %v2879_v25 = vld [vmem:[#allocation2 + $0xc0] sm:$0xff]  ;;  %v2848_v8 = vadd.f32 %v2816_v41, %v2748_v42  ;;  %v3016_v6 = vmul.f32 %v10132_v14, %v2980_v50  ;;  %v2518_v4 = vmul.f32 %v10278_v51, %v10093_v63 }
 0x237   : > { %v3184_v34 = vadd.f32 %v10159_v3, %v3146_v49  ;;  %v2979_v56 = vld [vmem:[#allocation2 + $0xc1] sm:$0xff]  ;;  %2252 = vst.msk [vmem:[#allocation2 + $0xe1] sm:$0xff] %vm441_vm0, %v2217_v2  ;;  %v2915_v24 = vmul.f32 %v10128_v13, %v2879_v25  ;;  %v3116_v26 = vmul.f32 %v10139_v40, %v10311_v38  ;;  %v2617_v30 = vmul.f32 %v2879_v25, %v10103_v54 }
 0x238   : > { %v3079_v58 = vld [vmem:[#allocation2 + $0xc2] sm:$0xff]  ;;  %v3015_v57 = vmul.f32 %v10132_v14, %v2979_v56  ;;  %2251 = vst.msk [vmem:[#allocation2 + $0xd9] sm:$0xff] %vm441_vm0, %v2216_v10  ;;  %v2717_v59 = vmul.f32 %v2979_v56, %v10110_v55  ;;  %v2550_v32 = vadd.f32 %v2518_v4, %v2450_v33  ;;  %v2718_v15 = vmul.f32 %v2980_v50, %v10110_v55 }
 0x239   : > { %8141 = vmatmul.mubr.msk.f32.gmra.mrb[74].mxu0 %vm441_vm0, %v3184_v34  ;;  %v2880_v1 = vld [vmem:[#allocation2 + $0xc8] sm:$0xff]  ;;  %v3115_v0 = vmul.f32 %v10139_v40, %v3079_v58  ;;  %v2947_v7 = vadd.f32 %v2915_v24, %v2847_v43  ;;  %v2649_v29 = vadd.f32 %v2617_v30, %v2549_v61  ;;  %v2817_v18 = vmul.f32 %v3079_v58, %v10120_v11 }
 0x23a   : > { %v2916_v51 = vmul.f32 %v10128_v13, %v2880_v1  ;;  %v2618_v16 = vmul.f32 %v2880_v1, %v10103_v54  ;;  %v2319_v44 = vmul.f32 %v2879_v25, %v10081_v9  ;;  %v2419_v5 = vmul.f32 %v2979_v56, %v10085_v17 }
 0x23b   : > { %v8098_v20 = vpop.f32.mrb[50].mxu0  ;;  %v3047_v46 = vadd.f32 %v3015_v57, %v2947_v7  ;;  %v2749_v21 = vadd.f32 %v2717_v59, %v2649_v29  ;;  %v2818_v39 = vmul.f32 %v10311_v38, %v10120_v11  ;;  %v2519_v52 = vmul.f32 %v3079_v58, %v10093_v63 }
 0x23c   : > { %v2948_v27 = vadd.f32 %v2916_v51, %v2848_v8  ;;  %v2650_v28 = vadd.f32 %v2618_v16, %v2550_v32  ;;  %v2137_v36 = vadd.f32 %v8098_v20, %v10077_v37  ;;  %v2131_v60 = vpop.f32.mrb[51].mxu0  ;;  %v2451_v35 = vadd.f32 %v2419_v5, %v2319_v44 }
 0x23d   : > { %v2132_v53 = vadd.f32 %v10077_v37, %v2131_v60  ;;  %v3147_v47 = vadd.f32 %v3115_v0, %v3047_v46  ;;  %v2320_v22 = vmul.f32 %v2880_v1, %v10081_v9  ;;  %v2849_v49 = vadd.f32 %v2817_v18, %v2749_v21 }
 0x23e   : > { %v3048_v19 = vadd.f32 %v3016_v6, %v2948_v27  ;;  %v2750_v48 = vadd.f32 %v2718_v15, %v2650_v28  ;;  %v2219_v23 = vmax.f32 %v2137_v36, 0.0  ;;  %v10339_v42 = vld [vmem:[#allocation2 + $0xe1] sm:$0xff]  ;;  %v2420_v45 = vmul.f32 %v2980_v50, %v10085_v17 }
 0x23f   : > { %v10341_v62 = vld [vmem:[#allocation2 + $0xe2] sm:$0xff]  ;;  %v2218_v12 = vmax.f32 %v2132_v53, 0.0  ;;  %v3185_v41 = vadd.f32 %v10159_v3, %v3147_v47  ;;  %v2881_v33 = vld [vmem:[#allocation2 + $0xd8] sm:$0xff]  ;;  %v2551_v61 = vadd.f32 %v2519_v52, %v2451_v35  ;;  %v3018_v50 = vmul.f32 %v10132_v14, %v10339_v42 }
 0x240   : > { %v3148_v31 = vadd.f32 %v3116_v26, %v3048_v19  ;;  %v2981_v2 = vld [vmem:[#allocation2 + $0xd9] sm:$0xff]  ;;  %v2850_v43 = vadd.f32 %v2818_v39, %v2750_v48  ;;  %2254 = vst.msk [vmem:[#allocation2 + $0xf9] sm:$0xff] %vm441_vm0, %v2219_v23  ;;  %v2917_v25 = vmul.f32 %v10128_v13, %v2881_v33  ;;  %v3118_v4 = vmul.f32 %v10139_v40, %v10341_v62 }
 0x241   : > { %v3081_v34 = vld [vmem:[#allocation2 + $0xda] sm:$0xff]  ;;  %v3017_v56 = vmul.f32 %v10132_v14, %v2981_v2  ;;  %2253 = vst.msk [vmem:[#allocation2 + $0xf1] sm:$0xff] %vm441_vm0, %v2218_v12  ;;  %8143 = vmatprep.mubr.msk.f32.mxu0 %vm441_vm0, %v3185_v41  ;;  %v2619_v24 = vmul.f32 %v2881_v33, %v10103_v54  ;;  %v2719_v1 = vmul.f32 %v2981_v2, %v10110_v55 }
 0x242   : > { %v3186_v10 = vadd.f32 %v10159_v3, %v3148_v31  ;;  %v2882_v58 = vld [vmem:[#allocation2 + $0xe0] sm:$0xff]  ;;  %v3117_v8 = vmul.f32 %v10139_v40, %v3081_v34  ;;  %v2949_v57 = vadd.f32 %v2917_v25, %v2849_v49  ;;  %v2452_v26 = vadd.f32 %v2420_v45, %v2320_v22 }
 0x243   : > { %v2918_v6 = vmul.f32 %v10128_v13, %v2882_v58  ;;  %v2520_v30 = vmul.f32 %v10311_v38, %v10093_v63  ;;  %v2651_v51 = vadd.f32 %v2619_v24, %v2551_v61  ;;  %v2819_v59 = vmul.f32 %v3081_v34, %v10120_v11  ;;  %v8101_v7 = vpop.f32.mrb[52].mxu0 }
 0x244   : > { %8144 = vmatmul.mubr.msk.f32.gmra.mrb[76].mxu0 %vm441_vm0, %v3186_v10  ;;  %v2620_v32 = vmul.f32 %v2882_v58, %v10103_v54  ;;  %v3049_v29 = vadd.f32 %v3017_v56, %v2949_v57  ;;  %v2720_v16 = vmul.f32 %v10339_v42, %v10110_v55  ;;  %v2321_v27 = vmul.f32 %v2881_v33, %v10081_v9  ;;  %v2141_v44 = vpop.f32.mrb[53].mxu0 }
 0x245   : > { %v2950_v0 = vadd.f32 %v2918_v6, %v2850_v43  ;;  %v2552_v18 = vadd.f32 %v2520_v30, %v2452_v26  ;;  %v2147_v15 = vadd.f32 %v8101_v7, %v10077_v37  ;;  %v2751_v20 = vadd.f32 %v2719_v1, %v2651_v51  ;;  %v10409_v51 = vld [vmem:[%s11782_s6] ss:$0 sm:$0xff] }
 0x246   : > { %v2421_v38 = vmul.f32 %v2981_v2, %v10085_v17  ;;  %v2142_v46 = vadd.f32 %v10077_v37, %v2141_v44  ;;  %v3149_v21 = vadd.f32 %v3117_v8, %v3049_v29  ;;  %v2820_v39 = vmul.f32 %v10341_v62, %v10120_v11 }
 0x247   : > { %v3050_v5 = vadd.f32 %v3018_v50, %v2950_v0  ;;  %v2652_v28 = vadd.f32 %v2620_v32, %v2552_v18  ;;  %v2221_v36 = vmax.f32 %v2147_v15, 0.0  ;;  %v2851_v19 = vadd.f32 %v2819_v59, %v2751_v20  ;;  %v10372_v35 = vld [vmem:[#allocation2 + $0xf9] sm:$0xff] }
 0x248   : > { %v10374_v52 = vld [vmem:[#allocation2 + $0xfa] sm:$0xff]  ;;  %v2453_v53 = vadd.f32 %v2421_v38, %v2321_v27  ;;  %v2220_v47 = vmax.f32 %v2142_v46, 0.0  ;;  %v3187_v48 = vadd.f32 %v10159_v3, %v3149_v21  ;;  %v2883_v22 = vld [vmem:[#allocation2 + $0xf0] sm:$0xff]  ;;  %v2521_v49 = vmul.f32 %v3081_v34, %v10093_v63 }
 0x249   : > { %v3150_v60 = vadd.f32 %v3118_v4, %v3050_v5  ;;  %v2983_v23 = vld [vmem:[#allocation2 + $0xf1] sm:$0xff]  ;;  %v2752_v37 = vadd.f32 %v2720_v16, %v2652_v28  ;;  %2256 = vst.msk [vmem:[#allocation2 + $0x111] sm:$0xff] %vm441_vm0, %v2221_v36  ;;  %v2919_v12 = vmul.f32 %v10128_v13, %v2883_v22  ;;  %v3020_v33 = vmul.f32 %v10132_v14, %v10372_v35 }
 0x24a   : > { %v10377_v31 = vld [vmem:[#allocation2 + $0xf2] sm:$0xff]  ;;  %2255 = vst.msk [vmem:[#allocation2 + $0x109] sm:$0xff] %vm441_vm0, %v2220_v47  ;;  %8146 = vmatprep.mubr.msk.f32.mxu0 %vm441_vm0, %v3187_v48  ;;  %v3019_v2 = vmul.f32 %v10132_v14, %v2983_v23  ;;  %v2553_v61 = vadd.f32 %v2521_v49, %v2453_v53  ;;  %v3120_v56 = vmul.f32 %v10139_v40, %v10374_v52 }
 0x24b   : > { %v3188_v45 = vadd.f32 %v10159_v3, %v3150_v60  ;;  %v10383_v41 = vld [vmem:[#allocation2 + $0xf8] sm:$0xff]  ;;  %v2852_v43 = vadd.f32 %v2820_v39, %v2752_v37  ;;  %v2951_v10 = vadd.f32 %v2919_v12, %v2851_v19  ;;  %v3119_v25 = vmul.f32 %v10139_v40, %v10377_v31 }
 0x24c   : > { %v2920_v34 = vmul.f32 %v10128_v13, %v10383_v41  ;;  %v2621_v50 = vmul.f32 %v2883_v22, %v10103_v54  ;;  %v2721_v6 = vmul.f32 %v2983_v23, %v10110_v55  ;;  %v2322_v4 = vmul.f32 %v2882_v58, %v10081_v9 }
 0x24d   : > { %8147 = vmatmul.mubr.msk.f32.gmra.mrb[78].mxu0 %vm441_vm0, %v3188_v45  ;;  %v2422_v24 = vmul.f32 %v10339_v42, %v10085_v17  ;;  %v8104_v57 = vpop.f32.mrb[54].mxu0  ;;  %v3051_v1 = vadd.f32 %v3019_v2, %v2951_v10  ;;  %v2821_v30 = vmul.f32 %v10377_v31, %v10120_v11  ;;  %v2522_v0 = vmul.f32 %v10341_v62, %v10093_v63 }
 0x24e   : > { %v2952_v8 = vadd.f32 %v2920_v34, %v2852_v43  ;;  %v2653_v26 = vadd.f32 %v2621_v50, %v2553_v61  ;;  %v2157_v59 = vadd.f32 %v10409_v51, %v8104_v57  ;;  %v2151_v58 = vpop.f32.mrb[55].mxu0  ;;  %v2622_v42 = vmul.f32 %v10383_v41, %v10103_v54 }
 0x24f   : > { %v2454_v7 = vadd.f32 %v2422_v24, %v2322_v4  ;;  %v2152_v29 = vadd.f32 %v10409_v51, %v2151_v58  ;;  %v3151_v18 = vadd.f32 %v3119_v25, %v3051_v1  ;;  %v2323_v27 = vmul.f32 %v2883_v22, %v10081_v9 }
 0x250   : > { %v3052_v32 = vadd.f32 %v3020_v33, %v2952_v8  ;;  %v2753_v16 = vadd.f32 %v2721_v6, %v2653_v26  ;;  %v2223_v62 = vmax.f32 %v2157_v59, 0.0  ;;  %v10416_v5 = vld [vmem:[#allocation2 + $0x111] sm:$0xff]  ;;  %v2423_v20 = vmul.f32 %v2983_v23, %v10085_v17 }
 0x251   : > { %v2554_v44 = vadd.f32 %v2522_v0, %v2454_v7  ;;  %v2222_v38 = vmax.f32 %v2152_v29, 0.0  ;;  %v3189_v46 = vadd.f32 %v10159_v3, %v3151_v18  ;;  %v2885_v28 = vld [vmem:[#allocation2 + $0x108] sm:$0xff]  ;;  %v2722_v53 = vmul.f32 %v10372_v35, %v10110_v55  ;;  %v10431_v48 = vld [vmem:[#allocation2 + $0x110] sm:$0xff] }
 0x252   : > { %v3152_v15 = vadd.f32 %v3120_v56, %v3052_v32  ;;  %v2853_v21 = vadd.f32 %v2821_v30, %v2753_v16  ;;  %v10420_v39 = vld [vmem:[#allocation2 + $0x109] sm:$0xff]  ;;  %2258 = vst.msk [vmem:[#allocation2 + $0x129] sm:$0xff] %vm441_vm0, %v2223_v62  ;;  %v2921_v19 = vmul.f32 %v10128_v13, %v2885_v28  ;;  %v2822_v47 = vmul.f32 %v10374_v52, %v10120_v11  ;;  %v10439_v49 = vld [vmem:[#allocation2 + $0x112] sm:$0xff] }
 0x253   : > { %v10422_v36 = vld [vmem:[#allocation2 + $0x10a] sm:$0xff]  ;;  %2257 = vst.msk [vmem:[#allocation2 + $0x121] sm:$0xff] %vm441_vm0, %v2222_v38  ;;  %8149 = vmatprep.mubr.msk.f32.mxu0 %vm441_vm0, %v3189_v46  ;;  %v3021_v22 = vmul.f32 %v10132_v14, %v10420_v39  ;;  %v2654_v23 = vadd.f32 %v2622_v42, %v2554_v44  ;;  %v3022_v37 = vmul.f32 %v10132_v14, %v10416_v5 }
 0x254   : > { %v3190_v60 = vadd.f32 %v10159_v3, %v3152_v15  ;;  %v2455_v45 = vadd.f32 %v2423_v20, %v2323_v27  ;;  %v2953_v12 = vadd.f32 %v2921_v19, %v2853_v21  ;;  %v3121_v33 = vmul.f32 %v10139_v40, %v10422_v36 }
 0x255   : > { %v2523_v2 = vmul.f32 %v10377_v31, %v10093_v63  ;;  %v2623_v43 = vmul.f32 %v2885_v28, %v10103_v54  ;;  %v2754_v34 = vadd.f32 %v2722_v53, %v2654_v23  ;;  %v2922_v61 = vmul.f32 %v10128_v13, %v10431_v48 }
 0x256   : > { %8150 = vmatmul.mubr.msk.f32.gmra.mrb[80].mxu0 %vm441_vm0, %v3190_v60  ;;  %v2324_v10 = vmul.f32 %v10383_v41, %v10081_v9  ;;  %v2424_v25 = vmul.f32 %v10372_v35, %v10085_v17  ;;  %v8107_v56 = vpop.f32.mrb[56].mxu0  ;;  %v3053_v50 = vadd.f32 %v3021_v22, %v2953_v12  ;;  %v3122_v8 = vmul.f32 %v10139_v40, %v10439_v49  ;;  %v10493_v22 = vld [vmem:[%s11783_s7 + $0x8] ss:$0 sm:$0xff] }
 0x257   : > { %v2555_v6 = vadd.f32 %v2523_v2, %v2455_v45  ;;  %v2723_v31 = vmul.f32 %v10420_v39, %v10110_v55  ;;  %v2167_v4 = vadd.f32 %v10409_v51, %v8107_v56  ;;  %v2161_v24 = vpop.f32.mrb[57].mxu0  ;;  %v2854_v57 = vadd.f32 %v2822_v47, %v2754_v34 }
 0x258   : > { %v2456_v1 = vadd.f32 %v2424_v25, %v2324_v10  ;;  %v2524_v41 = vmul.f32 %v10374_v52, %v10093_v63  ;;  %v2162_v26 = vadd.f32 %v10409_v51, %v2161_v24  ;;  %v3153_v35 = vadd.f32 %v3121_v33, %v3053_v50 }
 0x259   : > { %v2655_v30 = vadd.f32 %v2623_v43, %v2555_v6  ;;  %v2624_v0 = vmul.f32 %v10431_v48, %v10103_v54  ;;  %v2225_v40 = vmax.f32 %v2167_v4, 0.0  ;;  %v2954_v59 = vadd.f32 %v2922_v61, %v2854_v57  ;;  %v10465_v7 = vld [vmem:[#allocation2 + $0x129] sm:$0xff] }
 0x25a   : > { %v2823_v58 = vmul.f32 %v10422_v36, %v10120_v11  ;;  %v2556_v32 = vadd.f32 %v2524_v41, %v2456_v1  ;;  %v2224_v42 = vmax.f32 %v2162_v26, 0.0  ;;  %v3191_v29 = vadd.f32 %v10159_v3, %v3153_v35  ;;  %v10468_v52 = vld [vmem:[#allocation2 + $0x120] sm:$0xff]  ;;  %v10479_v20 = vld [vmem:[#allocation2 + $0x128] sm:$0xff] }
 0x25b   : > { %v2755_v18 = vadd.f32 %v2723_v31, %v2655_v30  ;;  %v10470_v16 = vld [vmem:[#allocation2 + $0x121] sm:$0xff]  ;;  %v2724_v62 = vmul.f32 %v10416_v5, %v10110_v55  ;;  %2260 = vst.msk [vmem:[#allocation2 + $0x141] sm:$0xff] %vm441_vm0, %v2225_v40  ;;  %v3054_v15 = vadd.f32 %v3022_v37, %v2954_v59  ;;  %v2824_v44 = vmul.f32 %v10439_v49, %v10120_v11  ;;  %v10506_v61 = vld [vmem:[#allocation2 + $0x12a] sm:$0xff]  ;;  %v10533_v59 = vld [vmem:[%s11784_s8] ss:$0 sm:$0xff] }
 0x25c   : > { %v10472_v27 = vld [vmem:[#allocation2 + $0x122] sm:$0xff]  ;;  %v3024_v38 = vmul.f32 %v10132_v14, %v10465_v7  ;;  %v2325_v46 = vmul.f32 %v2885_v28, %v10081_v9  ;;  %2259 = vst.msk [vmem:[#allocation2 + $0x139] sm:$0xff] %vm441_vm0, %v2224_v42  ;;  %8152 = vmatprep.mubr.msk.f32.mxu0 %vm441_vm0, %v3191_v29  ;;  %v2923_v60 = vmul.f32 %v10128_v13, %v10468_v52 }
 0x25d   : > { %v2855_v21 = vadd.f32 %v2823_v58, %v2755_v18  ;;  %v3023_v19 = vmul.f32 %v10132_v14, %v10470_v16  ;;  %v2656_v53 = vadd.f32 %v2624_v0, %v2556_v32  ;;  %v3154_v47 = vadd.f32 %v3122_v8, %v3054_v15 }
 0x25e   : > { %v3123_v28 = vmul.f32 %v10493_v22, %v10472_v27  ;;  %v2924_v23 = vmul.f32 %v10128_v13, %v10479_v20  ;;  %v2425_v37 = vmul.f32 %v10420_v39, %v10085_v17  ;;  %v2525_v33 = vmul.f32 %v10422_v36, %v10093_v63 }
 0x25f   : > { %v2955_v45 = vadd.f32 %v2923_v60, %v2855_v21  ;;  %v2756_v12 = vadd.f32 %v2724_v62, %v2656_v53  ;;  %v2625_v2 = vmul.f32 %v10468_v52, %v10103_v54  ;;  %v8110_v43 = vpop.f32.mrb[58].mxu0  ;;  %v3192_v34 = vadd.f32 %v10159_v3, %v3154_v47 }
 0x260   : > { %v2457_v10 = vadd.f32 %v2425_v37, %v2325_v46  ;;  %v2326_v25 = vmul.f32 %v10431_v48, %v10081_v9  ;;  %v2426_v39 = vmul.f32 %v10416_v5, %v10085_v17  ;;  %v2177_v56 = vadd.f32 %v10409_v51, %v8110_v43  ;;  %v2171_v50 = vpop.f32.mrb[59].mxu0 }
 0x261   : > { %v3055_v8 = vadd.f32 %v3023_v19, %v2955_v45  ;;  %v2856_v36 = vadd.f32 %v2824_v44, %v2756_v12  ;;  %v2526_v6 = vmul.f32 %v10439_v49, %v10093_v63  ;;  %v2172_v31 = vadd.f32 %v10409_v51, %v2171_v50  ;;  %8153 = vmatmul.mubr.msk.f32.gmra.mrb[82].mxu0 %vm441_vm0, %v3192_v34 }
 0x262   : > { %v2557_v3 = vadd.f32 %v2525_v33, %v2457_v10  ;;  %v2458_v4 = vadd.f32 %v2426_v39, %v2326_v25  ;;  %v2626_v48 = vmul.f32 %v10479_v20, %v10103_v54  ;;  %v2227_v24 = vmax.f32 %v2177_v56, 0.0  ;;  %v10547_v21 = vld [vmem:[#allocation2 + $0x141] sm:$0xff] }
 0x263   : > { %v3155_v57 = vadd.f32 %v3123_v28, %v3055_v8  ;;  %v2956_v5 = vadd.f32 %v2924_v23, %v2856_v36  ;;  %v3124_v1 = vmul.f32 %v10493_v22, %v10506_v61  ;;  %v2226_v41 = vmax.f32 %v2172_v31, 0.0  ;;  %v10523_v35 = vld [vmem:[#allocation2 + $0x138] sm:$0xff]  ;;  %v10540_v18 = vld [vmem:[#allocation2 + $0x140] sm:$0xff] }
 0x264   : > { %v2657_v26 = vadd.f32 %v2625_v2, %v2557_v3  ;;  %v2725_v49 = vmul.f32 %v10470_v16, %v10110_v55  ;;  %v10525_v30 = vld [vmem:[#allocation2 + $0x139] sm:$0xff]  ;;  %v2558_v40 = vadd.f32 %v2526_v6, %v2458_v4  ;;  %2262 = vst.msk [vmem:[#allocation2 + $0x159] sm:$0xff] %vm441_vm0, %v2227_v24  ;;  %v2825_v42 = vmul.f32 %v10472_v27, %v10120_v11  ;;  %v10558_v37 = vld [vmem:[#allocation2 + $0x142] sm:$0xff] }
 0x265   : > { %v10527_v0 = vld [vmem:[#allocation2 + $0x13a] sm:$0xff]  ;;  %v3193_v58 = vadd.f32 %v10533_v59, %v3155_v57  ;;  %v3056_v32 = vadd.f32 %v3024_v38, %v2956_v5  ;;  %v2726_v29 = vmul.f32 %v10465_v7, %v10110_v55  ;;  %2261 = vst.msk [vmem:[#allocation2 + $0x151] sm:$0xff] %vm441_vm0, %v2226_v41  ;;  %v2925_v15 = vmul.f32 %v10128_v13, %v10523_v35 }
 0x266   : > { %v2757_v62 = vadd.f32 %v2725_v49, %v2657_v26  ;;  %v2658_v44 = vadd.f32 %v2626_v48, %v2558_v40  ;;  %v2826_v46 = vmul.f32 %v10506_v61, %v10120_v11  ;;  %v3025_v60 = vmul.f32 %v10132_v14, %v10525_v30  ;;  %v2897_v4 = vld [vmem:[#allocation2 + $0x198] sm:$0xff] }
 0x267   : > { %8155 = vmatprep.mubr.msk.f32.mxu0 %vm441_vm0, %v3193_v58  ;;  %v3156_v38 = vadd.f32 %v3124_v1, %v3056_v32  ;;  %v3125_v19 = vmul.f32 %v10493_v22, %v10527_v0  ;;  %v2327_v53 = vmul.f32 %v10468_v52, %v10081_v9  ;;  %v2926_v23 = vmul.f32 %v10128_v13, %v10540_v18  ;;  %v8113_v12 = vpop.f32.mrb[60].mxu0 }
 0x268   : > { %v2857_v47 = vadd.f32 %v2825_v42, %v2757_v62  ;;  %v2758_v28 = vadd.f32 %v2726_v29, %v2658_v44  ;;  %v2427_v45 = vmul.f32 %v10470_v16, %v10085_v17  ;;  %v3026_v2 = vmul.f32 %v10132_v14, %v10547_v21  ;;  %v2181_v10 = vpop.f32.mrb[61].mxu0 }
 0x269   : > { %v3194_v33 = vadd.f32 %v10533_v59, %v3156_v38  ;;  %v2527_v43 = vmul.f32 %v10472_v27, %v10093_v63  ;;  %v2627_v52 = vmul.f32 %v10523_v35, %v10103_v54  ;;  %v2187_v34 = vadd.f32 %v10409_v51, %v8113_v12 }
 0x26a   : > { %v2957_v25 = vadd.f32 %v2925_v15, %v2857_v47  ;;  %v2858_v39 = vadd.f32 %v2826_v46, %v2758_v28  ;;  %v2459_v56 = vadd.f32 %v2427_v45, %v2327_v53  ;;  %v2182_v16 = vadd.f32 %v10409_v51, %v2181_v10 }
 0x26b   : > { %8156 = vmatmul.mubr.msk.f32.gmra.mrb[84].mxu0 %vm441_vm0, %v3194_v33  ;;  %v3126_v50 = vmul.f32 %v10493_v22, %v10558_v37  ;;  %v2328_v8 = vmul.f32 %v10479_v20, %v10081_v9  ;;  %v2428_v27 = vmul.f32 %v10465_v7, %v10085_v17  ;;  %v2229_v36 = vmax.f32 %v2187_v34, 0.0  ;;  %v2992_v10 = vld [vmem:[#allocation2 + $0x159] sm:$0xff] }
 0x26c   : > { %v3057_v6 = vadd.f32 %v3025_v60, %v2957_v25  ;;  %v2958_v31 = vadd.f32 %v2926_v23, %v2858_v39  ;;  %v2559_v3 = vadd.f32 %v2527_v43, %v2459_v56  ;;  %v2228_v48 = vmax.f32 %v2182_v16, 0.0  ;;  %v10585_v26 = vld [vmem:[#allocation2 + $0x150] sm:$0xff]  ;;  %v10598_v15 = vld [vmem:[#allocation2 + $0x158] sm:$0xff] }
 0x26d   : > { %v2460_v24 = vadd.f32 %v2428_v27, %v2328_v8  ;;  %v2528_v57 = vmul.f32 %v10506_v61, %v10093_v63  ;;  %v2628_v5 = vmul.f32 %v10540_v18, %v10103_v54  ;;  %2264 = vst.msk [vmem:[#allocation2 + $0x171] sm:$0xff] %vm441_vm0, %v2229_v36  ;;  %v2727_v7 = vmul.f32 %v10525_v30, %v10110_v55  ;;  %v10587_v49 = vld [vmem:[#allocation2 + $0x151] sm:$0xff]  ;;  %v3092_v27 = vld [vmem:[#allocation2 + $0x15a] sm:$0xff] }
 0x26e   : > { %v3157_v1 = vadd.f32 %v3125_v19, %v3057_v6  ;;  %v3058_v20 = vadd.f32 %v3026_v2, %v2958_v31  ;;  %v2659_v41 = vadd.f32 %v2627_v52, %v2559_v3  ;;  %2263 = vst.msk [vmem:[#allocation2 + $0x169] sm:$0xff] %vm441_vm0, %v2228_v48  ;;  %v2827_v61 = vmul.f32 %v10527_v0, %v10120_v11  ;;  %v3091_v33 = vld [vmem:[#allocation2 + $0x152] sm:$0xff] }
 0x26f   : > { %v2560_v40 = vadd.f32 %v2528_v57, %v2460_v24  ;;  %v10593_v58 = vmul.f32 %v10128_v13, %v2897_v4  ;;  %v2728_v62 = vmul.f32 %v10547_v21, %v10110_v55  ;;  %v2927_v44 = vmul.f32 %v10128_v13, %v10585_v26 }
 0x270   : > { %v3195_v32 = vadd.f32 %v10533_v59, %v3157_v1  ;;  %v3158_v42 = vadd.f32 %v3126_v50, %v3058_v20  ;;  %v2759_v29 = vadd.f32 %v2727_v7, %v2659_v41  ;;  %v3027_v46 = vmul.f32 %v10132_v14, %v10587_v49 }
 0x271   : > { %v2660_v38 = vadd.f32 %v2628_v5, %v2560_v40  ;;  %v2329_v60 = vmul.f32 %v10523_v35, %v10081_v9  ;;  %v8116_v19 = vpop.f32.mrb[62].mxu0  ;;  %v2828_v28 = vmul.f32 %v10558_v37, %v10120_v11  ;;  %v2429_v23 = vmul.f32 %v10525_v30, %v10085_v17 }
 0x272   : > { %8158 = vmatprep.mubr.msk.f32.mxu0 %vm441_vm0, %v3195_v32  ;;  %v3196_v53 = vadd.f32 %v10533_v59, %v3158_v42  ;;  %v2859_v47 = vadd.f32 %v2827_v61, %v2759_v29  ;;  %v2197_v45 = vadd.f32 %v10409_v51, %v8116_v19  ;;  %v2191_v12 = vpop.f32.mrb[63].mxu0  ;;  %v2928_v35 = vmul.f32 %v10128_v13, %v10598_v15 }
 0x273   : > { %v2760_v2 = vadd.f32 %v2728_v62, %v2660_v38  ;;  %v2529_v43 = vmul.f32 %v10527_v0, %v10093_v63  ;;  %v2192_v52 = vadd.f32 %v10409_v51, %v2191_v12  ;;  %v2461_v25 = vadd.f32 %v2429_v23, %v2329_v60 }
 0x274   : > { %8159 = vmatmul.mubr.msk.f32.gmra.mrb[86].mxu0 %vm441_vm0, %v3196_v53  ;;  %v2959_v34 = vadd.f32 %v2927_v44, %v2859_v47  ;;  %v2629_v30 = vmul.f32 %v10585_v26, %v10103_v54  ;;  %v2231_v39 = vmax.f32 %v2197_v45, 0.0  ;;  %v2330_v16 = vmul.f32 %v10540_v18, %v10081_v9  ;;  %v3094_v23 = vld [vmem:[#allocation2 + $0x172] sm:$0xff] }
 0x275   : > { %v2860_v56 = vadd.f32 %v2828_v28, %v2760_v2  ;;  %v2430_v50 = vmul.f32 %v10547_v21, %v10085_v17  ;;  %v2230_v8 = vmax.f32 %v2192_v52, 0.0  ;;  %v3127_v51 = vmul.f32 %v10493_v22, %v3091_v33  ;;  %v10626_v6 = vld [vmem:[#allocation2 + $0x168] sm:$0xff]  ;;  %v2894_v47 = vld [vmem:[#allocation2 + $0x170] sm:$0xff] }
 0x276   : > { %v3059_v0 = vadd.f32 %v3027_v46, %v2959_v34  ;;  %v2561_v36 = vadd.f32 %v2529_v43, %v2461_v25  ;;  %2266 = vst.msk [vmem:[#allocation2 + $0x189] sm:$0xff] %vm441_vm0, %v2231_v39  ;;  %v3028_v3 = vmul.f32 %v10132_v14, %v2992_v10  ;;  %v2729_v4 = vmul.f32 %v10587_v49, %v10110_v55  ;;  %v10632_v18 = vld [vmem:[#allocation2 + $0x169] sm:$0xff]  ;;  %v2994_v28 = vld [vmem:[#allocation2 + $0x171] sm:$0xff] }
 0x277   : > { %v2960_v31 = vadd.f32 %v2928_v35, %v2860_v56  ;;  %v2530_v21 = vmul.f32 %v10558_v37, %v10093_v63  ;;  %2265 = vst.msk [vmem:[#allocation2 + $0x181] sm:$0xff] %vm441_vm0, %v2230_v8  ;;  %v10637_v57 = vld [vmem:[#allocation2 + $0x16a] sm:$0xff]  ;;  %v2462_v5 = vadd.f32 %v2430_v50, %v2330_v16  ;;  %v2630_v1 = vmul.f32 %v10598_v15, %v10103_v54 }
 0x278   : > { %v3159_v48 = vadd.f32 %v3127_v51, %v3059_v0  ;;  %v2661_v24 = vadd.f32 %v2629_v30, %v2561_v36  ;;  %v3128_v41 = vmul.f32 %v10493_v22, %v3092_v27  ;;  %v2829_v7 = vmul.f32 %v3091_v33, %v10120_v11 }
 0x279   : > { %v3060_v20 = vadd.f32 %v3028_v3, %v2960_v31  ;;  %v2929_v61 = vmul.f32 %v10128_v13, %v10626_v6  ;;  %v3029_v32 = vmul.f32 %v10132_v14, %v10632_v18  ;;  %v2562_v42 = vadd.f32 %v2530_v21, %v2462_v5 }
 0x27a   : > { %v3197_v37 = vadd.f32 %v10533_v59, %v3159_v48  ;;  %v2761_v40 = vadd.f32 %v2729_v4, %v2661_v24  ;;  %v3129_v62 = vmul.f32 %v10493_v22, %v10637_v57  ;;  %v2331_v44 = vmul.f32 %v10585_v26, %v10081_v9 }
 0x27b   : > { %v3160_v29 = vadd.f32 %v3128_v41, %v3060_v20  ;;  %v2431_v46 = vmul.f32 %v10587_v49, %v10085_v17  ;;  %v2662_v60 = vadd.f32 %v2630_v1, %v2562_v42  ;;  %v2730_v19 = vmul.f32 %v2992_v10, %v10110_v55 }
 0x27c   : > { %8161 = vmatprep.mubr.msk.f32.mxu0 %vm441_vm0, %v3197_v37  ;;  %v2861_v38 = vadd.f32 %v2829_v7, %v2761_v40  ;;  %v2830_v53 = vmul.f32 %v3092_v27, %v10120_v11  ;;  %v2531_v2 = vmul.f32 %v3091_v33, %v10093_v63  ;;  %v2631_v26 = vmul.f32 %v10626_v6, %v10103_v54 }
 0x27d   : > { %v3198_v45 = vadd.f32 %v10533_v59, %v3160_v29  ;;  %v2463_v12 = vadd.f32 %v2431_v46, %v2331_v44  ;;  %v2762_v35 = vadd.f32 %v2730_v19, %v2662_v60  ;;  %v2332_v43 = vmul.f32 %v10598_v15, %v10081_v9 }
 0x27e   : > { %v2961_v49 = vadd.f32 %v2929_v61, %v2861_v38  ;;  %v2432_v52 = vmul.f32 %v2992_v10, %v10085_v17  ;;  %v2930_v34 = vmul.f32 %v10128_v13, %v2894_v47  ;;  %v3030_v25 = vmul.f32 %v10132_v14, %v2994_v28  ;;  %v2895_v33 = vld [vmem:[#allocation2 + $0x180] sm:$0xff]  ;;  %v2896_v24 = vld [vmem:[#allocation2 + $0x188] sm:$0xff] }
 0x27f   : > { %8162 = vmatmul.mubr.msk.f32.gmra.mrb[88].mxu0 %vm441_vm0, %v3198_v45  ;;  %v3130_v30 = vmul.f32 %v10493_v22, %v3094_v23  ;;  %v2563_v39 = vadd.f32 %v2531_v2, %v2463_v12  ;;  %v2862_v16 = vadd.f32 %v2830_v53, %v2762_v35  ;;  %v2731_v50 = vmul.f32 %v10632_v18, %v10110_v55  ;;  %v2995_v8 = vld [vmem:[#allocation2 + $0x181] sm:$0xff]  ;;  %v3096_v53 = vld [vmem:[#allocation2 + $0x18a] sm:$0xff] }
 0x280   : > { %v3061_v56 = vadd.f32 %v3029_v32, %v2961_v49  ;;  %v2831_v15 = vmul.f32 %v10637_v57, %v10120_v11  ;;  %v3095_v0 = vld [vmem:[#allocation2 + $0x182] sm:$0xff]  ;;  %v2464_v51 = vadd.f32 %v2432_v52, %v2332_v43  ;;  %v2532_v36 = vmul.f32 %v3092_v27, %v10093_v63  ;;  %v3576_v52 = vld [vmem:[%s11787_s11 + $0x38] sm:$0xff] }
 0x281   : > { %v2663_v10 = vadd.f32 %v2631_v26, %v2563_v39  ;;  %v2632_v31 = vmul.f32 %v2894_v47, %v10103_v54  ;;  %v2962_v4 = vadd.f32 %v2930_v34, %v2862_v16  ;;  %v2931_v21 = vmul.f32 %v10128_v13, %v2895_v33  ;;  %v3574_v35 = vld [vmem:[%s11787_s11 + $0x28] sm:$0xff]  ;;  %v3583_v39 = vld [vmem:[%s11787_s11 + $0x70] sm:$0xff] }
 0x282   : > { %v3161_v3 = vadd.f32 %v3129_v62, %v3061_v56  ;;  %v2732_v48 = vmul.f32 %v2994_v28, %v10110_v55  ;;  %v3031_v1 = vmul.f32 %v10132_v14, %v2995_v8  ;;  %v2564_v20 = vadd.f32 %v2532_v36, %v2464_v51  ;;  %v2996_v62 = vld [vmem:[#allocation2 + $0x189] sm:$0xff]  ;;  %v2898_v36 = vld [vmem:[#allocation2 + $0x1a0] sm:$0xff] }
 0x283   : > { %v2763_v5 = vadd.f32 %v2731_v50, %v2663_v10  ;;  %v2333_v41 = vmul.f32 %v10626_v6, %v10081_v9  ;;  %v3062_v61 = vadd.f32 %v3030_v25, %v2962_v4  ;;  %v3131_v27 = vmul.f32 %v10493_v22, %v3095_v0  ;;  %v2997_v50 = vld [vmem:[#allocation2 + $0x199] sm:$0xff] }
 0x284   : > { %v3199_v7 = vadd.f32 %v10533_v59, %v3161_v3  ;;  %v2433_v37 = vmul.f32 %v10632_v18, %v10085_v17  ;;  %v2664_v32 = vadd.f32 %v2632_v31, %v2564_v20  ;;  %v2832_v42 = vmul.f32 %v3094_v23, %v10120_v11 }
 0x285   : > { %v2863_v40 = vadd.f32 %v2831_v15, %v2763_v5  ;;  %v2932_v29 = vmul.f32 %v10128_v13, %v2896_v24  ;;  %v3162_v44 = vadd.f32 %v3130_v30, %v3062_v61  ;;  %v2533_v6 = vmul.f32 %v10637_v57, %v10093_v63  ;;  %v3573_v57 = vld [vmem:[%s11787_s11 + $0x20] sm:$0xff] }
 0x286   : > { %8164 = vmatprep.mubr.msk.f32.mxu0 %vm441_vm0, %v3199_v7  ;;  %v2465_v46 = vadd.f32 %v2433_v37, %v2333_v41  ;;  %v2633_v38 = vmul.f32 %v2895_v33, %v10103_v54  ;;  %v2764_v19 = vadd.f32 %v2732_v48, %v2664_v32  ;;  %v2334_v18 = vmul.f32 %v2894_v47, %v10081_v9  ;;  %v3581_v9 = vld [vmem:[%s11787_s11 + $0x60] sm:$0xff]  ;;  %v3584_v33 = vld [vmem:[%s11787_s11 + $0x78] sm:$0xff]  ;;  %v3586_v7 = vld [vmem:[%s11787_s11 + $0x88] sm:$0xff] }
 0x287   : > { %v2963_v60 = vadd.f32 %v2931_v21, %v2863_v40  ;;  %v2434_v45 = vmul.f32 %v2994_v28, %v10085_v17  ;;  %v3200_v12 = vadd.f32 %v10533_v59, %v3162_v44  ;;  %v3032_v2 = vmul.f32 %v10132_v14, %v2996_v62  ;;  %v3097_v21 = vld [vmem:[#allocation2 + $0x19a] sm:$0xff]  ;;  %v3098_v32 = vld [vmem:[#allocation2 + $0x1a2] sm:$0xff] }
 0x288   : > { %v2565_v26 = vadd.f32 %v2533_v6, %v2465_v46  ;;  %v2534_v49 = vmul.f32 %v3094_v23, %v10093_v63  ;;  %v2864_v47 = vadd.f32 %v2832_v42, %v2764_v19  ;;  %v2634_v43 = vmul.f32 %v2896_v24, %v10103_v54  ;;  %v3582_v63 = vld [vmem:[%s11787_s11 + $0x68] sm:$0xff]  ;;  %v3575_v23 = vld [vmem:[%s11787_s11 + $0x30] sm:$0xff] }
 0x289   : > { %v3063_v17 = vadd.f32 %v3031_v1, %v2963_v60  ;;  %v2466_v28 = vadd.f32 %v2434_v45, %v2334_v18  ;;  %8165 = vmatmul.mubr.msk.f32.gmra.mrb[90].mxu0 %vm441_vm0, %v3200_v12  ;;  %v3132_v34 = vmul.f32 %v10493_v22, %v3096_v53  ;;  %v2733_v30 = vmul.f32 %v2995_v8, %v10110_v55  ;;  %v2998_v41 = vld [vmem:[#allocation2 + $0x1a1] sm:$0xff]  ;;  %v3638_v18 = vld [vmem:[#allocation2 + $0x9] sm:$0xff] }
 0x28a   : > { %v2665_v25 = vadd.f32 %v2633_v38, %v2565_v26  ;;  %v2833_v54 = vmul.f32 %v3095_v0, %v10120_v11  ;;  %v2964_v16 = vadd.f32 %v2932_v29, %v2864_v47  ;;  %v2734_v10 = vmul.f32 %v2996_v62, %v10110_v55  ;;  %v3585_v55 = vld [vmem:[%s11787_s11 + $0x80] sm:$0xff] }
 0x28b   : > { %v3163_v56 = vadd.f32 %v3131_v27, %v3063_v17  ;;  %v2566_v15 = vadd.f32 %v2534_v49, %v2466_v28  ;;  %v8701_v31 = vpack.c.bf16 %v3574_v35, %v3573_v57  ;;  %v8725_v8 = vpack.c.bf16 %v3582_v63, %v3581_v9  ;;  %v3588_v49 = vld [vmem:[%s11787_s11 + $0x98] sm:$0xff] }
 0x28c   : > { %v2765_v51 = vadd.f32 %v2733_v30, %v2665_v25  ;;  %v8705_v3 = vpack.c.bf16 %v3576_v52, %v3575_v23  ;;  %v3064_v4 = vadd.f32 %v3032_v2, %v2964_v16  ;;  %v8729_v24 = vpack.c.bf16 %v3584_v33, %v3583_v39  ;;  %v3569_v16 = vld [vmem:[%s11787_s11] sm:$0xff] }
 0x28d   : > { %v3201_v0 = vadd.f32 %v10533_v59, %v3163_v56  ;;  %v2666_v48 = vadd.f32 %v2634_v43, %v2566_v15  ;;  %v3033_v1 = vmul.f32 %v10132_v14, %v2997_v50  ;;  %v2834_v20 = vmul.f32 %v3096_v53, %v10120_v11  ;;  %8702 = vmatprep.subr.bf16.mxu0 %v8701_v31  ;;  %v3637_v53 = vld [vmem:[#allocation2 + $0x1] sm:$0xff] }
 0x28e   : > { %v2865_v5 = vadd.f32 %v2833_v54, %v2765_v51  ;;  %8726 = vmatprep.subr.bf16.mxu1 %v8725_v8  ;;  %v3164_v61 = vadd.f32 %v3132_v34, %v3064_v4  ;;  %v2934_v37 = vmul.f32 %v10128_v13, %v2898_v36  ;;  %8704 = vmatpush3.bf16.msra.mxu0 %v8701_v31  ;;  %v3570_v50 = vld [vmem:[%s11787_s11 + $0x8] sm:$0xff]  ;;  %v3572_v51 = vld [vmem:[%s11787_s11 + $0x18] sm:$0xff] }
 0x28f   : > { %8167 = vmatprep.mubr.msk.f32.mxu0 %vm441_vm0, %v3201_v0  ;;  %v2766_v27 = vadd.f32 %v2734_v10, %v2666_v48  ;;  %v3133_v40 = vmul.f32 %v10493_v22, %v3097_v21  ;;  %8706 = vmatprep.subr.bf16.mxu0 %v8705_v3  ;;  %v3034_v62 = vmul.f32 %v10132_v14, %v2998_v41  ;;  %v3571_v10 = vld [vmem:[%s11787_s11 + $0x10] sm:$0xff] }
 0x290   : > { %v2965_v11 = vadd.f32 %v10593_v58, %v2865_v5  ;;  %8728 = vmatpush3.bf16.msra.mxu1 %v8725_v8  ;;  %v3202_v42 = vadd.f32 %v10533_v59, %v3164_v61  ;;  %v8733_v44 = vpack.c.bf16 %v3586_v7, %v3585_v55  ;;  %v3134_v13 = vmul.f32 %v10493_v22, %v3098_v32  ;;  %v10750_v22 = vld [vmem:[%s11786_s10] ss:$0 sm:$0xff] }
 0x291   : > { %v2866_v29 = vadd.f32 %v2834_v20, %v2766_v27  ;;  %8730 = vmatprep.subr.bf16.mxu1 %v8729_v24  ;;  %v8709_v15 = vpack.c.bf16 %v3570_v50, %v3569_v16  ;;  %v8713_v36 = vpack.c.bf16 %v3572_v51, %v3571_v10  ;;  %v3589_v5 = vld [vmem:[%s11787_s11 + $0xa0] sm:$0xff]  ;;  %v3578_v10 = vld [vmem:[%s11787_s11 + $0x48] sm:$0xff] }
 0x292   : > { %v3065_v46 = vadd.f32 %v3033_v1, %v2965_v11  ;;  %8168 = vmatmul.mubr.msk.f32.gmra.mrb[92].mxu0 %vm441_vm0, %v3202_v42  ;;  %v3590_v1 = vld [vmem:[%s11787_s11 + $0xa8] sm:$0xff] }
 0x293   : > { %v2966_v6 = vadd.f32 %v2934_v37, %v2866_v29  ;;  %8708 = vmatpush3.bf16.msra.mxu0 %v8705_v3  ;;  %v10840_v20 = vpack.c.bf16 %v3590_v1, %v3589_v5 }
 0x294   : > { %v3165_v38 = vadd.f32 %v3133_v40, %v3065_v46  ;;  %8732 = vmatpush3.bf16.msra.mxu1 %v8729_v24  ;;  %8710 = vmatprep.subr.bf16.mxu0 %v8709_v15 }
 0x295   : > { %v3066_v58 = vadd.f32 %v3034_v62, %v2966_v6  ;;  %8734 = vmatprep.subr.bf16.mxu1 %v8733_v44 }
 0x296   : > { %v3203_v60 = vadd.f32 %v10533_v59, %v3165_v38 }
 0x297   : > { %v3166_v19 = vadd.f32 %v3134_v13, %v3066_v58 }
 0x298   : > { %8170 = vmatprep.mubr.msk.f32.mxu0 %vm441_vm0, %v3203_v60 }
 0x299   : > { %v3204_v14 = vadd.f32 %v10533_v59, %v3166_v19  ;;  %v3587_v59 = vld [vmem:[%s11787_s11 + $0x90] sm:$0xff] }
 0x29a   : > { %v8737_v17 = vpack.c.bf16 %v3588_v49, %v3587_v59 }
 0x29b   : > { %8171 = vmatmul.mubr.msk.f32.gmra.mrb[94].mxu0 %vm441_vm0, %v3204_v14 }
 0x29c   : > { %8181 = vmatprep.mubr.msk.f32.mxu0 %vm441_vm0, %v3637_v53 }
 0x29f   : > { %8182 = vmatmul.mubr.msk.f32.vlgmr.msra.gmra.mrb[96].mxu0 %vm441_vm0, %v3638_v18 }
 0x2a0   : > { %8712 = vmatpush3.bf16.msra.mxu0 %v8709_v15  ;;  %v3577_v15 = vld [vmem:[%s11787_s11 + $0x40] sm:$0xff] }
 0x2a1   : > { %8714 = vmatprep.subr.bf16.mxu0 %v8713_v36  ;;  %v10949_v51 = vpack.c.bf16 %v3578_v10, %v3577_v15 }
 0x2a4   : > { %8716 = vmatpush3.bf16.msra.mxu0 %v8713_v36 }
 0x2a5   : > { %8718 = vmatprep.subr.bf16.mxu0 %v10949_v51 }
 0x2d7   : > { %v8127_v45 = vpop.f32.mrb[64].mxu0 }
 0x2d8   : > { %v3384_v12 = vadd.f32 %v8127_v45, %v10750_v22  ;;  %v3378_v2 = vpop.f32.mrb[65].mxu0 }
 0x2d9   : > { %v3379_v26 = vadd.f32 %v10750_v22, %v3378_v2 }
 0x2da   : > { %3538 = vst.msk [vmem:[#allocation2 + $0x21] sm:$0xff] %vm441_vm0, %v3384_v12 }
 0x2db   : > { %3537 = vst.msk [vmem:[#allocation2 + $0x19] sm:$0xff] %vm441_vm0, %v3379_v26 }
 0x2e1   : > { %v10772_v47 = vld [vmem:[#allocation2 + $0x21] sm:$0xff] }
 0x2e2   : > { %v10762_v57 = vld [vmem:[#allocation2 + $0x19] sm:$0xff] }
 0x2e3   : > { %v10764_v35 = vld [vmem:[#allocation2 + $0x18] sm:$0xff]  ;;  %v10766_v9 = vld [vmem:[#allocation2 + $0x20] sm:$0xff]  ;;  %8184 = vmatprep.mubr.msk.f32.mxu0 %vm441_vm0, %v10762_v57  ;;  %v8130_v28 = vpop.f32.mrb[66].mxu0 }
 0x2e4   : > { %8349 = vmatprep.mubr.msk.f32.mxu1 %vm441_vm0, %v10764_v35  ;;  %8185 = vmatmul.mubr.msk.f32.gmra.mrb[98].mxu0 %vm441_vm0, %v10772_v47  ;;  %v3394_v43 = vadd.f32 %v8130_v28, %v10750_v22  ;;  %v3388_v63 = vpop.f32.mrb[67].mxu0 }
 0x2e5   : > { %8350 = vmatmul.mubr.msk.f32.vlgmr.msra.gmra.mrb[0].mxu1 %vm441_vm0, %v10766_v9  ;;  %v3389_v23 = vadd.f32 %v10750_v22, %v3388_v63 }
 0x2e6   : > { %8736 = vmatpush3.bf16.msra.mxu1 %v8733_v44  ;;  %3540 = vst.msk [vmem:[#allocation2 + $0x39] sm:$0xff] %vm441_vm0, %v3394_v43 }
 0x2e7   : > { %8738 = vmatprep.subr.bf16.mxu1 %v8737_v17  ;;  %3539 = vst.msk [vmem:[#allocation2 + $0x31] sm:$0xff] %vm441_vm0, %v3389_v23 }
 0x2ea   : > { %8740 = vmatpush3.bf16.msra.mxu1 %v8737_v17 }
 0x2eb   : > { %8742 = vmatprep.subr.bf16.mxu1 %v10840_v20 }
 0x2ed   : > { %v10793_v33 = vld [vmem:[#allocation2 + $0x39] sm:$0xff] }
 0x2ee   : > { %v10782_v34 = vld [vmem:[#allocation2 + $0x31] sm:$0xff] }
 0x2ef   : > { %v8133_v52 = vpop.f32.mrb[68].mxu0  ;;  %v10784_v25 = vld [vmem:[#allocation2 + $0x30] sm:$0xff]  ;;  %v10786_v30 = vld [vmem:[#allocation2 + $0x38] sm:$0xff]  ;;  %8187 = vmatprep.mubr.msk.f32.mxu0 %vm441_vm0, %v10782_v34 }
 0x2f0   : > { %v3404_v54 = vadd.f32 %v8133_v52, %v10750_v22  ;;  %v3398_v39 = vpop.f32.mrb[69].mxu0  ;;  %8352 = vmatprep.mubr.msk.f32.mxu1 %vm441_vm0, %v10784_v25  ;;  %8188 = vmatmul.mubr.msk.f32.gmra.mrb[100].mxu0 %vm441_vm0, %v10793_v33 }
 0x2f1   : > { %v3399_v56 = vadd.f32 %v10750_v22, %v3398_v39  ;;  %8353 = vmatmul.mubr.msk.f32.gmra.mrb[2].mxu1 %vm441_vm0, %v10786_v30 }
 0x2f2   : > { %3542 = vst.msk [vmem:[#allocation2 + $0x51] sm:$0xff] %vm441_vm0, %v3404_v54 }
 0x2f3   : > { %3541 = vst.msk [vmem:[#allocation2 + $0x49] sm:$0xff] %vm441_vm0, %v3399_v56 }
 0x2f8   : > { %v8136_v31 = vpop.f32.mrb[70].mxu0 }
 0x2f9   : > { %v3414_v8 = vadd.f32 %v8136_v31, %v10750_v22  ;;  %v3408_v3 = vpop.f32.mrb[71].mxu0  ;;  %v10827_v24 = vld [vmem:[#allocation2 + $0x51] sm:$0xff] }
 0x2fa   : > { %v3409_v0 = vadd.f32 %v10750_v22, %v3408_v3  ;;  %v10816_v4 = vld [vmem:[#allocation2 + $0x49] sm:$0xff] }
 0x2fb   : > { %v10818_v21 = vld [vmem:[#allocation2 + $0x48] sm:$0xff]  ;;  %v10820_v48 = vld [vmem:[#allocation2 + $0x50] sm:$0xff]  ;;  %3544 = vst.msk [vmem:[#allocation2 + $0x69] sm:$0xff] %vm441_vm0, %v3414_v8  ;;  %8190 = vmatprep.mubr.msk.f32.mxu0 %vm441_vm0, %v10816_v4 }
 0x2fc   : > { %8355 = vmatprep.mubr.msk.f32.mxu1 %vm441_vm0, %v10818_v21  ;;  %3543 = vst.msk [vmem:[#allocation2 + $0x61] sm:$0xff] %vm441_vm0, %v3409_v0  ;;  %8191 = vmatmul.mubr.msk.f32.gmra.mrb[102].mxu0 %vm441_vm0, %v10827_v24 }
 0x2fd   : > { %8356 = vmatmul.mubr.msk.f32.gmra.mrb[4].mxu1 %vm441_vm0, %v10820_v48 }
 0x302   : > { %v10854_v11 = vld [vmem:[#allocation2 + $0x69] sm:$0xff] }
 0x303   : > { %v8139_v41 = vpop.f32.mrb[72].mxu0  ;;  %v10843_v55 = vld [vmem:[#allocation2 + $0x61] sm:$0xff] }
 0x304   : > { %v10845_v7 = vld [vmem:[#allocation2 + $0x60] sm:$0xff]  ;;  %v10847_v61 = vld [vmem:[#allocation2 + $0x68] sm:$0xff]  ;;  %v3424_v27 = vadd.f32 %v8139_v41, %v10750_v22  ;;  %v3418_v37 = vpop.f32.mrb[73].mxu0  ;;  %8193 = vmatprep.mubr.msk.f32.mxu0 %vm441_vm0, %v10843_v55 }
 0x305   : > { %8358 = vmatprep.mubr.msk.f32.mxu1 %vm441_vm0, %v10845_v7  ;;  %v3419_v40 = vadd.f32 %v10750_v22, %v3418_v37  ;;  %8194 = vmatmul.mubr.msk.f32.gmra.mrb[104].mxu0 %vm441_vm0, %v10854_v11 }
 0x306   : > { %8359 = vmatmul.mubr.msk.f32.gmra.mrb[6].mxu1 %vm441_vm0, %v10847_v61  ;;  %3546 = vst.msk [vmem:[#allocation2 + $0x81] sm:$0xff] %vm441_vm0, %v3424_v27 }
 0x307   : > { %3545 = vst.msk [vmem:[#allocation2 + $0x79] sm:$0xff] %vm441_vm0, %v3419_v40 }
 0x30c   : > { %v8142_v32 = vpop.f32.mrb[74].mxu0 }
 0x30d   : > { %v3434_v42 = vadd.f32 %v8142_v32, %v10750_v22  ;;  %v3428_v29 = vpop.f32.mrb[75].mxu0  ;;  %v10876_v13 = vld [vmem:[#allocation2 + $0x81] sm:$0xff] }
 0x30e   : > { %v3429_v62 = vadd.f32 %v10750_v22, %v3428_v29  ;;  %v10865_v44 = vld [vmem:[#allocation2 + $0x79] sm:$0xff] }
 0x30f   : > { %v10867_v46 = vld [vmem:[#allocation2 + $0x78] sm:$0xff]  ;;  %v10869_v6 = vld [vmem:[#allocation2 + $0x80] sm:$0xff]  ;;  %3548 = vst.msk [vmem:[#allocation2 + $0x99] sm:$0xff] %vm441_vm0, %v3434_v42  ;;  %8196 = vmatprep.mubr.msk.f32.mxu0 %vm441_vm0, %v10865_v44 }
 0x310   : > { %8361 = vmatprep.mubr.msk.f32.mxu1 %vm441_vm0, %v10867_v46  ;;  %3547 = vst.msk [vmem:[#allocation2 + $0x91] sm:$0xff] %vm441_vm0, %v3429_v62  ;;  %8197 = vmatmul.mubr.msk.f32.gmra.mrb[106].mxu0 %vm441_vm0, %v10876_v13 }
 0x311   : > { %8362 = vmatmul.mubr.msk.f32.gmra.mrb[8].mxu1 %vm441_vm0, %v10869_v6 }
 0x316   : > { %v10894_v18 = vld [vmem:[#allocation2 + $0x99] sm:$0xff] }
 0x317   : > { %v8145_v38 = vpop.f32.mrb[76].mxu0  ;;  %v10883_v58 = vld [vmem:[#allocation2 + $0x91] sm:$0xff] }
 0x318   : > { %v10885_v60 = vld [vmem:[#allocation2 + $0x90] sm:$0xff]  ;;  %v10887_v19 = vld [vmem:[#allocation2 + $0x98] sm:$0xff]  ;;  %v3444_v14 = vadd.f32 %v8145_v38, %v10750_v22  ;;  %v3438_v53 = vpop.f32.mrb[77].mxu0  ;;  %8199 = vmatprep.mubr.msk.f32.mxu0 %vm441_vm0, %v10883_v58 }
 0x319   : > { %8364 = vmatprep.mubr.msk.f32.mxu1 %vm441_vm0, %v10885_v60  ;;  %v3439_v45 = vadd.f32 %v10750_v22, %v3438_v53  ;;  %8200 = vmatmul.mubr.msk.f32.gmra.mrb[108].mxu0 %vm441_vm0, %v10894_v18 }
 0x31a   : > { %8365 = vmatmul.mubr.msk.f32.gmra.mrb[10].mxu1 %vm441_vm0, %v10887_v19  ;;  %3550 = vst.msk [vmem:[#allocation2 + $0xb1] sm:$0xff] %vm441_vm0, %v3444_v14 }
 0x31b   : > { %3549 = vst.msk [vmem:[#allocation2 + $0xa9] sm:$0xff] %vm441_vm0, %v3439_v45 }
 0x320   : > { %v8148_v12 = vpop.f32.mrb[78].mxu0 }
 0x321   : > { %v3454_v2 = vadd.f32 %v8148_v12, %v10750_v22  ;;  %v3448_v26 = vpop.f32.mrb[79].mxu0  ;;  %v10916_v43 = vld [vmem:[#allocation2 + $0xb1] sm:$0xff] }
 0x322   : > { %v3449_v59 = vadd.f32 %v10750_v22, %v3448_v26  ;;  %v10905_v49 = vld [vmem:[#allocation2 + $0xa9] sm:$0xff] }
 0x323   : > { %v10907_v17 = vld [vmem:[#allocation2 + $0xa8] sm:$0xff]  ;;  %v10909_v28 = vld [vmem:[#allocation2 + $0xb0] sm:$0xff]  ;;  %3552 = vst.msk [vmem:[#allocation2 + $0xc9] sm:$0xff] %vm441_vm0, %v3454_v2  ;;  %8202 = vmatprep.mubr.msk.f32.mxu0 %vm441_vm0, %v10905_v49 }
 0x324   : > { %8367 = vmatprep.mubr.msk.f32.mxu1 %vm441_vm0, %v10907_v17  ;;  %3551 = vst.msk [vmem:[#allocation2 + $0xc1] sm:$0xff] %vm441_vm0, %v3449_v59  ;;  %8203 = vmatmul.mubr.msk.f32.gmra.mrb[110].mxu0 %vm441_vm0, %v10916_v43 }
 0x325   : > { %8368 = vmatmul.mubr.msk.f32.gmra.mrb[12].mxu1 %vm441_vm0, %v10909_v28 }
 0x329   : > { %v8151_v63 = vpop.f32.mrb[80].mxu0 }
 0x32a   : > { %v3464_v23 = vadd.f32 %v8151_v63, %v10750_v22  ;;  %v3458_v52 = vpop.f32.mrb[81].mxu0  ;;  %v10936_v50 = vld [vmem:[#allocation2 + $0xc9] sm:$0xff] }
 0x32b   : > { %v3459_v54 = vadd.f32 %v10750_v22, %v3458_v52  ;;  %v10925_v39 = vld [vmem:[#allocation2 + $0xc1] sm:$0xff] }
 0x32c   : > { %v10927_v56 = vld [vmem:[#allocation2 + $0xc0] sm:$0xff]  ;;  %v10929_v16 = vld [vmem:[#allocation2 + $0xc8] sm:$0xff]  ;;  %3554 = vst.msk [vmem:[#allocation2 + $0xe1] sm:$0xff] %vm441_vm0, %v3464_v23  ;;  %8205 = vmatprep.mubr.msk.f32.mxu0 %vm441_vm0, %v10925_v39 }
 0x32d   : > { %8370 = vmatprep.mubr.msk.f32.mxu1 %vm441_vm0, %v10927_v56  ;;  %3553 = vst.msk [vmem:[#allocation2 + $0xd9] sm:$0xff] %vm441_vm0, %v3459_v54  ;;  %8206 = vmatmul.mubr.msk.f32.gmra.mrb[112].mxu0 %vm441_vm0, %v10936_v50 }
 0x32e   : > { %8371 = vmatmul.mubr.msk.f32.gmra.mrb[14].mxu1 %vm441_vm0, %v10929_v16 }
 0x333   : > { %v10962_v3 = vld [vmem:[#allocation2 + $0xe1] sm:$0xff] }
 0x334   : > { %v10951_v36 = vld [vmem:[#allocation2 + $0xd9] sm:$0xff]  ;;  %v8154_v0 = vpop.f32.mrb[82].mxu0 }
 0x335   : > { %v10953_v31 = vld [vmem:[#allocation2 + $0xd8] sm:$0xff]  ;;  %v10955_v8 = vld [vmem:[#allocation2 + $0xe0] sm:$0xff]  ;;  %8208 = vmatprep.mubr.msk.f32.mxu0 %vm441_vm0, %v10951_v36  ;;  %v3474_v5 = vadd.f32 %v8154_v0, %v10750_v22  ;;  %v3468_v1 = vpop.f32.mrb[83].mxu0 }
 0x336   : > { %8373 = vmatprep.mubr.msk.f32.mxu1 %vm441_vm0, %v10953_v31  ;;  %8209 = vmatmul.mubr.msk.f32.gmra.mrb[114].mxu0 %vm441_vm0, %v10962_v3  ;;  %v3469_v41 = vadd.f32 %v10750_v22, %v3468_v1 }
 0x337   : > { %8374 = vmatmul.mubr.msk.f32.gmra.mrb[16].mxu1 %vm441_vm0, %v10955_v8  ;;  %3556 = vst.msk [vmem:[#allocation2 + $0xf9] sm:$0xff] %vm441_vm0, %v3474_v5 }
 0x338   : > { %3555 = vst.msk [vmem:[#allocation2 + $0xf1] sm:$0xff] %vm441_vm0, %v3469_v41 }
 0x33e   : > { %v8157_v27 = vpop.f32.mrb[84].mxu0  ;;  %v10985_v38 = vld [vmem:[#allocation2 + $0xf9] sm:$0xff] }
 0x33f   : > { %v3484_v37 = vadd.f32 %v8157_v27, %v10750_v22  ;;  %v3478_v40 = vpop.f32.mrb[85].mxu0  ;;  %v10974_v42 = vld [vmem:[#allocation2 + $0xf1] sm:$0xff] }
 0x340   : > { %v3479_v32 = vadd.f32 %v10750_v22, %v3478_v40  ;;  %v10976_v29 = vld [vmem:[#allocation2 + $0xf0] sm:$0xff]  ;;  %v10978_v62 = vld [vmem:[#allocation2 + $0xf8] sm:$0xff]  ;;  %8211 = vmatprep.mubr.msk.f32.mxu0 %vm441_vm0, %v10974_v42 }
 0x341   : > { %3558 = vst.msk [vmem:[#allocation2 + $0x111] sm:$0xff] %vm441_vm0, %v3484_v37  ;;  %8376 = vmatprep.mubr.msk.f32.mxu1 %vm441_vm0, %v10976_v29  ;;  %8212 = vmatmul.mubr.msk.f32.gmra.mrb[116].mxu0 %vm441_vm0, %v10985_v38 }
 0x342   : > { %3557 = vst.msk [vmem:[#allocation2 + $0x109] sm:$0xff] %vm441_vm0, %v3479_v32  ;;  %8377 = vmatmul.mubr.msk.f32.gmra.mrb[18].mxu1 %vm441_vm0, %v10978_v62 }
 0x347   : > { %v8160_v14 = vpop.f32.mrb[86].mxu0 }
 0x348   : > { %v3494_v53 = vadd.f32 %v8160_v14, %v10750_v22  ;;  %v3488_v45 = vpop.f32.mrb[87].mxu0  ;;  %v11005_v63 = vld [vmem:[#allocation2 + $0x111] sm:$0xff] }
 0x349   : > { %v3489_v12 = vadd.f32 %v10750_v22, %v3488_v45  ;;  %v10994_v2 = vld [vmem:[#allocation2 + $0x109] sm:$0xff] }
 0x34a   : > { %v10996_v26 = vld [vmem:[#allocation2 + $0x108] sm:$0xff]  ;;  %v10998_v59 = vld [vmem:[#allocation2 + $0x110] sm:$0xff]  ;;  %3560 = vst.msk [vmem:[#allocation2 + $0x129] sm:$0xff] %vm441_vm0, %v3494_v53  ;;  %8214 = vmatprep.mubr.msk.f32.mxu0 %vm441_vm0, %v10994_v2 }
 0x34b   : > { %8379 = vmatprep.mubr.msk.f32.mxu1 %vm441_vm0, %v10996_v26  ;;  %3559 = vst.msk [vmem:[#allocation2 + $0x121] sm:$0xff] %vm441_vm0, %v3489_v12  ;;  %8215 = vmatmul.mubr.msk.f32.gmra.mrb[118].mxu0 %vm441_vm0, %v11005_v63 }
 0x34c   : > { %8380 = vmatmul.mubr.msk.f32.gmra.mrb[20].mxu1 %vm441_vm0, %v10998_v59 }
 0x351   : > { %v11023_v5 = vld [vmem:[#allocation2 + $0x129] sm:$0xff] }
 0x352   : > { %v8163_v23 = vpop.f32.mrb[88].mxu0  ;;  %v11012_v52 = vld [vmem:[#allocation2 + $0x121] sm:$0xff] }
 0x353   : > { %v11014_v54 = vld [vmem:[#allocation2 + $0x120] sm:$0xff]  ;;  %v11016_v15 = vld [vmem:[#allocation2 + $0x128] sm:$0xff]  ;;  %v3504_v10 = vadd.f32 %v8163_v23, %v10750_v22  ;;  %v3498_v0 = vpop.f32.mrb[89].mxu0  ;;  %8217 = vmatprep.mubr.msk.f32.mxu0 %vm441_vm0, %v11012_v52 }
 0x354   : > { %8382 = vmatprep.mubr.msk.f32.mxu1 %vm441_vm0, %v11014_v54  ;;  %v3499_v1 = vadd.f32 %v10750_v22, %v3498_v0  ;;  %8218 = vmatmul.mubr.msk.f32.gmra.mrb[120].mxu0 %vm441_vm0, %v11023_v5 }
 0x355   : > { %8383 = vmatmul.mubr.msk.f32.gmra.mrb[22].mxu1 %vm441_vm0, %v11016_v15  ;;  %3562 = vst.msk [vmem:[#allocation2 + $0x141] sm:$0xff] %vm441_vm0, %v3504_v10 }
 0x356   : > { %3561 = vst.msk [vmem:[#allocation2 + $0x139] sm:$0xff] %vm441_vm0, %v3499_v1 }
 0x35c   : > { %v8166_v41 = vpop.f32.mrb[90].mxu0  ;;  %v11043_v53 = vld [vmem:[#allocation2 + $0x141] sm:$0xff] }
 0x35d   : > { %v11032_v27 = vld [vmem:[#allocation2 + $0x139] sm:$0xff]  ;;  %v3514_v32 = vadd.f32 %v8166_v41, %v10750_v22  ;;  %v3508_v14 = vpop.f32.mrb[91].mxu0  ;;  %11823 = vst [vmem:[#allocation3_spill] sm:$0xff] %v11043_v53 }
 0x35e   : > { %v11034_v37 = vld [vmem:[#allocation2 + $0x138] sm:$0xff]  ;;  %v11036_v40 = vld [vmem:[#allocation2 + $0x140] sm:$0xff]  ;;  %8220 = vmatprep.mubr.msk.f32.mxu0 %vm441_vm0, %v11032_v27  ;;  %v3509_v45 = vadd.f32 %v10750_v22, %v3508_v14 }
 0x35f   : > { %8385 = vmatprep.mubr.msk.f32.mxu1 %vm441_vm0, %v11034_v37  ;;  %8221 = vmatmul.mubr.msk.f32.gmra.mrb[122].mxu0 %vm441_vm0, %v11043_v53  ;;  %3564 = vst.msk [vmem:[#allocation2 + $0x159] sm:$0xff] %vm441_vm0, %v3514_v32 }
 0x360   : > { %8386 = vmatmul.mubr.msk.f32.gmra.mrb[24].mxu1 %vm441_vm0, %v11036_v40  ;;  %3563 = vst.msk [vmem:[#allocation2 + $0x151] sm:$0xff] %vm441_vm0, %v3509_v45 }
 0x365   : > { %v8169_v12 = vpop.f32.mrb[92].mxu0 }
 0x366   : > { %v3524_v23 = vadd.f32 %v8169_v12, %v10750_v22  ;;  %v3518_v10 = vpop.f32.mrb[93].mxu0  ;;  %v11065_v32 = vld [vmem:[#allocation2 + $0x159] sm:$0xff] }
 0x367   : > { %v3519_v0 = vadd.f32 %v10750_v22, %v3518_v10  ;;  %v11054_v1 = vld [vmem:[#allocation2 + $0x151] sm:$0xff]  ;;  %11826 = vst [vmem:[#allocation6_spill] sm:$0xff] %v11065_v32 }
 0x368   : > { %11824 = vst [vmem:[#allocation4_spill] sm:$0xff] %v11054_v1  ;;  %v11056_v41 = vld [vmem:[#allocation2 + $0x150] sm:$0xff]  ;;  %v11058_v14 = vld [vmem:[#allocation2 + $0x158] sm:$0xff]  ;;  %3566 = vst.msk [vmem:[#allocation2 + $0x171] sm:$0xff] %vm441_vm0, %v3524_v23  ;;  %8223 = vmatprep.mubr.msk.f32.mxu0 %vm441_vm0, %v11054_v1 }
 0x369   : > { %11825 = vst [vmem:[#allocation5_spill] sm:$0xff] %v11056_v41  ;;  %8388 = vmatprep.mubr.msk.f32.mxu1 %vm441_vm0, %v11056_v41  ;;  %3565 = vst.msk [vmem:[#allocation2 + $0x169] sm:$0xff] %vm441_vm0, %v3519_v0  ;;  %8224 = vmatmul.mubr.msk.f32.gmra.mrb[124].mxu0 %vm441_vm0, %v11065_v32  ;;  %v3605_v1 = vld [vmem:[#allocation2] sm:$0xff] }
 0x36a   : > { %8389 = vmatmul.mubr.msk.f32.gmra.mrb[26].mxu1 %vm441_vm0, %v11058_v14 }
 0x36e   : > { %v8172_v45 = vpop.f32.mrb[94].mxu0 }
 0x36f   : > { %v3534_v12 = vadd.f32 %v8172_v45, %v10750_v22  ;;  %v3528_v23 = vpop.f32.mrb[95].mxu0  ;;  %v11086_v45 = vld [vmem:[#allocation2 + $0x171] sm:$0xff] }
 0x370   : > { %v3529_v10 = vadd.f32 %v10750_v22, %v3528_v23  ;;  %v11075_v53 = vld [vmem:[#allocation2 + $0x169] sm:$0xff] }
 0x371   : > { %3568 = vst.msk [vmem:[#allocation2 + $0x189] sm:$0xff] %vm441_vm0, %v3534_v12  ;;  %11827 = vst [vmem:[#allocation7_spill] sm:$0xff] %v11075_v53  ;;  %v11077_v41 = vld [vmem:[#allocation2 + $0x168] sm:$0xff]  ;;  %v11079_v0 = vld [vmem:[#allocation2 + $0x170] sm:$0xff]  ;;  %8226 = vmatprep.mubr.msk.f32.mxu0 %vm441_vm0, %v11075_v53 }
 0x372   : > { %3567 = vst.msk [vmem:[#allocation2 + $0x181] sm:$0xff] %vm441_vm0, %v3529_v10  ;;  %8391 = vmatprep.mubr.msk.f32.mxu1 %vm441_vm0, %v11077_v41  ;;  %v3579_v22 = vld [vmem:[%s11787_s11 + $0x50] sm:$0xff]  ;;  %v3580_v12 = vld [vmem:[%s11787_s11 + $0x58] sm:$0xff]  ;;  %8227 = vmatmul.mubr.msk.f32.gmra.mrb[126].mxu0 %vm441_vm0, %v11086_v45  ;;  %v3606_v23 = vld [vmem:[#allocation2 + $0x8] sm:$0xff] }
 0x373   : > { %8392 = vmatmul.mubr.msk.f32.gmra.mrb[28].mxu1 %vm441_vm0, %v11079_v0  ;;  %8237 = vmatprep.mubr.msk.f32.mxu0 %vm441_vm0, %v3605_v1  ;;  %v8721_v10 = vpack.c.bf16 %v3580_v12, %v3579_v22  ;;  %v3591_v1 = vld [vmem:[%s11787_s11 + $0xb0] sm:$0xff]  ;;  %v3592_v22 = vld [vmem:[%s11787_s11 + $0xb8] sm:$0xff] }
 0x374   : > { %v11263_v12 = vld [vmem:[#allocation2 + $0x32] sm:$0xff] }
 0x376   : > { %8238 = vmatmul.mubr.msk.f32.vlgmr.msra.gmra.mrb[96].mxu0 %vm441_vm0, %v3606_v23 }
 0x377   : > { %8240 = vmatprep.mubr.msk.f32.mxu0 %vm441_vm0, %v10764_v35  ;;  %8720 = vmatpush3.bf16.msra.mxu0 %v10949_v51  ;;  %v8745_v35 = vpack.c.bf16 %v3592_v22, %v3591_v1  ;;  %v3593_v51 = vld [vmem:[%s11787_s11 + $0xc0] sm:$0xff]  ;;  %v3598_v22 = vld [vmem:[%s11787_s11 + $0xe8] sm:$0xff] }
 0x378   : > { %8722 = vmatprep.subr.bf16.mxu0 %v8721_v10  ;;  %v3597_v1 = vld [vmem:[%s11787_s11 + $0xe0] sm:$0xff] }
 0x379   : > { %v11103_v53 = vld [vmem:[#allocation2 + $0x180] sm:$0xff]  ;;  %v11105_v32 = vld [vmem:[#allocation2 + $0x188] sm:$0xff] }
 0x37a   : > { %8394 = vmatprep.mubr.msk.f32.mxu1 %vm441_vm0, %v11103_v53  ;;  %8241 = vmatmul.mubr.msk.f32.gmra.mrb[98].mxu0 %vm441_vm0, %v10766_v9  ;;  %v3594_v9 = vld [vmem:[%s11787_s11 + $0xc8] sm:$0xff] }
 0x37b   : > { %8395 = vmatmul.mubr.msk.f32.gmra.mrb[30].mxu1 %vm441_vm0, %v11105_v32  ;;  %8243 = vmatprep.mubr.msk.f32.mxu0 %vm441_vm0, %v10784_v25 }
 0x37c   : > { %8405 = vmatprep.mubr.msk.f32.mxu1 %vm441_vm0, %v10762_v57  ;;  %8724 = vmatpush3.bf16.msra.mxu0 %v8721_v10  ;;  %v11138_v57 = vpack.c.bf16 %v3594_v9, %v3593_v51  ;;  %v11268_v10 = vld [vmem:[#allocation2 + $0x3a] sm:$0xff]  ;;  %v11286_v51 = vld [vmem:[#allocation2 + $0x52] sm:$0xff]  ;;  %v11288_v9 = vpack.c.bf16 %v3598_v22, %v3597_v1  ;;  %v11343_v1 = vld [vmem:[#allocation2 + $0xc2] sm:$0xff] }
 0x37d   : > { %v11349_v22 = vld [vmem:[#allocation2 + $0xca] sm:$0xff] }
 0x37e   : > { %8244 = vmatmul.mubr.msk.f32.gmra.mrb[100].mxu0 %vm441_vm0, %v10786_v30  ;;  %11838 = vst [vmem:[#allocation8_spill] sm:$0xff] %v11349_v22 }
 0x37f   : > { %8406 = vmatmul.mubr.msk.f32.vlgmr.msra.gmra.mrb[0].mxu1 %vm441_vm0, %v10772_v47  ;;  %8246 = vmatprep.mubr.msk.f32.mxu0 %vm441_vm0, %v10818_v21  ;;  %v11828_v47 = vld [vmem:[#allocation5_spill] sm:$0xff] }
 0x380   : > { %8744 = vmatpush3.bf16.msra.mxu1 %v10840_v20  ;;  %8408 = vmatprep.mubr.msk.f32.mxu1 %vm441_vm0, %v10782_v34  ;;  %v11829_v34 = vld [vmem:[#allocation3_spill] sm:$0xff] }
 0x381   : > { %8746 = vmatprep.subr.bf16.mxu1 %v8745_v35  ;;  %v11832_v20 = vld [vmem:[#allocation7_spill] sm:$0xff] }
 0x382   : > { %8247 = vmatmul.mubr.msk.f32.gmra.mrb[102].mxu0 %vm441_vm0, %v10820_v48  ;;  %11837 = vst [vmem:[#allocation7_spill] sm:$0xff] %v11343_v1 }
 0x383   : > { %8409 = vmatmul.mubr.msk.f32.gmra.mrb[2].mxu1 %vm441_vm0, %v10793_v33  ;;  %8249 = vmatprep.mubr.msk.f32.mxu0 %vm441_vm0, %v10845_v7  ;;  %v11830_v33 = vld [vmem:[#allocation4_spill] sm:$0xff] }
 0x384   : > { %8411 = vmatprep.mubr.msk.f32.mxu1 %vm441_vm0, %v10816_v4  ;;  %8748 = vmatpush3.bf16.msra.mxu1 %v8745_v35  ;;  %v4311_v4 = vld [vmem:[#allocation2 + $0x2] sm:$0xff]  ;;  %v11282_v35 = vld [vmem:[#allocation2 + $0x4a] sm:$0xff] }
 0x385   : > { %8750 = vmatprep.subr.bf16.mxu1 %v11138_v57 }
 0x386   : > { %8250 = vmatmul.mubr.msk.f32.gmra.mrb[104].mxu0 %vm441_vm0, %v10847_v61 }
 0x387   : > { %8412 = vmatmul.mubr.msk.f32.gmra.mrb[4].mxu1 %vm441_vm0, %v10827_v24  ;;  %8252 = vmatprep.mubr.msk.f32.mxu0 %vm441_vm0, %v10867_v46  ;;  %v11831_v24 = vld [vmem:[#allocation6_spill] sm:$0xff] }
 0x388   : > { %8414 = vmatprep.mubr.msk.f32.mxu1 %vm441_vm0, %v10843_v55  ;;  %v4312_v55 = vld [vmem:[#allocation2 + $0xa] sm:$0xff] }
 0x38a   : > { %8253 = vmatmul.mubr.msk.f32.gmra.mrb[106].mxu0 %vm441_vm0, %v10869_v6 }
 0x38b   : > { %8415 = vmatmul.mubr.msk.f32.gmra.mrb[6].mxu1 %vm441_vm0, %v10854_v11  ;;  %8255 = vmatprep.mubr.msk.f32.mxu0 %vm441_vm0, %v10885_v60  ;;  %v11246_v11 = vld [vmem:[#allocation2 + $0x181] sm:$0xff] }
 0x38c   : > { %8417 = vmatprep.mubr.msk.f32.mxu1 %vm441_vm0, %v10865_v44  ;;  %v4313_v44 = vld [vmem:[#allocation2 + $0x1a] sm:$0xff] }
 0x38e   : > { %8256 = vmatmul.mubr.msk.f32.gmra.mrb[108].mxu0 %vm441_vm0, %v10887_v19 }
 0x38f   : > { %8418 = vmatmul.mubr.msk.f32.gmra.mrb[8].mxu1 %vm441_vm0, %v10876_v13  ;;  %8258 = vmatprep.mubr.msk.f32.mxu0 %vm441_vm0, %v10907_v17  ;;  %v4314_v13 = vld [vmem:[#allocation2 + $0x22] sm:$0xff] }
 0x390   : > { %8420 = vmatprep.mubr.msk.f32.mxu1 %vm441_vm0, %v10883_v58  ;;  %v11252_v58 = vld [vmem:[#allocation2 + $0x189] sm:$0xff] }
 0x392   : > { %8259 = vmatmul.mubr.msk.f32.gmra.mrb[110].mxu0 %vm441_vm0, %v10909_v28 }
 0x393   : > { %8421 = vmatmul.mubr.msk.f32.gmra.mrb[10].mxu1 %vm441_vm0, %v10894_v18  ;;  %8261 = vmatprep.mubr.msk.f32.mxu0 %vm441_vm0, %v10927_v56  ;;  %v3595_v18 = vld [vmem:[%s11787_s11 + $0xd0] sm:$0xff] }
 0x394   : > { %8423 = vmatprep.mubr.msk.f32.mxu1 %vm441_vm0, %v10905_v49  ;;  %v3596_v49 = vld [vmem:[%s11787_s11 + $0xd8] sm:$0xff] }
 0x395   : > { %v8753_v23 = vpack.c.bf16 %v3596_v49, %v3595_v18  ;;  %v11325_v18 = vld [vmem:[#allocation2 + $0x9a] sm:$0xff]  ;;  %v11331_v49 = vld [vmem:[#allocation2 + $0xaa] sm:$0xff] }
 0x396   : > { %8262 = vmatmul.mubr.msk.f32.gmra.mrb[112].mxu0 %vm441_vm0, %v10929_v16  ;;  %11834 = vst [vmem:[#allocation3_spill] sm:$0xff] %v11325_v18  ;;  %11835 = vst [vmem:[#allocation4_spill] sm:$0xff] %v11331_v49 }
 0x397   : > { %8424 = vmatmul.mubr.msk.f32.gmra.mrb[12].mxu1 %vm441_vm0, %v10916_v43  ;;  %8264 = vmatprep.mubr.msk.f32.mxu0 %vm441_vm0, %v10953_v31 }
 0x398   : > { %8426 = vmatprep.mubr.msk.f32.mxu1 %vm441_vm0, %v10925_v39 }
 0x39a   : > { %8265 = vmatmul.mubr.msk.f32.gmra.mrb[114].mxu0 %vm441_vm0, %v10955_v8 }
 0x39b   : > { %8427 = vmatmul.mubr.msk.f32.gmra.mrb[14].mxu1 %vm441_vm0, %v10936_v50  ;;  %8267 = vmatprep.mubr.msk.f32.mxu0 %vm441_vm0, %v10976_v29 }
 0x39c   : > { %8429 = vmatprep.mubr.msk.f32.mxu1 %vm441_vm0, %v10951_v36 }
 0x39e   : > { %8268 = vmatmul.mubr.msk.f32.gmra.mrb[116].mxu0 %vm441_vm0, %v10978_v62 }
 0x39f   : > { %8430 = vmatmul.mubr.msk.f32.gmra.mrb[16].mxu1 %vm441_vm0, %v10962_v3  ;;  %8270 = vmatprep.mubr.msk.f32.mxu0 %vm441_vm0, %v10996_v26 }
 0x3a0   : > { %8432 = vmatprep.mubr.msk.f32.mxu1 %vm441_vm0, %v10974_v42 }
 0x3a2   : > { %8271 = vmatmul.mubr.msk.f32.gmra.mrb[118].mxu0 %vm441_vm0, %v10998_v59 }
 0x3a3   : > { %8433 = vmatmul.mubr.msk.f32.gmra.mrb[18].mxu1 %vm441_vm0, %v10985_v38  ;;  %8273 = vmatprep.mubr.msk.f32.mxu0 %vm441_vm0, %v11014_v54 }
 0x3a4   : > { %8435 = vmatprep.mubr.msk.f32.mxu1 %vm441_vm0, %v10994_v2 }
 0x3a6   : > { %8274 = vmatmul.mubr.msk.f32.gmra.mrb[120].mxu0 %vm441_vm0, %v11016_v15 }
 0x3a7   : > { %8436 = vmatmul.mubr.msk.f32.gmra.mrb[20].mxu1 %vm441_vm0, %v11005_v63  ;;  %8276 = vmatprep.mubr.msk.f32.mxu0 %vm441_vm0, %v11034_v37 }
 0x3a8   : > { %8438 = vmatprep.mubr.msk.f32.mxu1 %vm441_vm0, %v11012_v52 }
 0x3aa   : > { %8277 = vmatmul.mubr.msk.f32.gmra.mrb[122].mxu0 %vm441_vm0, %v11036_v40 }
 0x3ab   : > { %8439 = vmatmul.mubr.msk.f32.gmra.mrb[22].mxu1 %vm441_vm0, %v11023_v5  ;;  %8279 = vmatprep.mubr.msk.f32.mxu0 %vm441_vm0, %v11828_v47 }
 0x3ac   : > { %8441 = vmatprep.mubr.msk.f32.mxu1 %vm441_vm0, %v11032_v27 }
 0x3ae   : > { %8280 = vmatmul.mubr.msk.f32.gmra.mrb[124].mxu0 %vm441_vm0, %v11058_v14 }
 0x3af   : > { %8442 = vmatmul.mubr.msk.f32.gmra.mrb[24].mxu1 %vm441_vm0, %v11829_v34  ;;  %8282 = vmatprep.mubr.msk.f32.mxu0 %vm441_vm0, %v11077_v41 }
 0x3b0   : > { %8444 = vmatprep.mubr.msk.f32.mxu1 %vm441_vm0, %v11830_v33 }
 0x3b2   : > { %8283 = vmatmul.mubr.msk.f32.gmra.mrb[126].mxu0 %vm441_vm0, %v11079_v0 }
 0x3b3   : > { %8445 = vmatmul.mubr.msk.f32.gmra.mrb[26].mxu1 %vm441_vm0, %v11831_v24  ;;  %8293 = vmatprep.mubr.msk.f32.mxu0 %vm441_vm0, %v4311_v4  ;;  %v11300_v4 = vld [vmem:[#allocation2 + $0x6a] sm:$0xff] }
 0x3b4   : > { %8447 = vmatprep.mubr.msk.f32.mxu1 %vm441_vm0, %v11832_v20 }
 0x3b6   : > { %8294 = vmatmul.mubr.msk.f32.vlgmr.msra.gmra.mrb[96].mxu0 %vm441_vm0, %v4312_v55  ;;  %v11307_v55 = vld [vmem:[#allocation2 + $0x7a] sm:$0xff] }
 0x3b7   : > { %8448 = vmatmul.mubr.msk.f32.gmra.mrb[28].mxu1 %vm441_vm0, %v11086_v45  ;;  %8296 = vmatprep.mubr.msk.f32.mxu0 %vm441_vm0, %v4313_v44 }
 0x3b8   : > { %8450 = vmatprep.mubr.msk.f32.mxu1 %vm441_vm0, %v11246_v11 }
 0x3ba   : > { %8297 = vmatmul.mubr.msk.f32.gmra.mrb[98].mxu0 %vm441_vm0, %v4314_v13 }
 0x3bb   : > { %8451 = vmatmul.mubr.msk.f32.gmra.mrb[30].mxu1 %vm441_vm0, %v11252_v58  ;;  %8299 = vmatprep.mubr.msk.f32.mxu0 %vm441_vm0, %v11263_v12 }
 0x3bc   : > { %8461 = vmatprep.mubr.msk.f32.mxu1 %vm441_vm0, %v4313_v44  ;;  %v11313_v44 = vld [vmem:[#allocation2 + $0x82] sm:$0xff] }
 0x3be   : > { %8300 = vmatmul.mubr.msk.f32.gmra.mrb[100].mxu0 %vm441_vm0, %v11268_v10 }
 0x3bf   : > { %8462 = vmatmul.mubr.msk.f32.vlgmr.msra.gmra.mrb[0].mxu1 %vm441_vm0, %v4314_v13  ;;  %8302 = vmatprep.mubr.msk.f32.mxu0 %vm441_vm0, %v11282_v35  ;;  %v11319_v13 = vld [vmem:[#allocation2 + $0x92] sm:$0xff] }
 0x3c0   : > { %8752 = vmatpush3.bf16.msra.mxu1 %v11138_v57  ;;  %8464 = vmatprep.mubr.msk.f32.mxu1 %vm441_vm0, %v11263_v12  ;;  %v11294_v57 = vld [vmem:[#allocation2 + $0x62] sm:$0xff]  ;;  %11833 = vst [vmem:[#allocation5_spill] sm:$0xff] %v11319_v13 }
 0x3c1   : > { %8754 = vmatprep.subr.bf16.mxu1 %v8753_v23 }
 0x3c2   : > { %8303 = vmatmul.mubr.msk.f32.gmra.mrb[102].mxu0 %vm441_vm0, %v11286_v51 }
 0x3c3   : > { %8465 = vmatmul.mubr.msk.f32.gmra.mrb[2].mxu1 %vm441_vm0, %v11268_v10  ;;  %8305 = vmatprep.mubr.msk.f32.mxu0 %vm441_vm0, %v11294_v57 }
 0x3c4   : > { %8467 = vmatprep.mubr.msk.f32.mxu1 %vm441_vm0, %v11282_v35  ;;  %8756 = vmatpush3.bf16.msra.mxu1 %v8753_v23  ;;  %v11337_v23 = vld [vmem:[#allocation2 + $0xb2] sm:$0xff] }
 0x3c5   : > { %8758 = vmatprep.subr.bf16.mxu1 %v11288_v9  ;;  %11836 = vst [vmem:[#allocation6_spill] sm:$0xff] %v11337_v23 }
 0x3c6   : > { %8306 = vmatmul.mubr.msk.f32.gmra.mrb[104].mxu0 %vm441_vm0, %v11300_v4 }
 0x3c7   : > { %8468 = vmatmul.mubr.msk.f32.gmra.mrb[4].mxu1 %vm441_vm0, %v11286_v51  ;;  %8308 = vmatprep.mubr.msk.f32.mxu0 %vm441_vm0, %v11307_v55 }
 0x3c8   : > { %8470 = vmatprep.mubr.msk.f32.mxu1 %vm441_vm0, %v11294_v57 }
 0x3ca   : > { %8309 = vmatmul.mubr.msk.f32.gmra.mrb[106].mxu0 %vm441_vm0, %v11313_v44 }
 0x3cb   : > { %8471 = vmatmul.mubr.msk.f32.gmra.mrb[6].mxu1 %vm441_vm0, %v11300_v4  ;;  %8311 = vmatprep.mubr.msk.f32.mxu0 %vm441_vm0, %v11319_v13 }
 0x3cc   : > { %8473 = vmatprep.mubr.msk.f32.mxu1 %vm441_vm0, %v11307_v55 }
 0x3ce   : > { %8312 = vmatmul.mubr.msk.f32.gmra.mrb[108].mxu0 %vm441_vm0, %v11325_v18 }
 0x3cf   : > { %8474 = vmatmul.mubr.msk.f32.gmra.mrb[8].mxu1 %vm441_vm0, %v11313_v44  ;;  %8314 = vmatprep.mubr.msk.f32.mxu0 %vm441_vm0, %v11331_v49 }
 0x3d0   : > { %8476 = vmatprep.mubr.msk.f32.mxu1 %vm441_vm0, %v11319_v13  ;;  %v3600_v13 = vld [vmem:[%s11787_s11 + $0xf8] sm:$0xff] }
 0x3d2   : > { %8315 = vmatmul.mubr.msk.f32.gmra.mrb[110].mxu0 %vm441_vm0, %v11337_v23 }
 0x3d3   : > { %8477 = vmatmul.mubr.msk.f32.gmra.mrb[10].mxu1 %vm441_vm0, %v11325_v18  ;;  %8317 = vmatprep.mubr.msk.f32.mxu0 %vm441_vm0, %v11343_v1  ;;  %v11355_v18 = vld [vmem:[#allocation2 + $0xda] sm:$0xff] }
 0x3d4   : > { %8479 = vmatprep.mubr.msk.f32.mxu1 %vm441_vm0, %v11331_v49  ;;  %11839 = vst [vmem:[#allocation9_spill] sm:$0xff] %v11355_v18  ;;  %v11361_v49 = vld [vmem:[#allocation2 + $0xe2] sm:$0xff] }
 0x3d5   : > { %11840 = vst [vmem:[#allocation10_spill] sm:$0xff] %v11361_v49 }
 0x3d6   : > { %8318 = vmatmul.mubr.msk.f32.gmra.mrb[112].mxu0 %vm441_vm0, %v11349_v22 }
 0x3d7   : > { %8480 = vmatmul.mubr.msk.f32.gmra.mrb[12].mxu1 %vm441_vm0, %v11337_v23  ;;  %8320 = vmatprep.mubr.msk.f32.mxu0 %vm441_vm0, %v11355_v18  ;;  %v11367_v23 = vld [vmem:[#allocation2 + $0xf2] sm:$0xff] }
 0x3d8   : > { %8482 = vmatprep.mubr.msk.f32.mxu1 %vm441_vm0, %v11343_v1  ;;  %11841 = vst [vmem:[#allocation11_spill] sm:$0xff] %v11367_v23  ;;  %v11373_v1 = vld [vmem:[#allocation2 + $0xfa] sm:$0xff] }
 0x3d9   : > { %11842 = vst [vmem:[#allocation12_spill] sm:$0xff] %v11373_v1 }
 0x3da   : > { %8321 = vmatmul.mubr.msk.f32.gmra.mrb[114].mxu0 %vm441_vm0, %v11361_v49 }
 0x3db   : > { %8483 = vmatmul.mubr.msk.f32.gmra.mrb[14].mxu1 %vm441_vm0, %v11349_v22  ;;  %8323 = vmatprep.mubr.msk.f32.mxu0 %vm441_vm0, %v11367_v23  ;;  %v11379_v22 = vld [vmem:[#allocation2 + $0x10a] sm:$0xff] }
 0x3dc   : > { %8485 = vmatprep.mubr.msk.f32.mxu1 %vm441_vm0, %v11355_v18  ;;  %11843 = vst [vmem:[#allocation13_spill] sm:$0xff] %v11379_v22  ;;  %v11385_v18 = vld [vmem:[#allocation2 + $0x112] sm:$0xff] }
 0x3dd   : > { %11844 = vst [vmem:[#allocation14_spill] sm:$0xff] %v11385_v18 }
 0x3de   : > { %8324 = vmatmul.mubr.msk.f32.gmra.mrb[116].mxu0 %vm441_vm0, %v11373_v1 }
 0x3df   : > { %8486 = vmatmul.mubr.msk.f32.gmra.mrb[16].mxu1 %vm441_vm0, %v11361_v49  ;;  %8326 = vmatprep.mubr.msk.f32.mxu0 %vm441_vm0, %v11379_v22  ;;  %v11391_v49 = vld [vmem:[#allocation2 + $0x122] sm:$0xff] }
 0x3e0   : > { %8488 = vmatprep.mubr.msk.f32.mxu1 %vm441_vm0, %v11367_v23  ;;  %11845 = vst [vmem:[#allocation15_spill] sm:$0xff] %v11391_v49  ;;  %v11397_v23 = vld [vmem:[#allocation2 + $0x12a] sm:$0xff] }
 0x3e1   : > { %11846 = vst [vmem:[#allocation16_spill] sm:$0xff] %v11397_v23 }
 0x3e2   : > { %8327 = vmatmul.mubr.msk.f32.gmra.mrb[118].mxu0 %vm441_vm0, %v11385_v18 }
 0x3e3   : > { %8489 = vmatmul.mubr.msk.f32.gmra.mrb[18].mxu1 %vm441_vm0, %v11373_v1  ;;  %8329 = vmatprep.mubr.msk.f32.mxu0 %vm441_vm0, %v11391_v49  ;;  %v11403_v1 = vld [vmem:[#allocation2 + $0x13a] sm:$0xff] }
 0x3e4   : > { %8491 = vmatprep.mubr.msk.f32.mxu1 %vm441_vm0, %v11379_v22  ;;  %11847 = vst [vmem:[#allocation17_spill] sm:$0xff] %v11403_v1  ;;  %v11409_v22 = vld [vmem:[#allocation2 + $0x142] sm:$0xff] }
 0x3e5   : > { %11848 = vst [vmem:[#allocation18_spill] sm:$0xff] %v11409_v22 }
 0x3e6   : > { %8330 = vmatmul.mubr.msk.f32.gmra.mrb[120].mxu0 %vm441_vm0, %v11397_v23 }
 0x3e7   : > { %8492 = vmatmul.mubr.msk.f32.gmra.mrb[20].mxu1 %vm441_vm0, %v11385_v18  ;;  %8332 = vmatprep.mubr.msk.f32.mxu0 %vm441_vm0, %v11403_v1  ;;  %v11415_v18 = vld [vmem:[#allocation2 + $0x152] sm:$0xff] }
 0x3e8   : > { %8494 = vmatprep.mubr.msk.f32.mxu1 %vm441_vm0, %v11391_v49  ;;  %11849 = vst [vmem:[#allocation19_spill] sm:$0xff] %v11415_v18  ;;  %v11421_v49 = vld [vmem:[#allocation2 + $0x15a] sm:$0xff] }
 0x3e9   : > { %11850 = vst [vmem:[#allocation20_spill] sm:$0xff] %v11421_v49 }
 0x3ea   : > { %8333 = vmatmul.mubr.msk.f32.gmra.mrb[122].mxu0 %vm441_vm0, %v11409_v22 }
 0x3eb   : > { %8495 = vmatmul.mubr.msk.f32.gmra.mrb[22].mxu1 %vm441_vm0, %v11397_v23  ;;  %8335 = vmatprep.mubr.msk.f32.mxu0 %vm441_vm0, %v11415_v18  ;;  %v11427_v23 = vld [vmem:[#allocation2 + $0x16a] sm:$0xff] }
 0x3ec   : > { %8497 = vmatprep.mubr.msk.f32.mxu1 %vm441_vm0, %v11403_v1  ;;  %11851 = vst [vmem:[#allocation21_spill] sm:$0xff] %v11427_v23  ;;  %v11433_v1 = vld [vmem:[#allocation2 + $0x172] sm:$0xff] }
 0x3ed   : > { %11852 = vst [vmem:[#allocation22_spill] sm:$0xff] %v11433_v1 }
 0x3ee   : > { %8336 = vmatmul.mubr.msk.f32.gmra.mrb[124].mxu0 %vm441_vm0, %v11421_v49 }
 0x3ef   : > { %8498 = vmatmul.mubr.msk.f32.gmra.mrb[24].mxu1 %vm441_vm0, %v11409_v22  ;;  %8338 = vmatprep.mubr.msk.f32.mxu0 %vm441_vm0, %v11427_v23  ;;  %v11443_v22 = vld [vmem:[#allocation2 + $0x182] sm:$0xff] }
 0x3f0   : > { %8500 = vmatprep.mubr.msk.f32.mxu1 %vm441_vm0, %v11415_v18  ;;  %11853 = vst [vmem:[#allocation23_spill] sm:$0xff] %v11443_v22  ;;  %v11447_v18 = vld [vmem:[#allocation2 + $0x18a] sm:$0xff] }
 0x3f1   : > { %11854 = vst [vmem:[#allocation24_spill] sm:$0xff] %v11447_v18 }
 0x3f2   : > { %8339 = vmatmul.mubr.msk.f32.gmra.mrb[126].mxu0 %vm441_vm0, %v11433_v1 }
 0x3f3   : > { %8501 = vmatmul.mubr.msk.f32.gmra.mrb[26].mxu1 %vm441_vm0, %v11421_v49  ;;  %v3599_v49 = vld [vmem:[%s11787_s11 + $0xf0] sm:$0xff] }
 0x3f4   : > { %8503 = vmatprep.mubr.msk.f32.mxu1 %vm441_vm0, %v11427_v23  ;;  %v3602_v23 = vld [vmem:[%s11787_s11 + $0x108] sm:$0xff] }
 0x3f7   : > { %8504 = vmatmul.mubr.msk.f32.gmra.mrb[28].mxu1 %vm441_vm0, %v11433_v1  ;;  %v8761_v1 = vpack.c.bf16 %v3600_v13, %v3599_v49  ;;  %v11874_v13 = vld [vmem:[#allocation22_spill] sm:$0xff]  ;;  %v11875_v49 = vld [vmem:[#allocation23_spill] sm:$0xff] }
 0x3f8   : > { %8506 = vmatprep.mubr.msk.f32.mxu1 %vm441_vm0, %v11443_v22  ;;  %v3601_v22 = vld [vmem:[%s11787_s11 + $0x100] sm:$0xff] }
 0x3fb   : > { %8507 = vmatmul.mubr.msk.f32.gmra.mrb[30].mxu1 %vm441_vm0, %v11447_v18  ;;  %v8765_v18 = vpack.c.bf16 %v3602_v23, %v3601_v22  ;;  %v6651_v23 = vld [vmem:[#allocation2 + $0x19a] sm:$0xff] }
 0x3fc   : > { %8517 = vmatprep.mubr.msk.f32.mxu1 %vm441_vm0, %v10784_v25  ;;  %v5881_v25 = vld [vmem:[#allocation2 + $0x198] sm:$0xff] }
 0x3fd   : > { %v11876_v22 = vld [vmem:[#allocation24_spill] sm:$0xff] }
 0x3ff   : > { %8518 = vmatmul.mubr.msk.f32.vlgmr.msra.gmra.mrb[0].mxu1 %vm441_vm0, %v10786_v30  ;;  %v5882_v30 = vld [vmem:[#allocation2 + $0x1a0] sm:$0xff] }
 0x400   : > { %8760 = vmatpush3.bf16.msra.mxu1 %v11288_v9  ;;  %8520 = vmatprep.mubr.msk.f32.mxu1 %vm441_vm0, %v10818_v21  ;;  %v3603_v21 = vld [vmem:[%s11787_s11 + $0x110] sm:$0xff] }
 0x401   : > { %8762 = vmatprep.subr.bf16.mxu1 %v8761_v1 }
 0x403   : > { %8521 = vmatmul.mubr.msk.f32.gmra.mrb[2].mxu1 %vm441_vm0, %v10820_v48  ;;  %v3604_v48 = vld [vmem:[%s11787_s11 + $0x118] sm:$0xff] }
 0x404   : > { %8523 = vmatprep.mubr.msk.f32.mxu1 %vm441_vm0, %v10845_v7  ;;  %8764 = vmatpush3.bf16.msra.mxu1 %v8761_v1  ;;  %v6236_v7 = vld [vmem:[#allocation2 + $0x31] sm:$0xff] }
 0x405   : > { %8766 = vmatprep.subr.bf16.mxu1 %v8765_v18 }
 0x407   : > { %8524 = vmatmul.mubr.msk.f32.gmra.mrb[4].mxu1 %vm441_vm0, %v10847_v61  ;;  %v8769_v61 = vpack.c.bf16 %v3604_v48, %v3603_v21 }
 0x408   : > { %8526 = vmatprep.mubr.msk.f32.mxu1 %vm441_vm0, %v10867_v46  ;;  %v6237_v46 = vld [vmem:[#allocation2 + $0x39] sm:$0xff] }
 0x40b   : > { %8527 = vmatmul.mubr.msk.f32.gmra.mrb[6].mxu1 %vm441_vm0, %v10869_v6  ;;  %v6238_v6 = vld [vmem:[#allocation2 + $0x49] sm:$0xff] }
 0x40c   : > { %8529 = vmatprep.mubr.msk.f32.mxu1 %vm441_vm0, %v10885_v60  ;;  %v6239_v60 = vld [vmem:[#allocation2 + $0x51] sm:$0xff] }
 0x40f   : > { %8530 = vmatmul.mubr.msk.f32.gmra.mrb[8].mxu1 %vm441_vm0, %v10887_v19  ;;  %v6240_v19 = vld [vmem:[#allocation2 + $0x61] sm:$0xff] }
 0x410   : > { %8532 = vmatprep.mubr.msk.f32.mxu1 %vm441_vm0, %v10907_v17  ;;  %v6241_v17 = vld [vmem:[#allocation2 + $0x69] sm:$0xff] }
 0x413   : > { %8533 = vmatmul.mubr.msk.f32.gmra.mrb[10].mxu1 %vm441_vm0, %v10909_v28  ;;  %v6242_v28 = vld [vmem:[#allocation2 + $0x79] sm:$0xff] }
 0x414   : > { %8535 = vmatprep.mubr.msk.f32.mxu1 %vm441_vm0, %v10927_v56  ;;  %v6243_v56 = vld [vmem:[#allocation2 + $0x81] sm:$0xff] }
 0x417   : > { %8536 = vmatmul.mubr.msk.f32.gmra.mrb[12].mxu1 %vm441_vm0, %v10929_v16  ;;  %v6244_v16 = vld [vmem:[#allocation2 + $0x91] sm:$0xff] }
 0x418   : > { %8538 = vmatprep.mubr.msk.f32.mxu1 %vm441_vm0, %v10953_v31  ;;  %v6245_v31 = vld [vmem:[#allocation2 + $0x99] sm:$0xff] }
 0x41b   : > { %8539 = vmatmul.mubr.msk.f32.gmra.mrb[14].mxu1 %vm441_vm0, %v10955_v8  ;;  %v6246_v8 = vld [vmem:[#allocation2 + $0xa9] sm:$0xff] }
 0x41c   : > { %8541 = vmatprep.mubr.msk.f32.mxu1 %vm441_vm0, %v10976_v29  ;;  %v11856_v29 = vld [vmem:[#allocation3_spill] sm:$0xff] }
 0x41f   : > { %8542 = vmatmul.mubr.msk.f32.gmra.mrb[16].mxu1 %vm441_vm0, %v10978_v62 }
 0x420   : > { %8544 = vmatprep.mubr.msk.f32.mxu1 %vm441_vm0, %v10996_v26  ;;  %v11858_v26 = vld [vmem:[#allocation6_spill] sm:$0xff] }
 0x423   : > { %8545 = vmatmul.mubr.msk.f32.gmra.mrb[18].mxu1 %vm441_vm0, %v10998_v59 }
 0x424   : > { %8547 = vmatprep.mubr.msk.f32.mxu1 %vm441_vm0, %v11014_v54  ;;  %v11860_v54 = vld [vmem:[#allocation8_spill] sm:$0xff] }
 0x427   : > { %8548 = vmatmul.mubr.msk.f32.gmra.mrb[20].mxu1 %vm441_vm0, %v11016_v15 }
 0x428   : > { %8550 = vmatprep.mubr.msk.f32.mxu1 %vm441_vm0, %v11034_v37  ;;  %v11862_v37 = vld [vmem:[#allocation10_spill] sm:$0xff] }
 0x42b   : > { %8551 = vmatmul.mubr.msk.f32.gmra.mrb[22].mxu1 %vm441_vm0, %v11036_v40 }
 0x42c   : > { %8553 = vmatprep.mubr.msk.f32.mxu1 %vm441_vm0, %v11828_v47  ;;  %v11866_v47 = vld [vmem:[#allocation14_spill] sm:$0xff] }
 0x42f   : > { %8554 = vmatmul.mubr.msk.f32.gmra.mrb[24].mxu1 %vm441_vm0, %v11058_v14  ;;  %v11864_v14 = vld [vmem:[#allocation12_spill] sm:$0xff] }
 0x430   : > { %8556 = vmatprep.mubr.msk.f32.mxu1 %vm441_vm0, %v11077_v41 }
 0x433   : > { %8557 = vmatmul.mubr.msk.f32.gmra.mrb[26].mxu1 %vm441_vm0, %v11079_v0  ;;  %v11865_v0 = vld [vmem:[#allocation13_spill] sm:$0xff] }
 0x434   : > { %8559 = vmatprep.mubr.msk.f32.mxu1 %vm441_vm0, %v11103_v53  ;;  %v11863_v53 = vld [vmem:[#allocation11_spill] sm:$0xff] }
 0x437   : > { %8560 = vmatmul.mubr.msk.f32.gmra.mrb[28].mxu1 %vm441_vm0, %v11105_v32 }
 0x438   : > { %8562 = vmatprep.mubr.msk.f32.mxu1 %vm441_vm0, %v5881_v25 }
 0x43b   : > { %8563 = vmatmul.mubr.msk.f32.gmra.mrb[30].mxu1 %vm441_vm0, %v5882_v30  ;;  %v6652_v30 = vld [vmem:[#allocation2 + $0x1a2] sm:$0xff] }
 0x43c   : > { %8573 = vmatprep.mubr.msk.f32.mxu1 %vm441_vm0, %v6236_v7 }
 0x43f   : > { %8574 = vmatmul.mubr.msk.f32.vlgmr.msra.gmra.mrb[0].mxu1 %vm441_vm0, %v6237_v46 }
 0x440   : > { %8768 = vmatpush3.bf16.msra.mxu1 %v8765_v18  ;;  %8576 = vmatprep.mubr.msk.f32.mxu1 %vm441_vm0, %v6238_v6 }
 0x441   : > { %8770 = vmatprep.subr.bf16.mxu1 %v8769_v61 }
 0x443   : > { %8577 = vmatmul.mubr.msk.f32.gmra.mrb[2].mxu1 %vm441_vm0, %v6239_v60 }
 0x444   : > { %8579 = vmatprep.mubr.msk.f32.mxu1 %vm441_vm0, %v6240_v19  ;;  %8772 = vmatpush3.bf16.msra.mxu1 %v8769_v61 }
 0x447   : > { %8580 = vmatmul.mubr.msk.f32.gmra.mrb[4].mxu1 %vm441_vm0, %v6241_v17 }
 0x448   : > { %8582 = vmatprep.mubr.msk.f32.mxu1 %vm441_vm0, %v6242_v28 }
 0x44b   : > { %8583 = vmatmul.mubr.msk.f32.gmra.mrb[6].mxu1 %vm441_vm0, %v6243_v56 }
 0x44c   : > { %8585 = vmatprep.mubr.msk.f32.mxu1 %vm441_vm0, %v6244_v16  ;;  %v11704_v16 = vld [vmem:[%s11788_s12] ss:$0 sm:$0xff] }
 0x44f   : > { %8586 = vmatmul.mubr.msk.f32.gmra.mrb[8].mxu1 %vm441_vm0, %v6245_v31 }
 0x450   : > { %8588 = vmatprep.mubr.msk.f32.mxu1 %vm441_vm0, %v6246_v8 }
 0x453   : > { %8589 = vmatmul.mubr.msk.f32.gmra.mrb[10].mxu1 %vm441_vm0, %v10916_v43  ;;  %v6266_v43 = vld [vmem:[#allocation2 + $0x199] sm:$0xff] }
 0x454   : > { %8591 = vmatprep.mubr.msk.f32.mxu1 %vm441_vm0, %v10925_v39  ;;  %v6267_v39 = vld [vmem:[#allocation2 + $0x1a1] sm:$0xff] }
 0x457   : > { %8592 = vmatmul.mubr.msk.f32.gmra.mrb[12].mxu1 %vm441_vm0, %v10936_v50 }
 0x458   : > { %8594 = vmatprep.mubr.msk.f32.mxu1 %vm441_vm0, %v10951_v36 }
 0x45b   : > { %8595 = vmatmul.mubr.msk.f32.gmra.mrb[14].mxu1 %vm441_vm0, %v10962_v3  ;;  %v11855_v3 = vld [vmem:[#allocation5_spill] sm:$0xff] }
 0x45c   : > { %8597 = vmatprep.mubr.msk.f32.mxu1 %vm441_vm0, %v10974_v42 }
 0x45f   : > { %8598 = vmatmul.mubr.msk.f32.gmra.mrb[16].mxu1 %vm441_vm0, %v10985_v38  ;;  %v11857_v38 = vld [vmem:[#allocation4_spill] sm:$0xff] }
 0x460   : > { %8600 = vmatprep.mubr.msk.f32.mxu1 %vm441_vm0, %v10994_v2 }
 0x463   : > { %8601 = vmatmul.mubr.msk.f32.gmra.mrb[18].mxu1 %vm441_vm0, %v11005_v63  ;;  %v11859_v63 = vld [vmem:[#allocation7_spill] sm:$0xff] }
 0x464   : > { %8603 = vmatprep.mubr.msk.f32.mxu1 %vm441_vm0, %v11012_v52 }
 0x467   : > { %8604 = vmatmul.mubr.msk.f32.gmra.mrb[20].mxu1 %vm441_vm0, %v11023_v5  ;;  %v11861_v5 = vld [vmem:[#allocation9_spill] sm:$0xff] }
 0x468   : > { %8606 = vmatprep.mubr.msk.f32.mxu1 %vm441_vm0, %v11032_v27 }
 0x46b   : > { %8607 = vmatmul.mubr.msk.f32.gmra.mrb[22].mxu1 %vm441_vm0, %v11829_v34 }
 0x46c   : > { %8609 = vmatprep.mubr.msk.f32.mxu1 %vm441_vm0, %v11830_v33  ;;  %v11867_v33 = vld [vmem:[#allocation15_spill] sm:$0xff] }
 0x46f   : > { %8610 = vmatmul.mubr.msk.f32.gmra.mrb[24].mxu1 %vm441_vm0, %v11831_v24 }
 0x470   : > { %8612 = vmatprep.mubr.msk.f32.mxu1 %vm441_vm0, %v11832_v20  ;;  %v11868_v20 = vld [vmem:[#allocation16_spill] sm:$0xff] }
 0x473   : > { %8613 = vmatmul.mubr.msk.f32.gmra.mrb[26].mxu1 %vm441_vm0, %v11086_v45 }
 0x474   : > { %8615 = vmatprep.mubr.msk.f32.mxu1 %vm441_vm0, %v11246_v11 }
 0x477   : > { %8616 = vmatmul.mubr.msk.f32.gmra.mrb[28].mxu1 %vm441_vm0, %v11252_v58  ;;  %v11869_v58 = vld [vmem:[#allocation17_spill] sm:$0xff] }
 0x478   : > { %8618 = vmatprep.mubr.msk.f32.mxu1 %vm441_vm0, %v6266_v43 }
 0x47b   : > { %8619 = vmatmul.mubr.msk.f32.gmra.mrb[30].mxu1 %vm441_vm0, %v6267_v39 }
 0x47c   : > { %8629 = vmatprep.mubr.msk.f32.mxu1 %vm441_vm0, %v11263_v12 }
 0x47f   : > { %8630 = vmatmul.mubr.msk.f32.vlgmr.msra.gmra.mrb[0].mxu1 %vm441_vm0, %v11268_v10  ;;  %v11870_v10 = vld [vmem:[#allocation18_spill] sm:$0xff] }
 0x480   : > { %8632 = vmatprep.mubr.msk.f32.mxu1 %vm441_vm0, %v11282_v35 }
 0x483   : > { %8633 = vmatmul.mubr.msk.f32.gmra.mrb[2].mxu1 %vm441_vm0, %v11286_v51  ;;  %v11871_v51 = vld [vmem:[#allocation19_spill] sm:$0xff] }
 0x484   : > { %8635 = vmatprep.mubr.msk.f32.mxu1 %vm441_vm0, %v11294_v57  ;;  %v11872_v57 = vld [vmem:[#allocation20_spill] sm:$0xff] }
 0x487   : > { %8636 = vmatmul.mubr.msk.f32.gmra.mrb[4].mxu1 %vm441_vm0, %v11300_v4 }
 0x488   : > { %8638 = vmatprep.mubr.msk.f32.mxu1 %vm441_vm0, %v11307_v55  ;;  %v11873_v55 = vld [vmem:[#allocation21_spill] sm:$0xff] }
 0x489   : > { %v8295_v50 = vpop.f32.mrb[96].mxu0 }
 0x48a   : > { %v4505_v36 = vpop.f32.mrb[97].mxu0 }
 0x48b   : > { %8639 = vmatmul.mubr.msk.f32.gmra.mrb[6].mxu1 %vm441_vm0, %v11313_v44 }
 0x48c   : > { %8641 = vmatprep.mubr.msk.f32.mxu1 %vm441_vm0, %v11855_v3 }
 0x48d   : > { %v8298_v42 = vpop.f32.mrb[98].mxu0 }
 0x48e   : > { %v4515_v62 = vpop.f32.mrb[99].mxu0 }
 0x48f   : > { %8642 = vmatmul.mubr.msk.f32.gmra.mrb[8].mxu1 %vm441_vm0, %v11856_v29 }
 0x490   : > { %8644 = vmatprep.mubr.msk.f32.mxu1 %vm441_vm0, %v11857_v38 }
 0x491   : > { %v11605_v2 = vpop.f32.mrb[100].mxu0 }
 0x492   : > { %v11609_v59 = vpop.f32.mrb[101].mxu0 }
 0x493   : > { %8645 = vmatmul.mubr.msk.f32.gmra.mrb[10].mxu1 %vm441_vm0, %v11858_v26 }
 0x494   : > { %8647 = vmatprep.mubr.msk.f32.mxu1 %vm441_vm0, %v11859_v63 }
 0x495   : > { %v11613_v52 = vpop.f32.mrb[102].mxu0 }
 0x496   : > { %v11617_v15 = vpop.f32.mrb[103].mxu0 }
 0x497   : > { %8648 = vmatmul.mubr.msk.f32.gmra.mrb[12].mxu1 %vm441_vm0, %v11860_v54 }
 0x498   : > { %8650 = vmatprep.mubr.msk.f32.mxu1 %vm441_vm0, %v11861_v5 }
 0x499   : > { %v11621_v27 = vpop.f32.mrb[104].mxu0 }
 0x49a   : > { %v11625_v40 = vpop.f32.mrb[105].mxu0 }
 0x49b   : > { %8651 = vmatmul.mubr.msk.f32.gmra.mrb[14].mxu1 %vm441_vm0, %v11862_v37 }
 0x49c   : > { %8653 = vmatprep.mubr.msk.f32.mxu1 %vm441_vm0, %v11863_v53 }
 0x49d   : > { %v11629_v41 = vpop.f32.mrb[106].mxu0 }
 0x49e   : > { %v11633_v32 = vpop.f32.mrb[107].mxu0 }
 0x49f   : > { %8654 = vmatmul.mubr.msk.f32.gmra.mrb[16].mxu1 %vm441_vm0, %v11864_v14 }
 0x4a0   : > { %8656 = vmatprep.mubr.msk.f32.mxu1 %vm441_vm0, %v11865_v0 }
 0x4a1   : > { %v11637_v45 = vpop.f32.mrb[108].mxu0 }
 0x4a2   : > { %v11641_v34 = vpop.f32.mrb[109].mxu0 }
 0x4a3   : > { %8657 = vmatmul.mubr.msk.f32.gmra.mrb[18].mxu1 %vm441_vm0, %v11866_v47 }
 0x4a4   : > { %8659 = vmatprep.mubr.msk.f32.mxu1 %vm441_vm0, %v11867_v33 }
 0x4a5   : > { %v11645_v24 = vpop.f32.mrb[110].mxu0 }
 0x4a6   : > { %v11649_v11 = vpop.f32.mrb[111].mxu0 }
 0x4a7   : > { %8660 = vmatmul.mubr.msk.f32.gmra.mrb[20].mxu1 %vm441_vm0, %v11868_v20 }
 0x4a8   : > { %8662 = vmatprep.mubr.msk.f32.mxu1 %vm441_vm0, %v11869_v58 }
 0x4a9   : > { %v11653_v12 = vpop.f32.mrb[112].mxu0 }
 0x4aa   : > { %v11657_v35 = vpop.f32.mrb[113].mxu0 }
 0x4ab   : > { %8663 = vmatmul.mubr.msk.f32.gmra.mrb[22].mxu1 %vm441_vm0, %v11870_v10 }
 0x4ac   : > { %8665 = vmatprep.mubr.msk.f32.mxu1 %vm441_vm0, %v11871_v51 }
 0x4ad   : > { %v11661_v9 = vpop.f32.mrb[114].mxu0 }
 0x4ae   : > { %v11665_v4 = vpop.f32.mrb[115].mxu0 }
 0x4af   : > { %8666 = vmatmul.mubr.msk.f32.gmra.mrb[24].mxu1 %vm441_vm0, %v11872_v57 }
 0x4b0   : > { %8668 = vmatprep.mubr.msk.f32.mxu1 %vm441_vm0, %v11873_v55 }
 0x4b1   : > { %v11669_v44 = vpop.f32.mrb[116].mxu0 }
 0x4b2   : > { %v11673_v18 = vpop.f32.mrb[117].mxu0 }
 0x4b3   : > { %8669 = vmatmul.mubr.msk.f32.gmra.mrb[26].mxu1 %vm441_vm0, %v11874_v13 }
 0x4b4   : > { %8671 = vmatprep.mubr.msk.f32.mxu1 %vm441_vm0, %v11875_v49 }
 0x4b5   : > { %v11677_v1 = vpop.f32.mrb[118].mxu0 }
 0x4b6   : > { %v11681_v25 = vpop.f32.mrb[119].mxu0 }
 0x4b7   : > { %8672 = vmatmul.mubr.msk.f32.gmra.mrb[28].mxu1 %vm441_vm0, %v11876_v22 }
 0x4b8   : > { %8674 = vmatprep.mubr.msk.f32.mxu1 %vm441_vm0, %v6651_v23 }
 0x4b9   : > { %v11684_v21 = vpop.f32.mrb[120].mxu0 }
 0x4ba   : > { %v11687_v48 = vpop.f32.mrb[121].mxu0 }
 0x4bb   : > { %8675 = vmatmul.mubr.msk.f32.gmra.mrb[30].mxu1 %vm441_vm0, %v6652_v30 }
 0x4bd   : > { %v11689_v7 = vpop.f32.mrb[122].mxu0 }
 0x4be   : > { %v11691_v61 = vpop.f32.mrb[123].mxu0 }
 0x4c1   : > { %v11693_v46 = vpop.f32.mrb[124].mxu0 }
 0x4c2   : > { %v11695_v6 = vpop.f32.mrb[125].mxu0 }
 0x4c5   : > { %v11697_v60 = vpop.f32.mrb[126].mxu0 }
 0x4c6   : > { %v11699_v19 = vpop.f32.mrb[127].mxu0 }
 0x552   : > { %v8631_v17 = vpop.f32.mrb[0].mxu1 }
 0x553   : > { %v8773_v28 = vadd.f32 %v8631_v17, %v8295_v50  ;;  %v6815_v56 = vpop.f32.mrb[1].mxu1 }
 0x554   : > { %v8774_v31 = vadd.f32 %v6815_v56, %v4505_v36 }
 0x555   : > { %v7014_v26 = vadd.f32 %v8773_v28, %v11704_v16 }
 0x556   : > { %v8634_v8 = vpop.f32.mrb[2].mxu1  ;;  %v7013_v43 = vadd.f32 %v8774_v31, %v11704_v16 }
 0x557   : > { %v8775_v39 = vadd.f32 %v8634_v8, %v8298_v42  ;;  %v6825_v3 = vpop.f32.mrb[3].mxu1 }
 0x558   : > { %v8776_v29 = vadd.f32 %v6825_v3, %v4515_v62  ;;  %7045 = vxpose.xlu0.b32.start [1/16] (narrow) %v7013_v43, 16 }
 0x559   : > { %v7016_v14 = vadd.f32 %v8775_v39, %v11704_v16 }
 0x55a   : > { %v8637_v38 = vpop.f32.mrb[4].mxu1  ;;  %v7015_v37 = vadd.f32 %v8776_v29, %v11704_v16 }
 0x55b   : > { %v8777_v63 = vadd.f32 %v8637_v38, %v11605_v2  ;;  %v6835_v50 = vpop.f32.mrb[5].mxu1 }
 0x55c   : > { %v8778_v54 = vadd.f32 %v6835_v50, %v11609_v59  ;;  %7046 = vxpose.xlu0.b32.cont [2/16] (narrow) %v7014_v26, 16 }
 0x55d   : > { %v7018_v10 = vadd.f32 %v8777_v63, %v11704_v16 }
 0x55e   : > { %v8640_v5 = vpop.f32.mrb[6].mxu1  ;;  %v7017_v33 = vadd.f32 %v8778_v54, %v11704_v16 }
 0x55f   : > { %v8779_v36 = vadd.f32 %v8640_v5, %v11613_v52  ;;  %v6845_v53 = vpop.f32.mrb[7].mxu1 }
 0x560   : > { %v8780_v42 = vadd.f32 %v6845_v53, %v11617_v15  ;;  %7047 = vxpose.xlu0.b32.cont [3/16] (narrow) %v7015_v37, 16 }
 0x561   : > { %v7020_v23 = vadd.f32 %v8779_v36, %v11704_v16 }
 0x562   : > { %v8643_v62 = vpop.f32.mrb[8].mxu1  ;;  %v7019_v55 = vadd.f32 %v8780_v42, %v11704_v16 }
 0x563   : > { %v8781_v0 = vadd.f32 %v8643_v62, %v11621_v27  ;;  %v6855_v47 = vpop.f32.mrb[9].mxu1 }
 0x564   : > { %v8782_v2 = vadd.f32 %v6855_v47, %v11625_v40  ;;  %7048 = vxpose.xlu0.b32.cont [4/16] (narrow) %v7016_v14, 16 }
 0x565   : > { %v7022_v8 = vadd.f32 %v8781_v0, %v11704_v16 }
 0x566   : > { %v8646_v59 = vpop.f32.mrb[10].mxu1  ;;  %v7021_v17 = vadd.f32 %v8782_v2, %v11704_v16 }
 0x567   : > { %v8783_v20 = vadd.f32 %v8646_v59, %v11629_v41  ;;  %v6865_v58 = vpop.f32.mrb[11].mxu1 }
 0x568   : > { %v8784_v52 = vadd.f32 %v6865_v58, %v11633_v32  ;;  %7049 = vxpose.xlu0.b32.cont [5/16] (narrow) %v7017_v33, 16 }
 0x56a   : > { %v8649_v15 = vpop.f32.mrb[12].mxu1 }
 0x56b   : > { %v8785_v51 = vadd.f32 %v8649_v15, %v11637_v45  ;;  %v6875_v57 = vpop.f32.mrb[13].mxu1 }
 0x56c   : > { %v8786_v27 = vadd.f32 %v6875_v57, %v11641_v34  ;;  %7050 = vxpose.xlu0.b32.cont [6/16] (narrow) %v7018_v10, 16 }
 0x56d   : > { %v7026_v0 = vadd.f32 %v8785_v51, %v11704_v16 }
 0x56e   : > { %v8652_v40 = vpop.f32.mrb[14].mxu1  ;;  %v7025_v36 = vadd.f32 %v8786_v27, %v11704_v16 }
 0x56f   : > { %v11724_v13 = vadd.f32 %v8652_v40, %v11645_v24  ;;  %v6885_v41 = vpop.f32.mrb[15].mxu1 }
 0x570   : > { %v8788_v49 = vadd.f32 %v6885_v41, %v11649_v11  ;;  %7051 = vxpose.xlu0.b32.cont [7/16] (narrow) %v7019_v55, 16 }
 0x572   : > { %v8655_v32 = vpop.f32.mrb[16].mxu1  ;;  %v7027_v58 = vadd.f32 %v8788_v49, %v11704_v16 }
 0x573   : > { %v8789_v22 = vadd.f32 %v8655_v32, %v11653_v12  ;;  %v6895_v45 = vpop.f32.mrb[17].mxu1 }
 0x574   : > { %v8790_v30 = vadd.f32 %v6895_v45, %v11657_v35  ;;  %7052 = vxpose.xlu0.b32.cont [8/16] (narrow) %v7020_v23, 16 }
 0x575   : > { %v7030_v12 = vadd.f32 %v8789_v22, %v11704_v16 }
 0x576   : > { %v8658_v34 = vpop.f32.mrb[18].mxu1  ;;  %v7029_v28 = vadd.f32 %v8790_v30, %v11704_v16 }
 0x577   : > { %v8791_v24 = vadd.f32 %v8658_v34, %v11661_v9  ;;  %v6905_v56 = vpop.f32.mrb[19].mxu1  ;;  %v7023_v9 = vadd.f32 %v8784_v52, %v11704_v16 }
 0x578   : > { %v8792_v11 = vadd.f32 %v6905_v56, %v11665_v4  ;;  %7053 = vxpose.xlu0.b32.cont [9/16] (narrow) %v7021_v17, 16  ;;  %7077 = vxpose.xlu1.b32.start [1/16] (narrow) %v7029_v28, 16 }
 0x579   : > { %v7032_v50 = vadd.f32 %v8791_v24, %v11704_v16 }
 0x57a   : > { %v8661_v31 = vpop.f32.mrb[20].mxu1  ;;  %v7031_v29 = vadd.f32 %v8792_v11, %v11704_v16 }
 0x57b   : > { %v8793_v35 = vadd.f32 %v8661_v31, %v11669_v44  ;;  %v6915_v43 = vpop.f32.mrb[21].mxu1  ;;  %v7024_v44 = vadd.f32 %v8783_v20, %v11704_v16 }
 0x57c   : > { %v8794_v39 = vadd.f32 %v6915_v43, %v11673_v18  ;;  %7054 = vxpose.xlu0.b32.cont [10/16] (narrow) %v7022_v8, 16  ;;  %7078 = vxpose.xlu1.b32.cont [2/16] (narrow) %v7030_v12, 16 }
 0x57d   : > { %v7034_v47 = vadd.f32 %v8793_v35, %v11704_v16 }
 0x57e   : > { %v8664_v3 = vpop.f32.mrb[22].mxu1 }
 0x57f   : > { %v8795_v4 = vadd.f32 %v8664_v3, %v11677_v1  ;;  %v6925_v38 = vpop.f32.mrb[23].mxu1 }
 0x580   : > { %v8796_v26 = vadd.f32 %v6925_v38, %v11681_v25  ;;  %7055 = vxpose.xlu0.b32.cont [11/16] (narrow) %v7023_v9, 16  ;;  %7079 = vxpose.xlu1.b32.cont [3/16] (narrow) %v7031_v29, 16  ;;  %v7033_v25 = vadd.f32 %v8794_v39, %v11704_v16 }
 0x581   : > { %v7036_v27 = vadd.f32 %v8795_v4, %v11704_v16 }
 0x582   : > { %v8667_v63 = vpop.f32.mrb[24].mxu1  ;;  %v7035_v52 = vadd.f32 %v8796_v26, %v11704_v16 }
 0x583   : > { %v8797_v18 = vadd.f32 %v8667_v63, %v11684_v21  ;;  %v6935_v54 = vpop.f32.mrb[25].mxu1 }
 0x584   : > { %v8798_v5 = vadd.f32 %v6935_v54, %v11687_v48  ;;  %7056 = vxpose.xlu0.b32.cont [12/16] (narrow) %v7024_v44, 16  ;;  %7080 = vxpose.xlu1.b32.cont [4/16] (narrow) %v7032_v50, 16 }
 0x585   : > { %v7038_v37 = vadd.f32 %v8797_v18, %v11704_v16 }
 0x586   : > { %v8670_v1 = vpop.f32.mrb[26].mxu1  ;;  %v7037_v53 = vadd.f32 %v8798_v5, %v11704_v16 }
 0x587   : > { %v8799_v42 = vadd.f32 %v8670_v1, %v11689_v7  ;;  %v6945_v62 = vpop.f32.mrb[27].mxu1 }
 0x588   : > { %v8800_v14 = vadd.f32 %v6945_v62, %v11691_v61  ;;  %7057 = vxpose.xlu0.b32.cont [13/16] (narrow) %v7025_v36, 16  ;;  %7081 = vxpose.xlu1.b32.cont [5/16] (narrow) %v7033_v25, 16 }
 0x589   : > { %v7040_v21 = vadd.f32 %v8799_v42, %v11704_v16 }
 0x58a   : > { %v8673_v48 = vpop.f32.mrb[28].mxu1  ;;  %v7039_v2 = vadd.f32 %v8800_v14, %v11704_v16 }
 0x58b   : > { %v8801_v59 = vadd.f32 %v8673_v48, %v11693_v46  ;;  %v6955_v33 = vpop.f32.mrb[29].mxu1 }
 0x58c   : > { %v8802_v20 = vadd.f32 %v6955_v33, %v11695_v6  ;;  %7058 = vxpose.xlu0.b32.cont [14/16] (narrow) %v7026_v0, 16  ;;  %7082 = vxpose.xlu1.b32.cont [6/16] (narrow) %v7034_v47, 16  ;;  %v7028_v6 = vadd.f32 %v11724_v13, %v11704_v16 }
 0x58d   : > { %v7042_v7 = vadd.f32 %v8801_v59, %v11704_v16 }
 0x58e   : > { %v8676_v61 = vpop.f32.mrb[30].mxu1  ;;  %v7041_v15 = vadd.f32 %v8802_v20, %v11704_v16 }
 0x58f   : > { %v8803_v10 = vadd.f32 %v8676_v61, %v11697_v60  ;;  %v6965_v51 = vpop.f32.mrb[31].mxu1 }
 0x590   : > { %v8804_v57 = vadd.f32 %v6965_v51, %v11699_v19  ;;  %7059 = vxpose.xlu0.b32.cont [15/16] (narrow) %v7027_v58, 16  ;;  %7083 = vxpose.xlu1.b32.cont [7/16] (narrow) %v7035_v52, 16 }
 0x591   : > { %v7044_v46 = vadd.f32 %v8803_v10, %v11704_v16 }
 0x592   : > { %v7043_v40 = vadd.f32 %v8804_v57, %v11704_v16 }
 0x594   : > { %7060 = vxpose.xlu0.b32.end [16/16] (narrow) %v7028_v6, 16  ;;  %7084 = vxpose.xlu1.b32.cont [8/16] (narrow) %v7036_v27, 16 }
 0x598   : > { %7085 = vxpose.xlu1.b32.cont [9/16] (narrow) %v7037_v53, 16 }
 0x59c   : > { %7086 = vxpose.xlu1.b32.cont [10/16] (narrow) %v7038_v37, 16 }
 0x5a0   : > { %7087 = vxpose.xlu1.b32.cont [11/16] (narrow) %v7039_v2, 16 }
 0x5a4   : > { %7088 = vxpose.xlu1.b32.cont [12/16] (narrow) %v7040_v21, 16 }
 0x5a8   : > { %7089 = vxpose.xlu1.b32.cont [13/16] (narrow) %v7041_v15, 16 }
 0x5ac   : > { %7090 = vxpose.xlu1.b32.cont [14/16] (narrow) %v7042_v7, 16 }
 0x5b0   : > { %7091 = vxpose.xlu1.b32.cont [15/16] (narrow) %v7043_v40, 16 }
 0x5b4   : > { %7092 = vxpose.xlu1.b32.end [16/16] (narrow) %v7044_v46, 16 }
 0x5d8   : > { %v7061_v60 = vpop.trf.xlu0 }
 0x5d9   : > { %7109 = vst [vmem:[%s440_s24] sm:$0xff] %v7061_v60 }
 0x5dc   : > { %v7062_v19 = vpop.trf.xlu0 }
 0x5dd   : > { %7111 = vst [vmem:[%s440_s24 + $0x10] sm:$0x1] %v7062_v19 }
 0x5f8   : > { %v7093_v16 = vpop.trf.xlu1 }
 0x5f9   : > { %7110 = vst [vmem:[%s440_s24 + $0x8] sm:$0xff] %v7093_v16 }
 0x5fc   : > { %v7094_v55 = vpop.trf.xlu1 }
 0x5fd   : > { %7112 = vst [vmem:[%s440_s24 + $0x18] sm:$0x1] %v7094_v55 }
 0x5fe PF: > { %s23_s25 = sadd.s32 1, %s9049_s25  }
 0x5ff   : > { %p20_p4 = scmp.ge.s32.totalorder %s23_s25, 4  }
 0x601   :  { %22 = sbr.rel (!%p20_p4) target bundleno = 1 (0x1), region = 104 }

</bundles_post_ra>
